<compile_context>
chip_gen: v6e
topology: v6e:2x2x1
jax: 0.10.0
libtpu: 0.0.40
codegen_flags: <defaults>
</compile_context>

<pallas_src>
import functools

import jax
import jax.numpy as jnp
from jax.experimental import pallas as pl
from jax.experimental.pallas import tpu as pltpu

_LANE = 128


def _linear_layer_kernel(x_ref, table_ref, out_ref, *, feat_slots, reduce_sum,
                         max_width):
    # x_ref     : (TB, F)  int32      feature ids (already .long()'d in the wrapper)
    # table_ref : (1, Vp)  f32/bf16   lane-dense concatenated per-feature tables
    # out_ref   : (TB, 1)  f32        if reduce_sum else (TB, out_lanes) f32
    ids = x_ref[...]
    tb = ids.shape[0]

    # Single iota for all features; static slices of it per feature are free.
    vocab_iota = jax.lax.broadcasted_iota(jnp.int32, (tb, max_width), 1)

    def pick(f, start, width):
        # Static, lane-aligned slice of this feature's OWN table chunk.  Padded
        # lanes are exactly 0, so out-of-vocab ids contribute 0 (nn.Embedding
        # would raise instead).
        tbl_f = table_ref[0:1, start:start + width].astype(jnp.float32)   # (1, w)
        id_f = ids[:, f:f + 1]                                            # (TB, 1)
        hit = id_f == vocab_iota[:, :width]                               # VPU compare
        return jnp.where(hit, tbl_f, 0.0)                                 # VPU select

    if reduce_sum:
        # Accumulate the one-hot picks on the VPU; one XLU lane-reduce at the end.
        acc = jnp.zeros((tb, max_width), jnp.float32)
        for f, (start, width) in enumerate(feat_slots):
            picked = pick(f, start, width)
            if width == max_width:
                acc = acc + picked
            else:
                acc = acc.at[:, :width].add(picked)        # static lane slice add
        out_ref[...] = jnp.sum(acc, axis=-1, keepdims=True)               # (TB, 1)
    else:
        # Assemble the whole lane-dense tile in registers, then ONE unmasked store.
        out_lanes = out_ref.shape[1]
        lane_iota = jax.lax.broadcasted_iota(jnp.int32, (tb, out_lanes), 1)
        tile = jnp.zeros((tb, out_lanes), jnp.float32)
        for f, (start, width) in enumerate(feat_slots):
            col = jnp.sum(pick(f, start, width), axis=-1, keepdims=True)  # (TB, 1)
            tile = tile + jnp.where(lane_iota == f, col, 0.0)
        out_ref[...] = tile


def linear_layer_forward(X, table, feat_slots, *, reduce_sum=True, block_b=512):
    """X: (B, F) integer (or float) feature ids.
       table: (1, V_pad_total) lane-dense concatenated dim-1 embedding tables.
       feat_slots: static tuple of (lane_start, lane_width) per feature."""
    B, F = X.shape
    assert F == len(feat_slots)
    X = X.astype(jnp.int32)            # the torch .long(); int32 end-to-end

    TB = min(block_b, B)
    if TB != B:
        TB = max(8, (TB // 8) * 8)     # keep the sublane dim of the block 8-aligned
    grid = (pl.cdiv(B, TB),)

    Vp = table.shape[1]
    max_width = max(w for _, w in feat_slots)

    if reduce_sum:
        out_shape = jax.ShapeDtypeStruct((B, 1), jnp.float32)
        out_spec = pl.BlockSpec((TB, 1), lambda i: (i, 0))
        out_bytes = B * 4
    else:
        out_lanes = ((F + _LANE - 1) // _LANE) * _LANE
        out_shape = jax.ShapeDtypeStruct((B, out_lanes), jnp.float32)
        out_spec = pl.BlockSpec((TB, out_lanes), lambda i: (i, 0))
        out_bytes = B * out_lanes * 4

    kernel = functools.partial(
        _linear_layer_kernel,
        feat_slots=tuple(feat_slots),
        reduce_sum=reduce_sum,
        max_width=max_width,
    )

    sum_width = sum(w for _, w in feat_slots)
    cost = pl.CostEstimate(
        flops=int(2 * B * sum_width),                       # compare + select per lane
        transcendentals=0,
        bytes_accessed=int(B * F * 4 + Vp * table.dtype.itemsize + out_bytes),
    )

    out = pl.pallas_call(
        kernel,
        out_shape=out_shape,
        grid=grid,
        in_specs=[
            pl.BlockSpec((TB, F), lambda i: (i, 0)),        # batch tile of ids
            pl.BlockSpec((1, Vp), lambda i: (0, 0)),        # table: VMEM-resident
        ],
        out_specs=out_spec,
        compiler_params=pltpu.CompilerParams(
            dimension_semantics=("parallel",),              # batch tiles independent
            vmem_limit_bytes=48 * 1024 * 1024,              # explicit v7x-safe budget
        ),
        cost_estimate=cost,
    )(X, table)

    if reduce_sum:
        return out                                          # (B, 1)
    return out[:, :F][:, None, :]                           # (B, 1, F)


def build_linear_layer_params(vocab_sizes, init_std=0.0001, key=None,
                              table_dtype=jnp.float32):
    """Lane-dense (1, V_pad_total) table + static per-feature (start, width) slots.

    table_dtype=jnp.bfloat16 halves table HBM/VMEM footprint on v6e/v7x (keep
    float32 on v5e: no bf16 VALU there).  Padded lanes are exactly 0 so that
    out-of-vocab / padded ids contribute 0 to the sum."""
    if key is None:
        key = jax.random.PRNGKey(0)
    weights, chunks, feat_slots = [], [], []
    start = 0
    for i, v in enumerate(vocab_sizes):
        k = jax.random.fold_in(key, i)
        w = jax.random.normal(k, (v,), dtype=jnp.float32) * init_std
        weights.append(w)
        vp = ((v + _LANE - 1) // _LANE) * _LANE             # 128-lane aligned chunk
        chunks.append(jnp.pad(w, (0, vp - v)))
        feat_slots.append((start, vp))
        start += vp
    table = jnp.concatenate(chunks)[None, :].astype(table_dtype)
    return table, tuple(feat_slots), weights


if __name__ == "__main__":
    # 4 sparse features, batch 1024 -> two 512-row batch tiles (grid of 2).
    vocab_sizes = [7, 13, 29, 50]
    B = 1024
    F = len(vocab_sizes)
    init_std = 0.0001

    key = jax.random.PRNGKey(0)
    table, feat_slots, weights = build_linear_layer_params(vocab_sizes, init_std, key)

    # X: (B, F) integer feature ids (the torch module would receive floats and
    # .long() them; the wrapper accepts either and casts to int32).
    id_key = jax.random.fold_in(key, 1234)
    cols = [
        jax.random.randint(jax.random.fold_in(id_key, f), (B, 1), 0, vocab_sizes[f],
                           dtype=jnp.int32)
        for f in range(F)
    ]
    X = jnp.concatenate(cols, axis=1)                       # (B, F) int32

    # reduce_sum=True (module default): output (B, 1)
    out = jax.block_until_ready(
        linear_layer_forward(X, table, feat_slots, reduce_sum=True))

    # pure-JAX reference
    per_feat = jnp.stack([weights[f][X[:, f]] for f in range(F)], axis=1)  # (B, F)
    ref = jnp.sum(per_feat, axis=1, keepdims=True)                          # (B, 1)
    assert out.shape == (B, 1), out.shape
    assert jnp.allclose(out, ref, atol=1e-6), (out[:4], ref[:4])

    # reduce_sum=False path: output (B, 1, F)
    out_nr = jax.block_until_ready(
        linear_layer_forward(X, table, feat_slots, reduce_sum=False))
    ref_nr = per_feat[:, None, :]
    assert out_nr.shape == (B, 1, F), out_nr.shape
    assert jnp.allclose(out_nr, ref_nr, atol=1e-6)

    print("KERNEL_OK")
</pallas_src>

<mosaic_0001>
module attributes {stable_mosaic.version = 11 : i64} {
  func.func @_linear_layer_kernel(%arg0: i32, %arg1: memref<512x4xi32, #tpu.memory_space<vmem>>, %arg2: memref<1x512xf32, #tpu.memory_space<vmem>>, %arg3: memref<512x1xf32, #tpu.memory_space<vmem>>) attributes {dimension_semantics = [#tpu.dimension_semantics<parallel>], iteration_bounds = array<i64: 2>, scalar_prefetch = 0 : i64, scratch_operands = 0 : i64, tpu.core_type = #tpu.core_type<tc>, window_params = [{transform_indices = @transform_0, window_bounds = array<i64: 512, 4>}, {pipeline_mode = #tpu.pipeline_mode<synchronous>, transform_indices = @transform_1, window_bounds = array<i64: 1, 512>}, {transform_indices = @transform_2, window_bounds = array<i64: 512, 1>}]} {
    %c0 = arith.constant 0 : index
    %c0_0 = arith.constant 0 : index
    %0 = vector.load %arg1[%c0, %c0_0] : memref<512x4xi32, #tpu.memory_space<vmem>>, vector<512x4xi32>
    %1 = tpu.iota {dimensions = array<i32: 1>} : vector<512x128xi32>
    %cst = arith.constant 0.000000e+00 : f32
    %2 = vector.broadcast %cst : f32 to vector<512x128xf32>
    %c0_1 = arith.constant 0 : index
    %c0_2 = arith.constant 0 : index
    %3 = vector.load %arg2[%c0_1, %c0_2] : memref<1x512xf32, #tpu.memory_space<vmem>>, vector<1x128xf32>
    %4 = vector.extract_strided_slice %0 {offsets = [0, 0], sizes = [512, 1], strides = [1, 1]} : vector<512x4xi32> to vector<512x1xi32>
    %5 = vector.broadcast %4 : vector<512x1xi32> to vector<512x128xi32>
    %6 = arith.cmpi eq, %5, %1 : vector<512x128xi32>
    %cst_3 = arith.constant 0.000000e+00 : f32
    %7 = vector.shape_cast %3 : vector<1x128xf32> to vector<1x128xf32>
    %8 = vector.broadcast %7 : vector<1x128xf32> to vector<512x128xf32>
    %9 = vector.broadcast %cst_3 : f32 to vector<512x128xf32>
    %10 = arith.select %6, %8, %9 : vector<512x128xi1>, vector<512x128xf32>
    %11 = arith.addf %2, %10 : vector<512x128xf32>
    %c0_4 = arith.constant 0 : index
    %c128 = arith.constant 128 : index
    %12 = vector.load %arg2[%c0_4, %c128] : memref<1x512xf32, #tpu.memory_space<vmem>>, vector<1x128xf32>
    %13 = vector.extract_strided_slice %0 {offsets = [0, 1], sizes = [512, 1], strides = [1, 1]} : vector<512x4xi32> to vector<512x1xi32>
    %14 = vector.broadcast %13 : vector<512x1xi32> to vector<512x128xi32>
    %15 = arith.cmpi eq, %14, %1 : vector<512x128xi32>
    %cst_5 = arith.constant 0.000000e+00 : f32
    %16 = vector.shape_cast %12 : vector<1x128xf32> to vector<1x128xf32>
    %17 = vector.broadcast %16 : vector<1x128xf32> to vector<512x128xf32>
    %18 = vector.broadcast %cst_5 : f32 to vector<512x128xf32>
    %19 = arith.select %15, %17, %18 : vector<512x128xi1>, vector<512x128xf32>
    %20 = arith.addf %11, %19 : vector<512x128xf32>
    %c0_6 = arith.constant 0 : index
    %c256 = arith.constant 256 : index
    %21 = vector.load %arg2[%c0_6, %c256] : memref<1x512xf32, #tpu.memory_space<vmem>>, vector<1x128xf32>
    %22 = vector.extract_strided_slice %0 {offsets = [0, 2], sizes = [512, 1], strides = [1, 1]} : vector<512x4xi32> to vector<512x1xi32>
    %23 = vector.broadcast %22 : vector<512x1xi32> to vector<512x128xi32>
    %24 = arith.cmpi eq, %23, %1 : vector<512x128xi32>
    %cst_7 = arith.constant 0.000000e+00 : f32
    %25 = vector.shape_cast %21 : vector<1x128xf32> to vector<1x128xf32>
    %26 = vector.broadcast %25 : vector<1x128xf32> to vector<512x128xf32>
    %27 = vector.broadcast %cst_7 : f32 to vector<512x128xf32>
    %28 = arith.select %24, %26, %27 : vector<512x128xi1>, vector<512x128xf32>
    %29 = arith.addf %20, %28 : vector<512x128xf32>
    %c0_8 = arith.constant 0 : index
    %c384 = arith.constant 384 : index
    %30 = vector.load %arg2[%c0_8, %c384] : memref<1x512xf32, #tpu.memory_space<vmem>>, vector<1x128xf32>
    %31 = vector.extract_strided_slice %0 {offsets = [0, 3], sizes = [512, 1], strides = [1, 1]} : vector<512x4xi32> to vector<512x1xi32>
    %32 = vector.broadcast %31 : vector<512x1xi32> to vector<512x128xi32>
    %33 = arith.cmpi eq, %32, %1 : vector<512x128xi32>
    %cst_9 = arith.constant 0.000000e+00 : f32
    %34 = vector.shape_cast %30 : vector<1x128xf32> to vector<1x128xf32>
    %35 = vector.broadcast %34 : vector<1x128xf32> to vector<512x128xf32>
    %36 = vector.broadcast %cst_9 : f32 to vector<512x128xf32>
    %37 = arith.select %33, %35, %36 : vector<512x128xi1>, vector<512x128xf32>
    %38 = arith.addf %29, %37 : vector<512x128xf32>
    %cst_10 = arith.constant dense<0.000000e+00> : vector<512xf32>
    %39 = vector.multi_reduction <add>, %38, %cst_10 [1] : vector<512x128xf32> to vector<512xf32>
    %40 = vector.shape_cast %39 : vector<512xf32> to vector<512x1xf32>
    %c0_11 = arith.constant 0 : index
    %c0_12 = arith.constant 0 : index
    %41 = vector.load %arg3[%c0_11, %c0_12] : memref<512x1xf32, #tpu.memory_space<vmem>>, vector<512x1xf32>
    tpu.vector_store %arg3[%c0_11, %c0_12], %40 {strides = array<i32>} : memref<512x1xf32, #tpu.memory_space<vmem>>, vector<512x1xf32>,
    return
  }
  func.func @transform_0(%arg0: i32) -> (i32, i32) {
    %c0_i32 = arith.constant 0 : i32
    %c0_i32_0 = arith.constant 0 : i32
    return %arg0, %c0_i32 : i32, i32
  }
  func.func @transform_1(%arg0: i32) -> (i32, i32) {
    %c0_i32 = arith.constant 0 : i32
    %c0_i32_0 = arith.constant 0 : i32
    %c0_i32_1 = arith.constant 0 : i32
    return %c0_i32, %c0_i32_0 : i32, i32
  }
  func.func @transform_2(%arg0: i32) -> (i32, i32) {
    %c0_i32 = arith.constant 0 : i32
    %c0_i32_0 = arith.constant 0 : i32
    return %arg0, %c0_i32 : i32, i32
  }
}

</mosaic_0001>

<bundles_post_ra>
// kernel: tpu_custom_call.1
= control target key start
LH: loop header
LB: loop body
LE: loop exit
PB: predicated region body
PF: predicated region fallthrough
CT: control target
= control target key end

     0   :  { %s2092_s9 = smov 0   ;;  %s4444_s0 = inlined_call_operand.vmem [shape: s32[1024,4], index: 0, kind: input, shape index: {}]   ;;  %s4445_s1 = inlined_call_operand.vmem [shape: f32[1,512], index: 1, kind: input, shape index: {}]   ;;  %s4446_s2 = inlined_call_operand.vmem [shape: f32[1024,1], index: 2, kind: output, shape index: {}]  }
   0x1 LB: > { %s2026_s10 = sadd.s32 4294967295, %s2071_s9   ;;  %p2030_p0 = scmp.ge.s32.totalorder %s2071_s9, 1  ;;  %s2071_s9 = sphi %s2092_s9, %s12_s9  }
   0x2   : > { %p113_p1 = scmp.lt.s32.totalorder %s2071_s9, 3 }
   0x4   : > { %p114_p2 = pnand %p2030_p0, %p113_p1 }
   0x6   : > { %117 = sbr.rel (%p114_p2) target bundleno = 833 (0x341), region = 28 }
   0xb   : > { %s2031_s11 = sshll.u32 %s2026_s10, 6  ;;  %v2073_v0 = vmov 0  }
   0xc   : > { %2054 = vset.pattern.permute.xlu1 %v2073_v0  ;;  %2053 = vset.pattern.permute.xlu0 %v2073_v0  ;;  %p136_p3 = scmp.lt.s32.totalorder %s2031_s11, 127 }
   0xe   : > { %s4971_s11 = smov (!%p136_p3, %s2031_s11), 127 }
   0xf   : > { %s2032_s12 = sshll.u32 %s4971_s11, 3 }
  0x10   : > { %s2108_s15 = scalar_lea.vmem %s4444_s0, %s2032_s12  ;;  %s4311_s6 = scalar_lea.vmem %s4446_s2, %s2032_s12 }
  0x11   : > { %v2111_v1 = vld [vmem:[%s2108_s15 + $0x10] sm:$0xff]  ;;  %v2114_v2 = vld [vmem:[%s2108_s15] sm:$0xff]  ;;  %v2119_v3 = vld [vmem:[%s2108_s15 + $0x18] sm:$0xff] }
  0x12   : > { %221 = vperm.xlu1 %2054, %v2111_v1   ;;  %215 = vperm.xlu0 %2053, %v2114_v2   ;;  %v2122_v4 = vld [vmem:[%s2108_s15 + $0x8] sm:$0xff]  ;;  %v2130_v6 = vld [vmem:[%s2108_s15 + $0x20] sm:$0xff]  ;;  %v2135_v7 = vld [vmem:[%s2108_s15 + $0x38] sm:$0xff] }
  0x13   : > { %v2127_v5 = vld [vmem:[%s2108_s15 + $0x28] sm:$0xff]  ;;  %v2138_v8 = vld [vmem:[%s2108_s15 + $0x30] sm:$0xff]  ;;  %v2146_v10 = vld [vmem:[%s2108_s15 + $0x40] sm:$0xff] }
  0x14   : > { %v2143_v9 = vld [vmem:[%s2108_s15 + $0x48] sm:$0xff]  ;;  %v2151_v11 = vld [vmem:[%s2108_s15 + $0x58] sm:$0xff]  ;;  %v2154_v12 = vld [vmem:[%s2108_s15 + $0x50] sm:$0xff] }
  0x15   : > { %v2159_v13 = vld [vmem:[%s2108_s15 + $0x68] sm:$0xff]  ;;  %v2162_v14 = vld [vmem:[%s2108_s15 + $0x60] sm:$0xff]  ;;  %v2167_v15 = vld [vmem:[%s2108_s15 + $0x78] sm:$0xff] }
  0x16   : > { %224 = vperm.xlu1 %2054, %v2119_v3   ;;  %218 = vperm.xlu0 %2053, %v2122_v4   ;;  %v2170_v16 = vld [vmem:[%s2108_s15 + $0x70] sm:$0xff]  ;;  %v2175_v17 = vld [vmem:[%s2108_s15 + $0x88] sm:$0xff]  ;;  %v2178_v18 = vld [vmem:[%s2108_s15 + $0x80] sm:$0xff] }
  0x17   : > { %v2183_v19 = vld [vmem:[%s2108_s15 + $0x98] sm:$0xff]  ;;  %v2186_v20 = vld [vmem:[%s2108_s15 + $0x90] sm:$0xff]  ;;  %v2191_v21 = vld [vmem:[%s2108_s15 + $0xa8] sm:$0xff] }
  0x18   : > { %v2194_v22 = vld [vmem:[%s2108_s15 + $0xa0] sm:$0xff]  ;;  %v2199_v23 = vld [vmem:[%s2108_s15 + $0xb8] sm:$0xff]  ;;  %v2202_v24 = vld [vmem:[%s2108_s15 + $0xb0] sm:$0xff] }
  0x19   : > { %v2207_v25 = vld [vmem:[%s2108_s15 + $0xc8] sm:$0xff]  ;;  %v2210_v26 = vld [vmem:[%s2108_s15 + $0xc0] sm:$0xff]  ;;  %v2215_v27 = vld [vmem:[%s2108_s15 + $0xd8] sm:$0xff] }
  0x1a   : > { %230 = vperm.xlu1 %2054, %v2127_v5   ;;  %227 = vperm.xlu0 %2053, %v2130_v6   ;;  %v2218_v28 = vld [vmem:[%s2108_s15 + $0xd0] sm:$0xff]  ;;  %v2223_v29 = vld [vmem:[%s2108_s15 + $0xe8] sm:$0xff]  ;;  %v2226_v30 = vld [vmem:[%s2108_s15 + $0xe0] sm:$0xff] }
  0x1b   : > { %v2231_v31 = vld [vmem:[%s2108_s15 + $0xf8] sm:$0xff]  ;;  %v2234_v32 = vld [vmem:[%s2108_s15 + $0xf0] sm:$0xff]  ;;  %v2239_v33 = vld [vmem:[%s2108_s15 + $0x108] sm:$0xff] }
  0x1c   : > { %v2242_v34 = vld [vmem:[%s2108_s15 + $0x100] sm:$0xff]  ;;  %v2247_v35 = vld [vmem:[%s2108_s15 + $0x118] sm:$0xff]  ;;  %v2250_v36 = vld [vmem:[%s2108_s15 + $0x110] sm:$0xff] }
  0x1d   : > { %v2255_v37 = vld [vmem:[%s2108_s15 + $0x128] sm:$0xff]  ;;  %v2258_v38 = vld [vmem:[%s2108_s15 + $0x120] sm:$0xff]  ;;  %v2263_v39 = vld [vmem:[%s2108_s15 + $0x138] sm:$0xff] }
  0x1e   : > { %236 = vperm.xlu1 %2054, %v2135_v7   ;;  %233 = vperm.xlu0 %2053, %v2138_v8   ;;  %v2266_v40 = vld [vmem:[%s2108_s15 + $0x130] sm:$0xff]  ;;  %v2271_v41 = vld [vmem:[%s2108_s15 + $0x148] sm:$0xff]  ;;  %v2274_v42 = vld [vmem:[%s2108_s15 + $0x140] sm:$0xff] }
  0x1f   : > { %v2279_v43 = vld [vmem:[%s2108_s15 + $0x158] sm:$0xff]  ;;  %v2282_v44 = vld [vmem:[%s2108_s15 + $0x150] sm:$0xff]  ;;  %v2287_v45 = vld [vmem:[%s2108_s15 + $0x168] sm:$0xff] }
  0x20   : > { %v2290_v46 = vld [vmem:[%s2108_s15 + $0x160] sm:$0xff]  ;;  %v2295_v47 = vld [vmem:[%s2108_s15 + $0x178] sm:$0xff]  ;;  %v2298_v48 = vld [vmem:[%s2108_s15 + $0x170] sm:$0xff] }
  0x21   : > { %4500 = vst [vmem:[#allocation2_spill] sm:$0xff] %v2290_v46  ;;  %4501 = vst [vmem:[#allocation3_spill] sm:$0xff] %v2298_v48  ;;  %v2303_v49 = vld [vmem:[%s2108_s15 + $0x188] sm:$0xff]  ;;  %v2306_v50 = vld [vmem:[%s2108_s15 + $0x180] sm:$0xff] }
  0x22   : > { %242 = vperm.xlu1 %2054, %v2143_v9   ;;  %239 = vperm.xlu0 %2053, %v2146_v10   ;;  %4502 = vst [vmem:[#allocation4_spill] sm:$0xff] %v2303_v49  ;;  %4503 = vst [vmem:[#allocation5_spill] sm:$0xff] %v2306_v50  ;;  %v2311_v51 = vld [vmem:[%s2108_s15 + $0x198] sm:$0xff]  ;;  %v2314_v52 = vld [vmem:[%s2108_s15 + $0x190] sm:$0xff] }
  0x23   : > { %4504 = vst [vmem:[#allocation6_spill] sm:$0xff] %v2311_v51  ;;  %4505 = vst [vmem:[#allocation7_spill] sm:$0xff] %v2314_v52  ;;  %v2319_v53 = vld [vmem:[%s2108_s15 + $0x1a8] sm:$0xff]  ;;  %v2322_v54 = vld [vmem:[%s2108_s15 + $0x1a0] sm:$0xff] }
  0x24   : > { %4506 = vst [vmem:[#allocation8_spill] sm:$0xff] %v2319_v53  ;;  %4507 = vst [vmem:[#allocation9_spill] sm:$0xff] %v2322_v54  ;;  %v2327_v55 = vld [vmem:[%s2108_s15 + $0x1b8] sm:$0xff]  ;;  %v2330_v56 = vld [vmem:[%s2108_s15 + $0x1b0] sm:$0xff] }
  0x25   : > { %4508 = vst [vmem:[#allocation10_spill] sm:$0xff] %v2327_v55  ;;  %4509 = vst [vmem:[#allocation11_spill] sm:$0xff] %v2330_v56  ;;  %v2335_v57 = vld [vmem:[%s2108_s15 + $0x1c8] sm:$0xff]  ;;  %v2338_v58 = vld [vmem:[%s2108_s15 + $0x1c0] sm:$0xff] }
  0x26   : > { %248 = vperm.xlu1 %2054, %v2151_v11   ;;  %245 = vperm.xlu0 %2053, %v2154_v12   ;;  %4510 = vst [vmem:[#allocation12_spill] sm:$0xff] %v2335_v57  ;;  %4511 = vst [vmem:[#allocation13_spill] sm:$0xff] %v2338_v58  ;;  %v2343_v59 = vld [vmem:[%s2108_s15 + $0x1d8] sm:$0xff]  ;;  %v2346_v60 = vld [vmem:[%s2108_s15 + $0x1d0] sm:$0xff] }
  0x27   : > { %4512 = vst [vmem:[#allocation14_spill] sm:$0xff] %v2343_v59  ;;  %4513 = vst [vmem:[#allocation15_spill] sm:$0xff] %v2346_v60  ;;  %v2351_v61 = vld [vmem:[%s2108_s15 + $0x1e8] sm:$0xff]  ;;  %v2354_v62 = vld [vmem:[%s2108_s15 + $0x1e0] sm:$0xff] }
  0x28   : > { %4514 = vst [vmem:[#allocation16_spill] sm:$0xff] %v2351_v61  ;;  %4515 = vst [vmem:[#allocation17_spill] sm:$0xff] %v2354_v62  ;;  %v2359_v63 = vld [vmem:[%s2108_s15 + $0x1f8] sm:$0xff]  ;;  %v2362_v0 = vld [vmem:[%s2108_s15 + $0x1f0] sm:$0xff] }
  0x2a   : > { %254 = vperm.xlu1 %2054, %v2159_v13   ;;  %251 = vperm.xlu0 %2053, %v2162_v14  }
  0x2e   : > { %260 = vperm.xlu1 %2054, %v2167_v15   ;;  %257 = vperm.xlu0 %2053, %v2170_v16  }
  0x32   : > { %266 = vperm.xlu1 %2054, %v2175_v17   ;;  %263 = vperm.xlu0 %2053, %v2178_v18  }
  0x36   : > { %272 = vperm.xlu1 %2054, %v2183_v19   ;;  %269 = vperm.xlu0 %2053, %v2186_v20  }
  0x3a   : > { %278 = vperm.xlu1 %2054, %v2191_v21   ;;  %275 = vperm.xlu0 %2053, %v2194_v22  }
  0x3e   : > { %284 = vperm.xlu1 %2054, %v2199_v23   ;;  %281 = vperm.xlu0 %2053, %v2202_v24  }
  0x42   : > { %290 = vperm.xlu1 %2054, %v2207_v25   ;;  %287 = vperm.xlu0 %2053, %v2210_v26  }
  0x46   : > { %296 = vperm.xlu1 %2054, %v2215_v27   ;;  %293 = vperm.xlu0 %2053, %v2218_v28  }
  0x4a   : > { %302 = vperm.xlu1 %2054, %v2223_v29   ;;  %299 = vperm.xlu0 %2053, %v2226_v30  }
  0x4e   : > { %308 = vperm.xlu1 %2054, %v2231_v31   ;;  %305 = vperm.xlu0 %2053, %v2234_v32  }
  0x52   : > { %314 = vperm.xlu1 %2054, %v2239_v33   ;;  %311 = vperm.xlu0 %2053, %v2242_v34  }
  0x56   : > { %320 = vperm.xlu1 %2054, %v2247_v35   ;;  %317 = vperm.xlu0 %2053, %v2250_v36  }
  0x5a   : > { %326 = vperm.xlu1 %2054, %v2255_v37   ;;  %323 = vperm.xlu0 %2053, %v2258_v38  }
  0x5e   : > { %332 = vperm.xlu1 %2054, %v2263_v39   ;;  %329 = vperm.xlu0 %2053, %v2266_v40  }
  0x62   : > { %338 = vperm.xlu1 %2054, %v2271_v41   ;;  %335 = vperm.xlu0 %2053, %v2274_v42  }
  0x66   : > { %344 = vperm.xlu1 %2054, %v2279_v43   ;;  %341 = vperm.xlu0 %2053, %v2282_v44  }
  0x6a   : > { %350 = vperm.xlu1 %2054, %v2287_v45   ;;  %347 = vperm.xlu0 %2053, %v2290_v46  }
  0x6e   : > { %356 = vperm.xlu1 %2054, %v2295_v47   ;;  %353 = vperm.xlu0 %2053, %v2298_v48  }
  0x72   : > { %362 = vperm.xlu1 %2054, %v2303_v49   ;;  %359 = vperm.xlu0 %2053, %v2306_v50  }
  0x76   : > { %368 = vperm.xlu1 %2054, %v2311_v51   ;;  %365 = vperm.xlu0 %2053, %v2314_v52  }
  0x7a   : > { %374 = vperm.xlu1 %2054, %v2319_v53   ;;  %371 = vperm.xlu0 %2053, %v2322_v54  }
  0x7e   : > { %380 = vperm.xlu1 %2054, %v2327_v55   ;;  %377 = vperm.xlu0 %2053, %v2330_v56   ;;  %v2074_v55 = vmov 1  }
  0x82   : > { %386 = vperm.xlu1 %2054, %v2335_v57   ;;  %383 = vperm.xlu0 %2053, %v2338_v58  }
  0x86   : > { %392 = vperm.xlu1 %2054, %v2343_v59   ;;  %389 = vperm.xlu0 %2053, %v2346_v60  }
  0x8a   : > { %398 = vperm.xlu1 %2054, %v2351_v61   ;;  %395 = vperm.xlu0 %2053, %v2354_v62  }
  0x8d   : > { %v2364_v57 = vpop.permute.xlu1 %221  ;;  %v2366_v58 = vpop.permute.xlu0 %215 }
  0x8e   : > { %4516 = vst [vmem:[#allocation18_spill] sm:$0xff] %v2364_v57  ;;  %4517 = vst [vmem:[#allocation19_spill] sm:$0xff] %v2366_v58  ;;  %404 = vperm.xlu1 %2054, %v2359_v63   ;;  %401 = vperm.xlu0 %2053, %v2362_v0  }
  0x91   : > { %v2370_v59 = vpop.permute.xlu1 %224  ;;  %v2372_v60 = vpop.permute.xlu0 %218 }
  0x92   : > { %4518 = vst [vmem:[#allocation20_spill] sm:$0xff] %v2370_v59  ;;  %4519 = vst [vmem:[#allocation21_spill] sm:$0xff] %v2372_v60  ;;  %2056 = vset.pattern.permute.xlu1 %v2074_v55  ;;  %2055 = vset.pattern.permute.xlu0 %v2074_v55 }
  0x93   : > { %609 = vperm.xlu1 %2056, %v2122_v4   ;;  %606 = vperm.xlu0 %2055, %v2114_v2  }
  0x95   : > { %v2376_v61 = vpop.permute.xlu1 %230  ;;  %v2378_v57 = vpop.permute.xlu0 %227 }
  0x96   : > { %4520 = vst [vmem:[#allocation22_spill] sm:$0xff] %v2376_v61  ;;  %4521 = vst [vmem:[#allocation23_spill] sm:$0xff] %v2378_v57 }
  0x97   : > { %612 = vperm.xlu1 %2056, %v2111_v1   ;;  %615 = vperm.xlu0 %2055, %v2119_v3  }
  0x99   : > { %v2382_v58 = vpop.permute.xlu1 %236  ;;  %v2384_v59 = vpop.permute.xlu0 %233 }
  0x9a   : > { %4522 = vst [vmem:[#allocation24_spill] sm:$0xff] %v2382_v58  ;;  %4523 = vst [vmem:[#allocation25_spill] sm:$0xff] %v2384_v59 }
  0x9b   : > { %618 = vperm.xlu1 %2056, %v2130_v6   ;;  %621 = vperm.xlu0 %2055, %v2127_v5  }
  0x9d   : > { %v2388_v55 = vpop.permute.xlu1 %242  ;;  %v2390_v60 = vpop.permute.xlu0 %239 }
  0x9e   : > { %4524 = vst [vmem:[#allocation26_spill] sm:$0xff] %v2388_v55  ;;  %4525 = vst [vmem:[#allocation27_spill] sm:$0xff] %v2390_v60 }
  0x9f   : > { %624 = vperm.xlu1 %2056, %v2138_v8   ;;  %627 = vperm.xlu0 %2055, %v2135_v7  }
  0xa1   : > { %v2394_v57 = vpop.permute.xlu1 %248  ;;  %v2396_v61 = vpop.permute.xlu0 %245 }
  0xa2   : > { %4526 = vst [vmem:[#allocation28_spill] sm:$0xff] %v2394_v57  ;;  %4527 = vst [vmem:[#allocation29_spill] sm:$0xff] %v2396_v61 }
  0xa3   : > { %630 = vperm.xlu1 %2056, %v2146_v10   ;;  %633 = vperm.xlu0 %2055, %v2143_v9  }
  0xa5   : > { %v2400_v59 = vpop.permute.xlu1 %254  ;;  %v2402_v58 = vpop.permute.xlu0 %251 }
  0xa6   : > { %4528 = vst [vmem:[#allocation30_spill] sm:$0xff] %v2400_v59  ;;  %4529 = vst [vmem:[#allocation31_spill] sm:$0xff] %v2402_v58 }
  0xa7   : > { %636 = vperm.xlu1 %2056, %v2154_v12   ;;  %639 = vperm.xlu0 %2055, %v2151_v11  }
  0xa9   : > { %v2406_v60 = vpop.permute.xlu1 %260  ;;  %v2408_v55 = vpop.permute.xlu0 %257 }
  0xaa   : > { %4530 = vst [vmem:[#allocation32_spill] sm:$0xff] %v2406_v60  ;;  %4531 = vst [vmem:[#allocation33_spill] sm:$0xff] %v2408_v55 }
  0xab   : > { %642 = vperm.xlu1 %2056, %v2162_v14   ;;  %645 = vperm.xlu0 %2055, %v2159_v13  }
  0xad   : > { %v2412_v61 = vpop.permute.xlu1 %266  ;;  %v2414_v57 = vpop.permute.xlu0 %263 }
  0xae   : > { %4532 = vst [vmem:[#allocation34_spill] sm:$0xff] %v2412_v61  ;;  %4533 = vst [vmem:[#allocation35_spill] sm:$0xff] %v2414_v57 }
  0xaf   : > { %648 = vperm.xlu1 %2056, %v2170_v16   ;;  %651 = vperm.xlu0 %2055, %v2167_v15  }
  0xb1   : > { %v2418_v58 = vpop.permute.xlu1 %272  ;;  %v2420_v59 = vpop.permute.xlu0 %269 }
  0xb2   : > { %4534 = vst [vmem:[#allocation36_spill] sm:$0xff] %v2418_v58  ;;  %4535 = vst [vmem:[#allocation37_spill] sm:$0xff] %v2420_v59 }
  0xb3   : > { %654 = vperm.xlu1 %2056, %v2178_v18   ;;  %657 = vperm.xlu0 %2055, %v2175_v17  }
  0xb5   : > { %v2424_v55 = vpop.permute.xlu1 %278  ;;  %v2426_v60 = vpop.permute.xlu0 %275 }
  0xb6   : > { %4536 = vst [vmem:[#allocation38_spill] sm:$0xff] %v2424_v55  ;;  %4537 = vst [vmem:[#allocation39_spill] sm:$0xff] %v2426_v60 }
  0xb7   : > { %660 = vperm.xlu1 %2056, %v2186_v20   ;;  %663 = vperm.xlu0 %2055, %v2183_v19  }
  0xb9   : > { %v2430_v57 = vpop.permute.xlu1 %284  ;;  %v2432_v61 = vpop.permute.xlu0 %281 }
  0xba   : > { %4538 = vst [vmem:[#allocation40_spill] sm:$0xff] %v2430_v57  ;;  %4539 = vst [vmem:[#allocation41_spill] sm:$0xff] %v2432_v61 }
  0xbb   : > { %666 = vperm.xlu1 %2056, %v2194_v22   ;;  %669 = vperm.xlu0 %2055, %v2191_v21  }
  0xbd   : > { %v2436_v59 = vpop.permute.xlu1 %290  ;;  %v2438_v58 = vpop.permute.xlu0 %287 }
  0xbe   : > { %4540 = vst [vmem:[#allocation42_spill] sm:$0xff] %v2436_v59  ;;  %4541 = vst [vmem:[#allocation43_spill] sm:$0xff] %v2438_v58 }
  0xbf   : > { %672 = vperm.xlu1 %2056, %v2202_v24   ;;  %675 = vperm.xlu0 %2055, %v2199_v23  }
  0xc1   : > { %v2442_v60 = vpop.permute.xlu1 %296  ;;  %v2444_v55 = vpop.permute.xlu0 %293 }
  0xc2   : > { %4542 = vst [vmem:[#allocation44_spill] sm:$0xff] %v2442_v60  ;;  %4543 = vst [vmem:[#allocation45_spill] sm:$0xff] %v2444_v55 }
  0xc3   : > { %678 = vperm.xlu1 %2056, %v2210_v26   ;;  %681 = vperm.xlu0 %2055, %v2207_v25  }
  0xc5   : > { %v2448_v61 = vpop.permute.xlu1 %302  ;;  %v2450_v57 = vpop.permute.xlu0 %299 }
  0xc6   : > { %4544 = vst [vmem:[#allocation46_spill] sm:$0xff] %v2448_v61  ;;  %4545 = vst [vmem:[#allocation47_spill] sm:$0xff] %v2450_v57 }
  0xc7   : > { %684 = vperm.xlu1 %2056, %v2218_v28   ;;  %687 = vperm.xlu0 %2055, %v2215_v27  }
  0xc9   : > { %v2454_v58 = vpop.permute.xlu1 %308  ;;  %v2456_v59 = vpop.permute.xlu0 %305 }
  0xca   : > { %4546 = vst [vmem:[#allocation48_spill] sm:$0xff] %v2454_v58  ;;  %4547 = vst [vmem:[#allocation49_spill] sm:$0xff] %v2456_v59 }
  0xcb   : > { %690 = vperm.xlu1 %2056, %v2226_v30   ;;  %693 = vperm.xlu0 %2055, %v2223_v29  }
  0xcd   : > { %v2460_v55 = vpop.permute.xlu1 %314  ;;  %v2462_v60 = vpop.permute.xlu0 %311 }
  0xce   : > { %4548 = vst [vmem:[#allocation50_spill] sm:$0xff] %v2460_v55  ;;  %4549 = vst [vmem:[#allocation51_spill] sm:$0xff] %v2462_v60 }
  0xcf   : > { %696 = vperm.xlu1 %2056, %v2234_v32   ;;  %699 = vperm.xlu0 %2055, %v2231_v31  }
  0xd1   : > { %v2466_v57 = vpop.permute.xlu1 %320  ;;  %v2468_v61 = vpop.permute.xlu0 %317 }
  0xd2   : > { %4550 = vst [vmem:[#allocation52_spill] sm:$0xff] %v2466_v57  ;;  %4551 = vst [vmem:[#allocation53_spill] sm:$0xff] %v2468_v61 }
  0xd3   : > { %702 = vperm.xlu1 %2056, %v2242_v34   ;;  %705 = vperm.xlu0 %2055, %v2239_v33  }
  0xd5   : > { %v2472_v59 = vpop.permute.xlu1 %326  ;;  %v2474_v58 = vpop.permute.xlu0 %323 }
  0xd6   : > { %4552 = vst [vmem:[#allocation54_spill] sm:$0xff] %v2472_v59  ;;  %4553 = vst [vmem:[#allocation55_spill] sm:$0xff] %v2474_v58 }
  0xd7   : > { %708 = vperm.xlu1 %2056, %v2250_v36   ;;  %711 = vperm.xlu0 %2055, %v2247_v35  }
  0xd9   : > { %v2478_v60 = vpop.permute.xlu1 %332  ;;  %v2480_v55 = vpop.permute.xlu0 %329 }
  0xda   : > { %4554 = vst [vmem:[#allocation56_spill] sm:$0xff] %v2478_v60  ;;  %4555 = vst [vmem:[#allocation57_spill] sm:$0xff] %v2480_v55 }
  0xdb   : > { %714 = vperm.xlu1 %2056, %v2258_v38   ;;  %717 = vperm.xlu0 %2055, %v2255_v37  }
  0xdd   : > { %v2484_v61 = vpop.permute.xlu1 %338  ;;  %v2486_v57 = vpop.permute.xlu0 %335 }
  0xde   : > { %4556 = vst [vmem:[#allocation58_spill] sm:$0xff] %v2484_v61  ;;  %4557 = vst [vmem:[#allocation59_spill] sm:$0xff] %v2486_v57 }
  0xdf   : > { %720 = vperm.xlu1 %2056, %v2266_v40   ;;  %723 = vperm.xlu0 %2055, %v2263_v39  }
  0xe1   : > { %v2490_v58 = vpop.permute.xlu1 %344  ;;  %v2492_v59 = vpop.permute.xlu0 %341 }
  0xe2   : > { %4558 = vst [vmem:[#allocation60_spill] sm:$0xff] %v2490_v58  ;;  %4559 = vst [vmem:[#allocation61_spill] sm:$0xff] %v2492_v59 }
  0xe3   : > { %726 = vperm.xlu1 %2056, %v2274_v42   ;;  %729 = vperm.xlu0 %2055, %v2271_v41  }
  0xe5   : > { %v2496_v55 = vpop.permute.xlu1 %350  ;;  %v2498_v60 = vpop.permute.xlu0 %347 }
  0xe6   : > { %4560 = vst [vmem:[#allocation62_spill] sm:$0xff] %v2496_v55  ;;  %4561 = vst [vmem:[#allocation63_spill] sm:$0xff] %v2498_v60 }
  0xe7   : > { %732 = vperm.xlu1 %2056, %v2282_v44   ;;  %735 = vperm.xlu0 %2055, %v2279_v43  }
  0xe9   : > { %v2502_v57 = vpop.permute.xlu1 %356  ;;  %v2504_v61 = vpop.permute.xlu0 %353 }
  0xea   : > { %4562 = vst [vmem:[#allocation64_spill] sm:$0xff] %v2502_v57  ;;  %4563 = vst [vmem:[#allocation65_spill] sm:$0xff] %v2504_v61 }
  0xeb   : > { %738 = vperm.xlu1 %2056, %v2290_v46   ;;  %741 = vperm.xlu0 %2055, %v2287_v45  }
  0xed   : > { %v2508_v59 = vpop.permute.xlu1 %362  ;;  %v2510_v58 = vpop.permute.xlu0 %359 }
  0xee   : > { %4564 = vst [vmem:[#allocation66_spill] sm:$0xff] %v2508_v59  ;;  %4565 = vst [vmem:[#allocation67_spill] sm:$0xff] %v2510_v58 }
  0xef   : > { %744 = vperm.xlu1 %2056, %v2298_v48   ;;  %747 = vperm.xlu0 %2055, %v2295_v47  }
  0xf1   : > { %v2514_v60 = vpop.permute.xlu1 %368  ;;  %v2516_v55 = vpop.permute.xlu0 %365 }
  0xf2   : > { %4566 = vst [vmem:[#allocation68_spill] sm:$0xff] %v2514_v60  ;;  %4567 = vst [vmem:[#allocation69_spill] sm:$0xff] %v2516_v55 }
  0xf3   : > { %750 = vperm.xlu1 %2056, %v2306_v50   ;;  %753 = vperm.xlu0 %2055, %v2303_v49  }
  0xf5   : > { %v2520_v61 = vpop.permute.xlu1 %374  ;;  %v2522_v57 = vpop.permute.xlu0 %371 }
  0xf6   : > { %4568 = vst [vmem:[#allocation70_spill] sm:$0xff] %v2520_v61  ;;  %4569 = vst [vmem:[#allocation71_spill] sm:$0xff] %v2522_v57  ;;  %v4574_v61 = vld [vmem:[#allocation10_spill] sm:$0xff] }
  0xf7   : > { %756 = vperm.xlu1 %2056, %v2314_v52   ;;  %759 = vperm.xlu0 %2055, %v2311_v51   ;;  %v4577_v51 = vld [vmem:[#allocation13_spill] sm:$0xff] }
  0xf9   : > { %v2526_v58 = vpop.permute.xlu1 %380  ;;  %v2528_v59 = vpop.permute.xlu0 %377 }
  0xfa   : > { %4570 = vst [vmem:[#allocation72_spill] sm:$0xff] %v2526_v58  ;;  %4571 = vst [vmem:[#allocation73_spill] sm:$0xff] %v2528_v59  ;;  %v4578_v58 = vld [vmem:[#allocation12_spill] sm:$0xff] }
  0xfb   : > { %762 = vperm.xlu1 %2056, %v2322_v54   ;;  %765 = vperm.xlu0 %2055, %v2319_v53   ;;  %v4581_v53 = vld [vmem:[#allocation15_spill] sm:$0xff] }
  0xfd   : > { %v2532_v55 = vpop.permute.xlu1 %386  ;;  %v2534_v60 = vpop.permute.xlu0 %383 }
  0xfe   : > { %4572 = vst [vmem:[#allocation74_spill] sm:$0xff] %v2532_v55  ;;  %4573 = vst [vmem:[#allocation75_spill] sm:$0xff] %v2534_v60  ;;  %v4582_v55 = vld [vmem:[#allocation14_spill] sm:$0xff] }
  0xff   : > { %768 = vperm.xlu1 %2056, %v2330_v56   ;;  %771 = vperm.xlu0 %2055, %v4574_v61  }
 0x101   : > { %v2538_v57 = vpop.permute.xlu1 %392  ;;  %v2540_v49 = vpop.permute.xlu0 %389 }
 0x102   : > { %4575 = vst [vmem:[#allocation76_spill] sm:$0xff] %v2538_v57  ;;  %4576 = vst [vmem:[#allocation77_spill] sm:$0xff] %v2540_v49  ;;  %v4585_v57 = vld [vmem:[#allocation16_spill] sm:$0xff] }
 0x103   : > { %774 = vperm.xlu1 %2056, %v4577_v51   ;;  %777 = vperm.xlu0 %2055, %v4578_v58  }
 0x105   : > { %v2544_v59 = vpop.permute.xlu1 %398  ;;  %v2546_v54 = vpop.permute.xlu0 %395 }
 0x106   : > { %4579 = vst [vmem:[#allocation12_spill] sm:$0xff] %v2544_v59  ;;  %4580 = vst [vmem:[#allocation78_spill] sm:$0xff] %v2546_v54 }
 0x107   : > { %780 = vperm.xlu1 %2056, %v4581_v53   ;;  %783 = vperm.xlu0 %2055, %v4582_v55   ;;  %v2075_v55 = vmov 2  }
 0x109   : > { %v2550_v60 = vpop.permute.xlu1 %404  ;;  %v2552_v56 = vpop.permute.xlu0 %401 }
 0x10a   : > { %4583 = vst [vmem:[#allocation15_spill] sm:$0xff] %v2550_v60  ;;  %4584 = vst [vmem:[#allocation79_spill] sm:$0xff] %v2552_v56 }
 0x10b   : > { %786 = vperm.xlu1 %2056, %v2354_v62   ;;  %789 = vperm.xlu0 %2055, %v4585_v57  }
 0x10e   : > { %v2556_v49 = vpop.permute.xlu1 %609  ;;  %v2558_v61 = vpop.permute.xlu0 %606 }
 0x10f   : > { %4586 = vst [vmem:[#allocation16_spill] sm:$0xff] %v2556_v49  ;;  %4587 = vst [vmem:[#allocation80_spill] sm:$0xff] %v2558_v61  ;;  %792 = vperm.xlu1 %2056, %v2362_v0   ;;  %795 = vperm.xlu0 %2055, %v2359_v63   ;;  %v4640_v49 = vld [vmem:[#allocation4_spill] sm:$0xff] }
 0x112   : > { %v2562_v59 = vpop.permute.xlu1 %612  ;;  %v2564_v54 = vpop.permute.xlu0 %615 }
 0x113   : > { %4588 = vst [vmem:[#allocation81_spill] sm:$0xff] %v2562_v59  ;;  %4589 = vst [vmem:[#allocation82_spill] sm:$0xff] %v2564_v54  ;;  %2057 = vset.pattern.permute.xlu1 %v2075_v55  ;;  %2058 = vset.pattern.permute.xlu0 %v2075_v55 }
 0x114   : > { %997 = vperm.xlu1 %2057, %v2114_v2   ;;  %1000 = vperm.xlu0 %2058, %v2122_v4  }
 0x116   : > { %v2568_v60 = vpop.permute.xlu1 %618  ;;  %v2570_v56 = vpop.permute.xlu0 %621 }
 0x117   : > { %4590 = vst [vmem:[#allocation83_spill] sm:$0xff] %v2568_v60  ;;  %4591 = vst [vmem:[#allocation84_spill] sm:$0xff] %v2570_v56 }
 0x118   : > { %1003 = vperm.xlu1 %2057, %v2111_v1   ;;  %1009 = vperm.xlu0 %2058, %v2130_v6  }
 0x11a   : > { %v2574_v61 = vpop.permute.xlu1 %624  ;;  %v2576_v59 = vpop.permute.xlu0 %627 }
 0x11b   : > { %4592 = vst [vmem:[#allocation85_spill] sm:$0xff] %v2574_v61  ;;  %4593 = vst [vmem:[#allocation86_spill] sm:$0xff] %v2576_v59 }
 0x11c   : > { %1006 = vperm.xlu1 %2057, %v2119_v3   ;;  %1015 = vperm.xlu0 %2058, %v2138_v8  }
 0x11e   : > { %v2580_v55 = vpop.permute.xlu1 %630  ;;  %v2582_v54 = vpop.permute.xlu0 %633 }
 0x11f   : > { %4594 = vst [vmem:[#allocation87_spill] sm:$0xff] %v2580_v55  ;;  %4595 = vst [vmem:[#allocation88_spill] sm:$0xff] %v2582_v54 }
 0x120   : > { %1012 = vperm.xlu1 %2057, %v2127_v5   ;;  %1021 = vperm.xlu0 %2058, %v2146_v10  }
 0x122   : > { %v2586_v56 = vpop.permute.xlu1 %636  ;;  %v2588_v60 = vpop.permute.xlu0 %639 }
 0x123   : > { %4596 = vst [vmem:[#allocation89_spill] sm:$0xff] %v2586_v56  ;;  %4597 = vst [vmem:[#allocation90_spill] sm:$0xff] %v2588_v60 }
 0x124   : > { %1018 = vperm.xlu1 %2057, %v2135_v7   ;;  %1027 = vperm.xlu0 %2058, %v2154_v12  }
 0x126   : > { %v2592_v59 = vpop.permute.xlu1 %642  ;;  %v2594_v61 = vpop.permute.xlu0 %645 }
 0x127   : > { %4598 = vst [vmem:[#allocation91_spill] sm:$0xff] %v2592_v59  ;;  %4599 = vst [vmem:[#allocation92_spill] sm:$0xff] %v2594_v61 }
 0x128   : > { %1024 = vperm.xlu1 %2057, %v2143_v9   ;;  %1033 = vperm.xlu0 %2058, %v2162_v14  }
 0x12a   : > { %v2598_v54 = vpop.permute.xlu1 %648  ;;  %v2600_v55 = vpop.permute.xlu0 %651 }
 0x12b   : > { %4600 = vst [vmem:[#allocation93_spill] sm:$0xff] %v2598_v54  ;;  %4601 = vst [vmem:[#allocation94_spill] sm:$0xff] %v2600_v55 }
 0x12c   : > { %1030 = vperm.xlu1 %2057, %v2151_v11   ;;  %1039 = vperm.xlu0 %2058, %v2170_v16  }
 0x12e   : > { %v2604_v60 = vpop.permute.xlu1 %654  ;;  %v2606_v56 = vpop.permute.xlu0 %657 }
 0x12f   : > { %4602 = vst [vmem:[#allocation95_spill] sm:$0xff] %v2604_v60  ;;  %4603 = vst [vmem:[#allocation96_spill] sm:$0xff] %v2606_v56 }
 0x130   : > { %1036 = vperm.xlu1 %2057, %v2159_v13   ;;  %1045 = vperm.xlu0 %2058, %v2178_v18  }
 0x132   : > { %v2610_v61 = vpop.permute.xlu1 %660  ;;  %v2612_v59 = vpop.permute.xlu0 %663 }
 0x133   : > { %4604 = vst [vmem:[#allocation97_spill] sm:$0xff] %v2610_v61  ;;  %4605 = vst [vmem:[#allocation98_spill] sm:$0xff] %v2612_v59 }
 0x134   : > { %1042 = vperm.xlu1 %2057, %v2167_v15   ;;  %1051 = vperm.xlu0 %2058, %v2186_v20  }
 0x136   : > { %v2616_v55 = vpop.permute.xlu1 %666  ;;  %v2618_v54 = vpop.permute.xlu0 %669 }
 0x137   : > { %4606 = vst [vmem:[#allocation99_spill] sm:$0xff] %v2616_v55  ;;  %4607 = vst [vmem:[#allocation100_spill] sm:$0xff] %v2618_v54 }
 0x138   : > { %1048 = vperm.xlu1 %2057, %v2175_v17   ;;  %1057 = vperm.xlu0 %2058, %v2194_v22  }
 0x13a   : > { %v2622_v56 = vpop.permute.xlu1 %672  ;;  %v2624_v60 = vpop.permute.xlu0 %675 }
 0x13b   : > { %4608 = vst [vmem:[#allocation101_spill] sm:$0xff] %v2622_v56  ;;  %4609 = vst [vmem:[#allocation102_spill] sm:$0xff] %v2624_v60 }
 0x13c   : > { %1054 = vperm.xlu1 %2057, %v2183_v19   ;;  %1063 = vperm.xlu0 %2058, %v2202_v24  }
 0x13e   : > { %v2628_v59 = vpop.permute.xlu1 %678  ;;  %v2630_v61 = vpop.permute.xlu0 %681 }
 0x13f   : > { %4610 = vst [vmem:[#allocation103_spill] sm:$0xff] %v2628_v59  ;;  %4611 = vst [vmem:[#allocation104_spill] sm:$0xff] %v2630_v61 }
 0x140   : > { %1060 = vperm.xlu1 %2057, %v2191_v21   ;;  %1069 = vperm.xlu0 %2058, %v2210_v26  }
 0x142   : > { %v2634_v54 = vpop.permute.xlu1 %684  ;;  %v2636_v55 = vpop.permute.xlu0 %687 }
 0x143   : > { %4612 = vst [vmem:[#allocation105_spill] sm:$0xff] %v2634_v54  ;;  %4613 = vst [vmem:[#allocation106_spill] sm:$0xff] %v2636_v55 }
 0x144   : > { %1066 = vperm.xlu1 %2057, %v2199_v23   ;;  %1075 = vperm.xlu0 %2058, %v2218_v28  }
 0x146   : > { %v2640_v60 = vpop.permute.xlu1 %690  ;;  %v2642_v56 = vpop.permute.xlu0 %693 }
 0x147   : > { %4614 = vst [vmem:[#allocation107_spill] sm:$0xff] %v2640_v60  ;;  %4615 = vst [vmem:[#allocation108_spill] sm:$0xff] %v2642_v56 }
 0x148   : > { %1072 = vperm.xlu1 %2057, %v2207_v25   ;;  %1081 = vperm.xlu0 %2058, %v2226_v30  }
 0x14a   : > { %v2646_v61 = vpop.permute.xlu1 %696  ;;  %v2648_v59 = vpop.permute.xlu0 %699 }
 0x14b   : > { %4616 = vst [vmem:[#allocation109_spill] sm:$0xff] %v2646_v61  ;;  %4617 = vst [vmem:[#allocation110_spill] sm:$0xff] %v2648_v59 }
 0x14c   : > { %1078 = vperm.xlu1 %2057, %v2215_v27   ;;  %1087 = vperm.xlu0 %2058, %v2234_v32  }
 0x14e   : > { %v2652_v55 = vpop.permute.xlu1 %702  ;;  %v2654_v54 = vpop.permute.xlu0 %705 }
 0x14f   : > { %4618 = vst [vmem:[#allocation111_spill] sm:$0xff] %v2652_v55  ;;  %4619 = vst [vmem:[#allocation112_spill] sm:$0xff] %v2654_v54 }
 0x150   : > { %1084 = vperm.xlu1 %2057, %v2223_v29   ;;  %1093 = vperm.xlu0 %2058, %v2242_v34  }
 0x152   : > { %v2658_v56 = vpop.permute.xlu1 %708  ;;  %v2660_v60 = vpop.permute.xlu0 %711 }
 0x153   : > { %4620 = vst [vmem:[#allocation113_spill] sm:$0xff] %v2658_v56  ;;  %4621 = vst [vmem:[#allocation114_spill] sm:$0xff] %v2660_v60 }
 0x154   : > { %1090 = vperm.xlu1 %2057, %v2231_v31   ;;  %1099 = vperm.xlu0 %2058, %v2250_v36  }
 0x156   : > { %v2664_v59 = vpop.permute.xlu1 %714  ;;  %v2666_v61 = vpop.permute.xlu0 %717 }
 0x157   : > { %4622 = vst [vmem:[#allocation115_spill] sm:$0xff] %v2664_v59  ;;  %4623 = vst [vmem:[#allocation116_spill] sm:$0xff] %v2666_v61 }
 0x158   : > { %1096 = vperm.xlu1 %2057, %v2239_v33   ;;  %1105 = vperm.xlu0 %2058, %v2258_v38  }
 0x15a   : > { %v2670_v54 = vpop.permute.xlu1 %720  ;;  %v2672_v55 = vpop.permute.xlu0 %723 }
 0x15b   : > { %4624 = vst [vmem:[#allocation117_spill] sm:$0xff] %v2670_v54  ;;  %4625 = vst [vmem:[#allocation118_spill] sm:$0xff] %v2672_v55 }
 0x15c   : > { %1102 = vperm.xlu1 %2057, %v2247_v35   ;;  %1111 = vperm.xlu0 %2058, %v2266_v40  }
 0x15e   : > { %v2676_v60 = vpop.permute.xlu1 %726  ;;  %v2678_v56 = vpop.permute.xlu0 %729 }
 0x15f   : > { %4626 = vst [vmem:[#allocation119_spill] sm:$0xff] %v2676_v60  ;;  %4627 = vst [vmem:[#allocation120_spill] sm:$0xff] %v2678_v56 }
 0x160   : > { %1108 = vperm.xlu1 %2057, %v2255_v37   ;;  %1117 = vperm.xlu0 %2058, %v2274_v42  }
 0x162   : > { %v2682_v61 = vpop.permute.xlu1 %732  ;;  %v2684_v59 = vpop.permute.xlu0 %735 }
 0x163   : > { %4628 = vst [vmem:[#allocation121_spill] sm:$0xff] %v2682_v61  ;;  %4629 = vst [vmem:[#allocation122_spill] sm:$0xff] %v2684_v59 }
 0x164   : > { %1114 = vperm.xlu1 %2057, %v2263_v39   ;;  %1123 = vperm.xlu0 %2058, %v2282_v44  }
 0x166   : > { %v2688_v55 = vpop.permute.xlu1 %738  ;;  %v2690_v54 = vpop.permute.xlu0 %741 }
 0x167   : > { %4630 = vst [vmem:[#allocation123_spill] sm:$0xff] %v2688_v55  ;;  %4631 = vst [vmem:[#allocation124_spill] sm:$0xff] %v2690_v54 }
 0x168   : > { %1120 = vperm.xlu1 %2057, %v2271_v41   ;;  %1129 = vperm.xlu0 %2058, %v2290_v46  }
 0x16a   : > { %v2694_v56 = vpop.permute.xlu1 %744  ;;  %v2696_v60 = vpop.permute.xlu0 %747 }
 0x16b   : > { %4632 = vst [vmem:[#allocation125_spill] sm:$0xff] %v2694_v56  ;;  %4633 = vst [vmem:[#allocation126_spill] sm:$0xff] %v2696_v60 }
 0x16c   : > { %1126 = vperm.xlu1 %2057, %v2279_v43   ;;  %1135 = vperm.xlu0 %2058, %v2298_v48  }
 0x16e   : > { %v2700_v59 = vpop.permute.xlu1 %750  ;;  %v2702_v61 = vpop.permute.xlu0 %753 }
 0x16f   : > { %4634 = vst [vmem:[#allocation127_spill] sm:$0xff] %v2700_v59  ;;  %4635 = vst [vmem:[#allocation128_spill] sm:$0xff] %v2702_v61  ;;  %v4641_v59 = vld [vmem:[#allocation9_spill] sm:$0xff] }
 0x170   : > { %1132 = vperm.xlu1 %2057, %v2287_v45   ;;  %1141 = vperm.xlu0 %2058, %v2306_v50   ;;  %v4644_v50 = vld [vmem:[#allocation6_spill] sm:$0xff] }
 0x172   : > { %v2706_v54 = vpop.permute.xlu1 %756  ;;  %v2708_v55 = vpop.permute.xlu0 %759 }
 0x173   : > { %4636 = vst [vmem:[#allocation129_spill] sm:$0xff] %v2706_v54  ;;  %4637 = vst [vmem:[#allocation130_spill] sm:$0xff] %v2708_v55  ;;  %v4645_v54 = vld [vmem:[#allocation11_spill] sm:$0xff] }
 0x174   : > { %1138 = vperm.xlu1 %2057, %v2295_v47   ;;  %1147 = vperm.xlu0 %2058, %v2314_v52   ;;  %v4648_v52 = vld [vmem:[#allocation8_spill] sm:$0xff] }
 0x176   : > { %v2712_v60 = vpop.permute.xlu1 %762  ;;  %v2714_v56 = vpop.permute.xlu0 %765 }
 0x177   : > { %4638 = vst [vmem:[#allocation131_spill] sm:$0xff] %v2712_v60  ;;  %4639 = vst [vmem:[#allocation132_spill] sm:$0xff] %v2714_v56 }
 0x178   : > { %1144 = vperm.xlu1 %2057, %v4640_v49   ;;  %1153 = vperm.xlu0 %2058, %v4641_v59   ;;  %v4651_v59 = vld [vmem:[#allocation10_spill] sm:$0xff] }
 0x17a   : > { %v2718_v61 = vpop.permute.xlu1 %768  ;;  %v2720_v48 = vpop.permute.xlu0 %771 }
 0x17b   : > { %4642 = vst [vmem:[#allocation4_spill] sm:$0xff] %v2718_v61  ;;  %4643 = vst [vmem:[#allocation133_spill] sm:$0xff] %v2720_v48 }
 0x17c   : > { %1150 = vperm.xlu1 %2057, %v4644_v50   ;;  %1159 = vperm.xlu0 %2058, %v4645_v54  }
 0x17e   : > { %v2724_v55 = vpop.permute.xlu1 %774  ;;  %v2726_v46 = vpop.permute.xlu0 %777 }
 0x17f   : > { %4646 = vst [vmem:[#allocation6_spill] sm:$0xff] %v2724_v55  ;;  %4647 = vst [vmem:[#allocation11_spill] sm:$0xff] %v2726_v46 }
 0x180   : > { %1156 = vperm.xlu1 %2057, %v4648_v52   ;;  %1165 = vperm.xlu0 %2058, %v4577_v51   ;;  %v4656_v51 = vld [vmem:[#allocation14_spill] sm:$0xff] }
 0x182   : > { %v2730_v56 = vpop.permute.xlu1 %780  ;;  %v2732_v60 = vpop.permute.xlu0 %783 }
 0x183   : > { %4649 = vst [vmem:[#allocation8_spill] sm:$0xff] %v2730_v56  ;;  %4650 = vst [vmem:[#allocation134_spill] sm:$0xff] %v2732_v60 }
 0x184   : > { %1162 = vperm.xlu1 %2057, %v4651_v59   ;;  %1171 = vperm.xlu0 %2058, %v4581_v53  }
 0x186   : > { %v2736_v48 = vpop.permute.xlu1 %786  ;;  %v2738_v61 = vpop.permute.xlu0 %789 }
 0x187   : > { %4652 = vst [vmem:[#allocation10_spill] sm:$0xff] %v2736_v48  ;;  %4653 = vst [vmem:[#allocation135_spill] sm:$0xff] %v2738_v61  ;;  %v2076_v48 = vmov 3  }
 0x188   : > { %1168 = vperm.xlu1 %2057, %v4578_v58   ;;  %1177 = vperm.xlu0 %2058, %v2354_v62  }
 0x18a   : > { %v2742_v46 = vpop.permute.xlu1 %792  ;;  %v2744_v55 = vpop.permute.xlu0 %795 }
 0x18b   : > { %4654 = vst [vmem:[#allocation136_spill] sm:$0xff] %v2742_v46  ;;  %4655 = vst [vmem:[#allocation137_spill] sm:$0xff] %v2744_v55 }
 0x18c   : > { %1174 = vperm.xlu1 %2057, %v4656_v51   ;;  %1183 = vperm.xlu0 %2058, %v2362_v0  }
 0x18f   : > { %v2748_v60 = vpop.permute.xlu1 %997  ;;  %v2750_v56 = vpop.permute.xlu0 %1000 }
 0x190   : > { %4657 = vst [vmem:[#allocation14_spill] sm:$0xff] %v2748_v60  ;;  %1180 = vperm.xlu1 %2057, %v4585_v57   ;;  %2059 = vset.pattern.permute.xlu0 %v2076_v48 }
 0x191   : > { %1388 = vperm.xlu0 %2059, %v2114_v2  }
 0x193   : > { %v2754_v61 = vpop.permute.xlu1 %1003  ;;  %v2756_v62 = vpop.permute.xlu0 %1009 }
 0x194   : > { %4658 = vst [vmem:[#allocation138_spill] sm:$0xff] %v2756_v62  ;;  %1186 = vperm.xlu1 %2057, %v2359_v63  }
 0x195   : > { %1397 = vperm.xlu0 %2059, %v2119_v3  }
 0x197   : > { %v2760_v55 = vpop.permute.xlu1 %1006  ;;  %v2762_v46 = vpop.permute.xlu0 %1015 }
 0x198   : > { %2060 = vset.pattern.permute.xlu1 %v2076_v48 }
 0x199   : > { %1391 = vperm.xlu1 %2060, %v2122_v4   ;;  %1403 = vperm.xlu0 %2059, %v2127_v5  }
 0x19b   : > { %v2766_v60 = vpop.permute.xlu1 %1012  ;;  %v2768_v2 = vpop.permute.xlu0 %1021 }
 0x19d   : > { %1394 = vperm.xlu1 %2060, %v2111_v1   ;;  %1409 = vperm.xlu0 %2059, %v2135_v7  }
 0x19f   : > { %v2772_v62 = vpop.permute.xlu1 %1018  ;;  %v2774_v3 = vpop.permute.xlu0 %1027 }
 0x1a1   : > { %1400 = vperm.xlu1 %2060, %v2130_v6   ;;  %1415 = vperm.xlu0 %2059, %v2143_v9  }
 0x1a3   : > { %v2778_v48 = vpop.permute.xlu1 %1024  ;;  %v2780_v4 = vpop.permute.xlu0 %1033 }
 0x1a5   : > { %1406 = vperm.xlu1 %2060, %v2138_v8   ;;  %1421 = vperm.xlu0 %2059, %v2151_v11  }
 0x1a7   : > { %v2784_v5 = vpop.permute.xlu1 %1030  ;;  %v2786_v1 = vpop.permute.xlu0 %1039 }
 0x1a8   : > { %4659 = vst [vmem:[#allocation139_spill] sm:$0xff] %v2784_v5  ;;  %v4819_v5 = vld [vmem:[#allocation88_spill] sm:$0xff] }
 0x1a9   : > { %1412 = vperm.xlu1 %2060, %v2146_v10   ;;  %1427 = vperm.xlu0 %2059, %v2159_v13  }
 0x1ab   : > { %v2790_v7 = vpop.permute.xlu1 %1036  ;;  %v2792_v6 = vpop.permute.xlu0 %1045 }
 0x1ac   : > { %4660 = vst [vmem:[#allocation140_spill] sm:$0xff] %v2790_v7 }
 0x1ad   : > { %1418 = vperm.xlu1 %2060, %v2154_v12   ;;  %1433 = vperm.xlu0 %2059, %v2167_v15  }
 0x1af   : > { %v2796_v9 = vpop.permute.xlu1 %1042  ;;  %v2798_v8 = vpop.permute.xlu0 %1051 }
 0x1b0   : > { %4661 = vst [vmem:[#allocation141_spill] sm:$0xff] %v2796_v9  ;;  %4662 = vst [vmem:[#allocation142_spill] sm:$0xff] %v2798_v8  ;;  %v4811_v9 = vld [vmem:[#allocation83_spill] sm:$0xff] }
 0x1b1   : > { %1424 = vperm.xlu1 %2060, %v2162_v14   ;;  %1439 = vperm.xlu0 %2059, %v2175_v17   ;;  %v4818_v8 = vld [vmem:[#allocation87_spill] sm:$0xff] }
 0x1b3   : > { %v2802_v11 = vpop.permute.xlu1 %1048  ;;  %v2804_v10 = vpop.permute.xlu0 %1057 }
 0x1b4   : > { %4663 = vst [vmem:[#allocation143_spill] sm:$0xff] %v2802_v11  ;;  %4664 = vst [vmem:[#allocation144_spill] sm:$0xff] %v2804_v10 }
 0x1b5   : > { %1430 = vperm.xlu1 %2060, %v2170_v16   ;;  %1445 = vperm.xlu0 %2059, %v2183_v19  }
 0x1b7   : > { %v2808_v13 = vpop.permute.xlu1 %1054  ;;  %v2810_v12 = vpop.permute.xlu0 %1063 }
 0x1b8   : > { %4665 = vst [vmem:[#allocation145_spill] sm:$0xff] %v2808_v13  ;;  %4666 = vst [vmem:[#allocation146_spill] sm:$0xff] %v2810_v12 }
 0x1b9   : > { %1436 = vperm.xlu1 %2060, %v2178_v18   ;;  %1451 = vperm.xlu0 %2059, %v2191_v21  }
 0x1bb   : > { %v2814_v15 = vpop.permute.xlu1 %1060  ;;  %v2816_v14 = vpop.permute.xlu0 %1069 }
 0x1bc   : > { %4667 = vst [vmem:[#allocation147_spill] sm:$0xff] %v2814_v15  ;;  %4668 = vst [vmem:[#allocation148_spill] sm:$0xff] %v2816_v14  ;;  %v4754_v15 = vld [vmem:[#allocation55_spill] sm:$0xff]  ;;  %v4767_v14 = vld [vmem:[#allocation60_spill] sm:$0xff] }
 0x1bd   : > { %1442 = vperm.xlu1 %2060, %v2186_v20   ;;  %1457 = vperm.xlu0 %2059, %v2199_v23  }
 0x1bf   : > { %v2820_v17 = vpop.permute.xlu1 %1066  ;;  %v2822_v16 = vpop.permute.xlu0 %1075 }
 0x1c0   : > { %4669 = vst [vmem:[#allocation149_spill] sm:$0xff] %v2820_v17  ;;  %4670 = vst [vmem:[#allocation150_spill] sm:$0xff] %v2822_v16  ;;  %v4750_v17 = vld [vmem:[#allocation52_spill] sm:$0xff] }
 0x1c1   : > { %1448 = vperm.xlu1 %2060, %v2194_v22   ;;  %1463 = vperm.xlu0 %2059, %v2207_v25   ;;  %v4757_v16 = vld [vmem:[#allocation56_spill] sm:$0xff] }
 0x1c3   : > { %v2826_v19 = vpop.permute.xlu1 %1072  ;;  %v2828_v18 = vpop.permute.xlu0 %1081 }
 0x1c4   : > { %4671 = vst [vmem:[#allocation151_spill] sm:$0xff] %v2826_v19  ;;  %4672 = vst [vmem:[#allocation152_spill] sm:$0xff] %v2828_v18 }
 0x1c5   : > { %1454 = vperm.xlu1 %2060, %v2202_v24   ;;  %1469 = vperm.xlu0 %2059, %v2215_v27  }
 0x1c7   : > { %v2832_v21 = vpop.permute.xlu1 %1078  ;;  %v2834_v20 = vpop.permute.xlu0 %1087 }
 0x1c8   : > { %4673 = vst [vmem:[#allocation153_spill] sm:$0xff] %v2832_v21  ;;  %4674 = vst [vmem:[#allocation154_spill] sm:$0xff] %v2834_v20  ;;  %v4743_v21 = vld [vmem:[#allocation48_spill] sm:$0xff] }
 0x1c9   : > { %1460 = vperm.xlu1 %2060, %v2210_v26   ;;  %1475 = vperm.xlu0 %2059, %v2223_v29  }
 0x1cb   : > { %v2838_v23 = vpop.permute.xlu1 %1084  ;;  %v2840_v22 = vpop.permute.xlu0 %1093 }
 0x1cc   : > { %4675 = vst [vmem:[#allocation155_spill] sm:$0xff] %v2838_v23  ;;  %4676 = vst [vmem:[#allocation156_spill] sm:$0xff] %v2840_v22  ;;  %v4742_v23 = vld [vmem:[#allocation13_spill] sm:$0xff] }
 0x1cd   : > { %1466 = vperm.xlu1 %2060, %v2218_v28   ;;  %1481 = vperm.xlu0 %2059, %v2231_v31  }
 0x1cf   : > { %v2844_v25 = vpop.permute.xlu1 %1090  ;;  %v2846_v24 = vpop.permute.xlu0 %1099 }
 0x1d0   : > { %4677 = vst [vmem:[#allocation157_spill] sm:$0xff] %v2844_v25  ;;  %4678 = vst [vmem:[#allocation158_spill] sm:$0xff] %v2846_v24 }
 0x1d1   : > { %1472 = vperm.xlu1 %2060, %v2226_v30   ;;  %1487 = vperm.xlu0 %2059, %v2239_v33  }
 0x1d3   : > { %v2850_v27 = vpop.permute.xlu1 %1096  ;;  %v2852_v26 = vpop.permute.xlu0 %1105 }
 0x1d4   : > { %4679 = vst [vmem:[#allocation159_spill] sm:$0xff] %v2850_v27  ;;  %4680 = vst [vmem:[#allocation160_spill] sm:$0xff] %v2852_v26  ;;  %v4732_v27 = vld [vmem:[#allocation40_spill] sm:$0xff] }
 0x1d5   : > { %1478 = vperm.xlu1 %2060, %v2234_v32   ;;  %1493 = vperm.xlu0 %2059, %v2247_v35   ;;  %v4738_v26 = vld [vmem:[#allocation44_spill] sm:$0xff] }
 0x1d7   : > { %v2856_v29 = vpop.permute.xlu1 %1102  ;;  %v2858_v28 = vpop.permute.xlu0 %1111 }
 0x1d8   : > { %4681 = vst [vmem:[#allocation161_spill] sm:$0xff] %v2856_v29  ;;  %4682 = vst [vmem:[#allocation162_spill] sm:$0xff] %v2858_v28 }
 0x1d9   : > { %1484 = vperm.xlu1 %2060, %v2242_v34   ;;  %1499 = vperm.xlu0 %2059, %v2255_v37  }
 0x1db   : > { %v2862_v31 = vpop.permute.xlu1 %1108  ;;  %v2864_v30 = vpop.permute.xlu0 %1117 }
 0x1dc   : > { %4683 = vst [vmem:[#allocation163_spill] sm:$0xff] %v2862_v31  ;;  %4684 = vst [vmem:[#allocation164_spill] sm:$0xff] %v2864_v30  ;;  %v4731_v30 = vld [vmem:[#allocation39_spill] sm:$0xff] }
 0x1dd   : > { %1490 = vperm.xlu1 %2060, %v2250_v36   ;;  %1505 = vperm.xlu0 %2059, %v2263_v39  }
 0x1df   : > { %v2868_v33 = vpop.permute.xlu1 %1114  ;;  %v2870_v32 = vpop.permute.xlu0 %1123 }
 0x1e0   : > { %4685 = vst [vmem:[#allocation165_spill] sm:$0xff] %v2868_v33  ;;  %4686 = vst [vmem:[#allocation166_spill] sm:$0xff] %v2870_v32  ;;  %v4728_v32 = vld [vmem:[#allocation36_spill] sm:$0xff] }
 0x1e1   : > { %1496 = vperm.xlu1 %2060, %v2258_v38   ;;  %1511 = vperm.xlu0 %2059, %v2271_v41  }
 0x1e3   : > { %v2874_v35 = vpop.permute.xlu1 %1120  ;;  %v2876_v34 = vpop.permute.xlu0 %1129 }
 0x1e4   : > { %4687 = vst [vmem:[#allocation167_spill] sm:$0xff] %v2874_v35  ;;  %4688 = vst [vmem:[#allocation168_spill] sm:$0xff] %v2876_v34  ;;  %v4721_v35 = vld [vmem:[#allocation9_spill] sm:$0xff] }
 0x1e5   : > { %1502 = vperm.xlu1 %2060, %v2266_v40   ;;  %1517 = vperm.xlu0 %2059, %v2279_v43   ;;  %v4695_v43 = vld [vmem:[#allocation2_spill] sm:$0xff] }
 0x1e7   : > { %v2880_v37 = vpop.permute.xlu1 %1126  ;;  %v2882_v36 = vpop.permute.xlu0 %1135 }
 0x1e8   : > { %4689 = vst [vmem:[#allocation169_spill] sm:$0xff] %v2880_v37  ;;  %4690 = vst [vmem:[#allocation170_spill] sm:$0xff] %v2882_v36  ;;  %v211_v37 = vlaneseq  ;;  %v4722_v36 = vld [vmem:[#allocation32_spill] sm:$0xff] }
 0x1e9   : > { %1508 = vperm.xlu1 %2060, %v2274_v42   ;;  %1523 = vperm.xlu0 %2059, %v2287_v45  }
 0x1eb   : > { %v2886_v39 = vpop.permute.xlu1 %1132  ;;  %v2888_v38 = vpop.permute.xlu0 %1141 }
 0x1ec   : > { %4691 = vst [vmem:[#allocation171_spill] sm:$0xff] %v2886_v39  ;;  %4692 = vst [vmem:[#allocation172_spill] sm:$0xff] %v2888_v38  ;;  %v4698_v39 = vld [vmem:[#allocation3_spill] sm:$0xff]  ;;  %v4717_v38 = vld [vmem:[#allocation28_spill] sm:$0xff] }
 0x1ed   : > { %1514 = vperm.xlu1 %2060, %v2282_v44   ;;  %1529 = vperm.xlu0 %2059, %v2295_v47   ;;  %v2904_v44 = vand.u32 127, %v211_v37 }
 0x1ef   : > { %v2892_v41 = vpop.permute.xlu1 %1138  ;;  %v2894_v40 = vpop.permute.xlu0 %1147  ;;  %vm417_vm10 = vcmp.eq.s32.totalorder %v4717_v38, %v2904_v44  ;;  %vm421_vm14 = vcmp.eq.s32.totalorder %v4722_v36, %v2904_v44 }
 0x1f0   : > { %4693 = vst [vmem:[#allocation173_spill] sm:$0xff] %v2892_v41  ;;  %4694 = vst [vmem:[#allocation174_spill] sm:$0xff] %v2894_v40  ;;  %v4701_v40 = vld [vmem:[#allocation5_spill] sm:$0xff] }
 0x1f1   : > { %1520 = vperm.xlu1 %2060, %v4695_v43   ;;  %1535 = vperm.xlu0 %2059, %v4640_v49   ;;  %v2915_v49 = vld [vmem:[%s4445_s1] ss:$0 sm:$0xff] }
 0x1f2   : > { %v4702_v43 = vld [vmem:[#allocation18_spill] sm:$0xff] }
 0x1f3   : > { %v2898_v42 = vpop.permute.xlu1 %1144  ;;  %v2900_v45 = vpop.permute.xlu0 %1153  ;;  %vm408_vm0 = vcmp.eq.s32.totalorder %v4702_v43, %v2904_v44  ;;  %v4710_v43 = vld [vmem:[#allocation7_spill] sm:$0xff] }
 0x1f4   : > { %4696 = vst [vmem:[#allocation2_spill] sm:$0xff] %v2898_v42  ;;  %4697 = vst [vmem:[#allocation175_spill] sm:$0xff] %v2900_v45  ;;  %v4709_v42 = vld [vmem:[#allocation23_spill] sm:$0xff] }
 0x1f5   : > { %1526 = vperm.xlu1 %2060, %v4698_v39   ;;  %1541 = vperm.xlu0 %2059, %v4644_v50   ;;  %v4703_v50 = vld [vmem:[#allocation19_spill] sm:$0xff]  ;;  %vm410_vm5 = vcmp.eq.s32.totalorder %v4709_v42, %v2904_v44  ;;  %v4712_v42 = vld [vmem:[#allocation25_spill] sm:$0xff] }
 0x1f6   : > { %vm406_vm1 = vcmp.eq.s32.totalorder %v4703_v50, %v2904_v44  ;;  %v2936_v50 = vsel %vm408_vm0, %v2915_v49, 0.0  ;;  %vm412_vm7 = vcmp.eq.s32.totalorder %v4712_v42, %v2904_v44  ;;  %v4716_v45 = vld [vmem:[#allocation27_spill] sm:$0xff] }
 0x1f7   : > { %v2906_v47 = vpop.permute.xlu1 %1150  ;;  %v2908_v41 = vpop.permute.xlu0 %1159  ;;  %vm414_vm9 = vcmp.eq.s32.totalorder %v4716_v45, %v2904_v44  ;;  %v2979_v45 = vsel %vm412_vm7, %v2915_v49, 0.0 }
 0x1f8   : > { %4699 = vst [vmem:[#allocation3_spill] sm:$0xff] %v2906_v47  ;;  %4700 = vst [vmem:[#allocation176_spill] sm:$0xff] %v2908_v41  ;;  %v4706_v47 = vld [vmem:[#allocation20_spill] sm:$0xff] }
 0x1f9   : > { %1532 = vperm.xlu1 %2060, %v4701_v40   ;;  %1547 = vperm.xlu0 %2059, %v4648_v52   ;;  %vm409_vm2 = vcmp.eq.s32.totalorder %v4706_v47, %v2904_v44  ;;  %v4707_v52 = vld [vmem:[#allocation21_spill] sm:$0xff]  ;;  %v4708_v40 = vld [vmem:[#allocation22_spill] sm:$0xff]  ;;  %v4711_v47 = vld [vmem:[#allocation24_spill] sm:$0xff] }
 0x1fa   : > { %vm407_vm3 = vcmp.eq.s32.totalorder %v4707_v52, %v2904_v44  ;;  %vm411_vm4 = vcmp.eq.s32.totalorder %v4708_v40, %v2904_v44  ;;  %vm413_vm6 = vcmp.eq.s32.totalorder %v4711_v47, %v2904_v44  ;;  %v2944_v52 = vsel %vm409_vm2, %v2915_v49, 0.0 }
 0x1fb   : > { %v2921_v37 = vpop.permute.xlu1 %1156  ;;  %v2923_v39 = vpop.permute.xlu0 %1165  ;;  %v2947_v40 = vsel %vm407_vm3, %v2915_v49, 0.0  ;;  %v2958_v41 = vsel %vm411_vm4, %v2915_v49, 0.0  ;;  %v2961_v47 = vsel %vm410_vm5, %v2915_v49, 0.0  ;;  %v2968_v42 = vsel %vm413_vm6, %v2915_v49, 0.0 }
 0x1fc   : > { %4704 = vst [vmem:[#allocation5_spill] sm:$0xff] %v2921_v37  ;;  %4705 = vst [vmem:[#allocation18_spill] sm:$0xff] %v2923_v39  ;;  %v2939_v37 = vsel %vm406_vm1, %v2915_v49, 0.0  ;;  %vm425_vm2 = vcmp.eq.s32.totalorder %v4728_v32, %v2904_v44  ;;  %vm426_vm5 = vcmp.eq.s32.totalorder %v4731_v30, %v2904_v44  ;;  %vm429_vm6 = vcmp.eq.s32.totalorder %v4732_v27, %v2904_v44 }
 0x1fd   : > { %1538 = vperm.xlu1 %2060, %v4710_v43   ;;  %1553 = vperm.xlu0 %2059, %v4651_v59   ;;  %v4713_v59 = vld [vmem:[#allocation26_spill] sm:$0xff] }
 0x1fe   : > { %vm415_vm8 = vcmp.eq.s32.totalorder %v4713_v59, %v2904_v44  ;;  %v4718_v59 = vld [vmem:[#allocation29_spill] sm:$0xff] }
 0x1ff   : > { %v2953_v43 = vpop.permute.xlu1 %1162  ;;  %v2955_v39 = vpop.permute.xlu0 %1171  ;;  %vm416_vm11 = vcmp.eq.s32.totalorder %v4718_v59, %v2904_v44  ;;  %v2982_v38 = vsel %vm415_vm8, %v2915_v49, 0.0  ;;  %v4723_v59 = vld [vmem:[#allocation33_spill] sm:$0xff] }
 0x200   : > { %4714 = vst [vmem:[#allocation19_spill] sm:$0xff] %v2953_v43  ;;  %4715 = vst [vmem:[#allocation20_spill] sm:$0xff] %v2955_v39  ;;  %v4719_v43 = vld [vmem:[#allocation30_spill] sm:$0xff]  ;;  %v4720_v39 = vld [vmem:[#allocation31_spill] sm:$0xff]  ;;  %vm420_vm15 = vcmp.eq.s32.totalorder %v4723_v59, %v2904_v44  ;;  %v3003_v36 = vsel %vm416_vm11, %v2915_v49, 0.0 }
 0x201   : > { %vm419_vm12 = vcmp.eq.s32.totalorder %v4719_v43, %v2904_v44  ;;  %vm418_vm13 = vcmp.eq.s32.totalorder %v4720_v39, %v2904_v44  ;;  %1544 = vperm.xlu1 %2060, %v4721_v35   ;;  %1559 = vperm.xlu0 %2059, %v4578_v58   ;;  %v2989_v43 = vsel %vm414_vm9, %v2915_v49, 0.0  ;;  %v2992_v39 = vsel %vm417_vm10, %v2915_v49, 0.0  ;;  %v4724_v58 = vld [vmem:[#allocation34_spill] sm:$0xff]  ;;  %v4725_v35 = vld [vmem:[#allocation35_spill] sm:$0xff] }
 0x202   : > { %vm423_vm0 = vcmp.eq.s32.totalorder %v4724_v58, %v2904_v44  ;;  %vm422_vm1 = vcmp.eq.s32.totalorder %v4725_v35, %v2904_v44  ;;  %v3006_v59 = vsel %vm419_vm12, %v2915_v49, 0.0  ;;  %v3009_v31 = vsel %vm418_vm13, %v2915_v49, 0.0 }
 0x203   : > { %v2998_v33 = vpop.permute.xlu1 %1168  ;;  %v3000_v34 = vpop.permute.xlu0 %1177  ;;  %v3014_v58 = vsel %vm421_vm14, %v2915_v49, 0.0  ;;  %v3017_v35 = vsel %vm420_vm15, %v2915_v49, 0.0  ;;  %v3026_v29 = vsel %vm423_vm0, %v2915_v49, 0.0  ;;  %v3029_v32 = vsel %vm422_vm1, %v2915_v49, 0.0 }
 0x204   : > { %4726 = vst [vmem:[#allocation21_spill] sm:$0xff] %v2998_v33  ;;  %4727 = vst [vmem:[#allocation22_spill] sm:$0xff] %v3000_v34  ;;  %v4729_v33 = vld [vmem:[#allocation37_spill] sm:$0xff]  ;;  %v4730_v34 = vld [vmem:[#allocation38_spill] sm:$0xff]  ;;  %vm433_vm10 = vcmp.eq.s32.totalorder %v4738_v26, %v2904_v44  ;;  %vm437_vm14 = vcmp.eq.s32.totalorder %v4743_v21, %v2904_v44 }
 0x205   : > { %vm424_vm3 = vcmp.eq.s32.totalorder %v4729_v33, %v2904_v44  ;;  %vm427_vm4 = vcmp.eq.s32.totalorder %v4730_v34, %v2904_v44  ;;  %1550 = vperm.xlu1 %2060, %v4645_v54   ;;  %1565 = vperm.xlu0 %2059, %v4656_v51   ;;  %v3036_v33 = vsel %vm425_vm2, %v2915_v49, 0.0  ;;  %v4733_v34 = vld [vmem:[#allocation41_spill] sm:$0xff]  ;;  %v4734_v51 = vld [vmem:[#allocation42_spill] sm:$0xff]  ;;  %v4735_v54 = vld [vmem:[#allocation43_spill] sm:$0xff]  ;;  %vm441_vm2 = vcmp.eq.s32.totalorder %v4750_v17, %v2904_v44 }
 0x206   : > { %vm428_vm7 = vcmp.eq.s32.totalorder %v4733_v34, %v2904_v44  ;;  %vm431_vm8 = vcmp.eq.s32.totalorder %v4734_v51, %v2904_v44  ;;  %vm430_vm9 = vcmp.eq.s32.totalorder %v4735_v54, %v2904_v44  ;;  %v3049_v30 = vsel %vm424_vm3, %v2915_v49, 0.0  ;;  %v4739_v34 = vld [vmem:[#allocation45_spill] sm:$0xff]  ;;  %v4749_v21 = vld [vmem:[#allocation51_spill] sm:$0xff] }
 0x207   : > { %v3044_v28 = vpop.permute.xlu1 %1174  ;;  %v3046_v25 = vpop.permute.xlu0 %1183  ;;  %v3052_v27 = vsel %vm427_vm4, %v2915_v49, 0.0  ;;  %vm432_vm11 = vcmp.eq.s32.totalorder %v4739_v34, %v2904_v44  ;;  %v3059_v51 = vsel %vm426_vm5, %v2915_v49, 0.0  ;;  %v3062_v54 = vsel %vm429_vm6, %v2915_v49, 0.0 }
 0x208   : > { %4736 = vst [vmem:[#allocation23_spill] sm:$0xff] %v3044_v28  ;;  %4737 = vst [vmem:[#allocation7_spill] sm:$0xff] %v3046_v25  ;;  %v4740_v28 = vld [vmem:[#allocation46_spill] sm:$0xff]  ;;  %v4741_v25 = vld [vmem:[#allocation47_spill] sm:$0xff]  ;;  %v3071_v26 = vsel %vm428_vm7, %v2915_v49, 0.0  ;;  %v3074_v34 = vsel %vm431_vm8, %v2915_v49, 0.0  ;;  %vm438_vm1 = vcmp.eq.s32.totalorder %v4749_v21, %v2904_v44  ;;  %vm442_vm5 = vcmp.eq.s32.totalorder %v4754_v15, %v2904_v44 }
 0x209   : > { %vm435_vm12 = vcmp.eq.s32.totalorder %v4740_v28, %v2904_v44  ;;  %vm434_vm13 = vcmp.eq.s32.totalorder %v4741_v25, %v2904_v44  ;;  %1556 = vperm.xlu1 %2060, %v4742_v23   ;;  %1571 = vperm.xlu0 %2059, %v4585_v57   ;;  %v3077_v24 = vsel %vm430_vm9, %v2915_v49, 0.0  ;;  %v3082_v28 = vsel %vm433_vm10, %v2915_v49, 0.0  ;;  %v4744_v57 = vld [vmem:[#allocation49_spill] sm:$0xff]  ;;  %v4745_v23 = vld [vmem:[#allocation50_spill] sm:$0xff] }
 0x20a   : > { %v3085_v25 = vsel %vm432_vm11, %v2915_v49, 0.0  ;;  %vm436_vm15 = vcmp.eq.s32.totalorder %v4744_v57, %v2904_v44  ;;  %vm439_vm0 = vcmp.eq.s32.totalorder %v4745_v23, %v2904_v44  ;;  %v3094_v19 = vsel %vm435_vm12, %v2915_v49, 0.0  ;;  %v4752_v23 = vld [vmem:[#allocation53_spill] sm:$0xff] }
 0x20b   : > { %v3091_v22 = vpop.permute.xlu1 %1180  ;;  %4747 = vst [vmem:[#allocation25_spill] sm:$0xff] %v3094_v19  ;;  %v3097_v20 = vsel %vm434_vm13, %v2915_v49, 0.0  ;;  %v3106_v57 = vsel %vm437_vm14, %v2915_v49, 0.0  ;;  %vm440_vm3 = vcmp.eq.s32.totalorder %v4752_v23, %v2904_v44  ;;  %v3117_v17 = vsel %vm436_vm15, %v2915_v49, 0.0  ;;  %v4758_v23 = vld [vmem:[#allocation57_spill] sm:$0xff] }
 0x20c   : > { %4746 = vst [vmem:[#allocation24_spill] sm:$0xff] %v3091_v22  ;;  %4748 = vst [vmem:[#allocation26_spill] sm:$0xff] %v3097_v20  ;;  %v3103_v18 = vpop.permute.xlu0 %1388  ;;  %v4753_v22 = vld [vmem:[#allocation54_spill] sm:$0xff]  ;;  %v3120_v21 = vsel %vm439_vm0, %v2915_v49, 0.0  ;;  %vm445_vm6 = vcmp.eq.s32.totalorder %v4757_v16, %v2904_v44  ;;  %vm444_vm7 = vcmp.eq.s32.totalorder %v4758_v23, %v2904_v44  ;;  %v3130_v15 = vsel %vm441_vm2, %v2915_v49, 0.0 }
 0x20d   : > { %4751 = vst [vmem:[#allocation27_spill] sm:$0xff] %v3106_v57  ;;  %vm443_vm4 = vcmp.eq.s32.totalorder %v4753_v22, %v2904_v44  ;;  %1562 = vperm.xlu1 %2060, %v4581_v53   ;;  %1577 = vperm.xlu0 %2059, %v2359_v63   ;;  %4755 = vst [vmem:[#allocation28_spill] sm:$0xff] %v3117_v17  ;;  %v3127_v22 = vsel %vm438_vm1, %v2915_v49, 0.0  ;;  %v4761_v53 = vld [vmem:[#allocation58_spill] sm:$0xff]  ;;  %v4762_v63 = vld [vmem:[#allocation59_spill] sm:$0xff]  ;;  %v3145_v23 = vsel %vm442_vm5, %v2915_v49, 0.0 }
 0x20e   : > { %4756 = vst [vmem:[#allocation29_spill] sm:$0xff] %v3120_v21  ;;  %4759 = vst [vmem:[#allocation30_spill] sm:$0xff] %v3127_v22  ;;  %vm447_vm8 = vcmp.eq.s32.totalorder %v4761_v53, %v2904_v44  ;;  %vm446_vm9 = vcmp.eq.s32.totalorder %v4762_v63, %v2904_v44  ;;  %v3139_v21 = vsel %vm440_vm3, %v2915_v49, 0.0  ;;  %v3142_v16 = vsel %vm443_vm4, %v2915_v49, 0.0  ;;  %v4775_v22 = vld [vmem:[#allocation63_spill] sm:$0xff]  ;;  %v4807_v57 = vld [vmem:[#allocation78_spill] sm:$0xff] }
 0x20f   : > { %4760 = vst [vmem:[#allocation31_spill] sm:$0xff] %v3130_v15  ;;  %v3136_v13 = vpop.permute.xlu1 %1186  ;;  %4764 = vst [vmem:[#allocation32_spill] sm:$0xff] %v3139_v21  ;;  %vm449_vm10 = vcmp.eq.s32.totalorder %v4767_v14, %v2904_v44  ;;  %v3152_v53 = vsel %vm445_vm6, %v2915_v49, 0.0  ;;  %v3155_v63 = vsel %vm444_vm7, %v2915_v49, 0.0  ;;  %v4771_v21 = vld [vmem:[#allocation62_spill] sm:$0xff]  ;;  %v3166_v14 = vsel %vm446_vm9, %v2915_v49, 0.0 }
 0x210   : > { %4763 = vst [vmem:[#allocation9_spill] sm:$0xff] %v3136_v13  ;;  %4765 = vst [vmem:[#allocation33_spill] sm:$0xff] %v3142_v16  ;;  %v3149_v15 = vpop.permute.xlu0 %1397  ;;  %v4770_v13 = vld [vmem:[#allocation61_spill] sm:$0xff]  ;;  %vm451_vm12 = vcmp.eq.s32.totalorder %v4771_v21, %v2904_v44  ;;  %vm450_vm13 = vcmp.eq.s32.totalorder %v4775_v22, %v2904_v44  ;;  %v4779_v21 = vld [vmem:[#allocation66_spill] sm:$0xff] }
 0x211   : > { %4766 = vst [vmem:[#allocation34_spill] sm:$0xff] %v3145_v23  ;;  %4768 = vst [vmem:[#allocation35_spill] sm:$0xff] %v3152_v53  ;;  %vm448_vm11 = vcmp.eq.s32.totalorder %v4770_v13, %v2904_v44  ;;  %v4772_v16 = vld [vmem:[#allocation17_spill] sm:$0xff]  ;;  %v3163_v23 = vsel %vm447_vm8, %v2915_v49, 0.0  ;;  %v4776_v53 = vld [vmem:[#allocation64_spill] sm:$0xff]  ;;  %vm455_vm0 = vcmp.eq.s32.totalorder %v4779_v21, %v2904_v44  ;;  %v3185_v22 = vsel %vm451_vm12, %v2915_v49, 0.0 }
 0x212   : > { %4769 = vst [vmem:[#allocation36_spill] sm:$0xff] %v3155_v63  ;;  %1568 = vperm.xlu1 %2060, %v4772_v16   ;;  %4773 = vst [vmem:[#allocation37_spill] sm:$0xff] %v3163_v23  ;;  %vm453_vm14 = vcmp.eq.s32.totalorder %v4776_v53, %v2904_v44  ;;  %v3173_v63 = vsel %vm449_vm10, %v2915_v49, 0.0  ;;  %v4778_v13 = vld [vmem:[#allocation65_spill] sm:$0xff]  ;;  %v4780_v16 = vld [vmem:[#allocation67_spill] sm:$0xff]  ;;  %v3182_v23 = vsel %vm448_vm11, %v2915_v49, 0.0 }
 0x213   : > { %4774 = vst [vmem:[#allocation38_spill] sm:$0xff] %v3166_v14  ;;  %4777 = vst [vmem:[#allocation39_spill] sm:$0xff] %v3173_v63  ;;  %vm452_vm15 = vcmp.eq.s32.totalorder %v4778_v13, %v2904_v44  ;;  %vm454_vm1 = vcmp.eq.s32.totalorder %v4780_v16, %v2904_v44  ;;  %v4783_v53 = vld [vmem:[#allocation68_spill] sm:$0xff]  ;;  %v4784_v63 = vld [vmem:[#allocation69_spill] sm:$0xff]  ;;  %v3196_v21 = vsel %vm450_vm13, %v2915_v49, 0.0  ;;  %v3199_v16 = vsel %vm453_vm14, %v2915_v49, 0.0 }
 0x214   : > { %4781 = vst [vmem:[#allocation40_spill] sm:$0xff] %v3182_v23  ;;  %4782 = vst [vmem:[#allocation41_spill] sm:$0xff] %v3185_v22  ;;  %vm457_vm2 = vcmp.eq.s32.totalorder %v4783_v53, %v2904_v44  ;;  %vm456_vm3 = vcmp.eq.s32.totalorder %v4784_v63, %v2904_v44  ;;  %v3191_v14 = vpop.permute.xlu1 %1391  ;;  %v3193_v13 = vpop.permute.xlu0 %1403  ;;  %v4787_v23 = vld [vmem:[#allocation70_spill] sm:$0xff]  ;;  %v4788_v22 = vld [vmem:[#allocation71_spill] sm:$0xff]  ;;  %v3207_v63 = vsel %vm452_vm15, %v2915_v49, 0.0  ;;  %v3210_v53 = vsel %vm455_vm0, %v2915_v49, 0.0 }
 0x215   : > { %4785 = vst [vmem:[#allocation42_spill] sm:$0xff] %v3196_v21  ;;  %4786 = vst [vmem:[#allocation43_spill] sm:$0xff] %v3199_v16  ;;  %vm459_vm4 = vcmp.eq.s32.totalorder %v4787_v23, %v2904_v44  ;;  %vm458_vm5 = vcmp.eq.s32.totalorder %v4788_v22, %v2904_v44  ;;  %v3213_v11 = vsel %vm454_vm1, %v2915_v49, 0.0  ;;  %v4792_v21 = vld [vmem:[#allocation72_spill] sm:$0xff]  ;;  %v3218_v16 = vsel %vm457_vm2, %v2915_v49, 0.0  ;;  %v4796_v22 = vld [vmem:[#allocation74_spill] sm:$0xff] }
 0x216   : > { %1574 = vperm.xlu1 %2060, %v2362_v0   ;;  %4789 = vst [vmem:[#allocation44_spill] sm:$0xff] %v3207_v63  ;;  %4790 = vst [vmem:[#allocation45_spill] sm:$0xff] %v3210_v53  ;;  %vm461_vm6 = vcmp.eq.s32.totalorder %v4792_v21, %v2904_v44  ;;  %v3221_v23 = vsel %vm456_vm3, %v2915_v49, 0.0  ;;  %v4795_v0 = vld [vmem:[#allocation73_spill] sm:$0xff]  ;;  %vm463_vm8 = vcmp.eq.s32.totalorder %v4796_v22, %v2904_v44  ;;  %v3228_v53 = vsel %vm459_vm4, %v2915_v49, 0.0  ;;  %v4799_v21 = vld [vmem:[#allocation75_spill] sm:$0xff] }
 0x217   : > { %4791 = vst [vmem:[#allocation46_spill] sm:$0xff] %v3213_v11  ;;  %4793 = vst [vmem:[#allocation47_spill] sm:$0xff] %v3218_v16  ;;  %vm460_vm7 = vcmp.eq.s32.totalorder %v4795_v0, %v2904_v44  ;;  %v3231_v11 = vsel %vm458_vm5, %v2915_v49, 0.0  ;;  %vm462_vm9 = vcmp.eq.s32.totalorder %v4799_v21, %v2904_v44  ;;  %v3238_v16 = vld [vmem:[%s4445_s1 + $0x1] ss:$0 sm:$0xff]  ;;  %v4803_v21 = vld [vmem:[#allocation80_spill] sm:$0xff]  ;;  %vm466_vm14 = vcmp.eq.s32.totalorder %v4807_v57, %v2904_v44 }
 0x218   : > { %4794 = vst [vmem:[#allocation13_spill] sm:$0xff] %v3221_v23  ;;  %4797 = vst [vmem:[#allocation48_spill] sm:$0xff] %v3228_v53  ;;  %v4800_v23 = vld [vmem:[#allocation16_spill] sm:$0xff]  ;;  %v3242_v0 = vpop.permute.xlu1 %1394  ;;  %v3244_v22 = vpop.permute.xlu0 %1409  ;;  %v3247_v53 = vsel %vm461_vm6, %v2915_v49, 0.0  ;;  %vm797_vm12 = vcmp.eq.s32.totalorder %v4803_v21, %v2904_v44  ;;  %v4804_v63 = vld [vmem:[#allocation81_spill] sm:$0xff]  ;;  %v3256_v12 = vsel %vm460_vm7, %v2915_v49, 0.0  ;;  %vm801_vm1 = vcmp.eq.s32.totalorder %v4811_v9, %v2904_v44 }
 0x219   : > { %4798 = vst [vmem:[#allocation49_spill] sm:$0xff] %v3231_v11  ;;  %vm798_vm10 = vcmp.eq.s32.totalorder %v4800_v23, %v2904_v44  ;;  %4801 = vst [vmem:[#allocation50_spill] sm:$0xff] %v3247_v53  ;;  %v4802_v11 = vld [vmem:[#allocation77_spill] sm:$0xff]  ;;  %vm799_vm13 = vcmp.eq.s32.totalorder %v4804_v63, %v2904_v44  ;;  %v3259_v23 = vsel %vm463_vm8, %v2915_v49, 0.0  ;;  %v4808_v53 = vld [vmem:[#allocation82_spill] sm:$0xff]  ;;  %v871_v7 = vsel %vm801_vm1, %v3238_v16, 0.0 }
 0x21a   : > { %vm464_vm11 = vcmp.eq.s32.totalorder %v4802_v11, %v2904_v44  ;;  %4805 = vst [vmem:[#allocation51_spill] sm:$0xff] %v3256_v12  ;;  %4806 = vst [vmem:[#allocation52_spill] sm:$0xff] %v3259_v23  ;;  %vm800_vm15 = vcmp.eq.s32.totalorder %v4808_v53, %v2904_v44  ;;  %v3266_v11 = vsel %vm462_vm9, %v2915_v49, 0.0  ;;  %v4810_v21 = vld [vmem:[#allocation79_spill] sm:$0xff]  ;;  %v868_v63 = vsel %vm798_vm10, %v3238_v16, 0.0  ;;  %v4813_v53 = vld [vmem:[#allocation84_spill] sm:$0xff] }
 0x21b   : > { %4809 = vst [vmem:[#allocation53_spill] sm:$0xff] %v3266_v11  ;;  %vm468_vm0 = vcmp.eq.s32.totalorder %v4810_v21, %v2904_v44  ;;  %v3274_v12 = vsel %vm464_vm11, %v2915_v49, 0.0  ;;  %v867_v23 = vsel %vm797_vm12, %v3238_v16, 0.0  ;;  %v869_v57 = vsel %vm799_vm13, %v3238_v16, 0.0  ;;  %v4815_v9 = vld [vmem:[#allocation85_spill] sm:$0xff] }
 0x21c   : > { %4812 = vst [vmem:[#allocation54_spill] sm:$0xff] %v3274_v12  ;;  %vm802_vm2 = vcmp.eq.s32.totalorder %v4813_v53, %v2904_v44  ;;  %v3280_v10 = vpop.permute.xlu1 %1400  ;;  %v3282_v11 = vpop.permute.xlu0 %1415  ;;  %v3285_v21 = vsel %vm466_vm14, %v2915_v49, 0.0  ;;  %v870_v17 = vsel %vm800_vm15, %v3238_v16, 0.0  ;;  %vm803_vm3 = vcmp.eq.s32.totalorder %v4815_v9, %v2904_v44  ;;  %v4816_v12 = vld [vmem:[#allocation86_spill] sm:$0xff] }
 0x21d   : > { %4814 = vst [vmem:[#allocation55_spill] sm:$0xff] %v3285_v21  ;;  %vm804_vm4 = vcmp.eq.s32.totalorder %v4816_v12, %v2904_v44  ;;  %v3293_v19 = vsel %vm468_vm0, %v2915_v49, 0.0  ;;  %v932_v53 = vadd.f32 %v868_v63, %v2947_v40  ;;  %vm805_vm5 = vcmp.eq.s32.totalorder %v4818_v8, %v2904_v44  ;;  %v4820_v63 = vld [vmem:[#allocation89_spill] sm:$0xff] }
 0x21e   : > { %4817 = vst [vmem:[#allocation56_spill] sm:$0xff] %v3293_v19  ;;  %v3300_v21 = vadd.f32 %v867_v23, %v2939_v37  ;;  %v933_v20 = vadd.f32 %v869_v57, %v2936_v50  ;;  %v872_v9 = vsel %vm802_vm2, %v3238_v16, 0.0  ;;  %vm806_vm6 = vcmp.eq.s32.totalorder %v4819_v5, %v2904_v44  ;;  %v4822_v5 = vld [vmem:[#allocation90_spill] sm:$0xff] }
 0x21f   : > { %v3307_v12 = vadd.f32 %v870_v17, %v2944_v52  ;;  %v873_v49 = vsel %vm803_vm3, %v3238_v16, 0.0  ;;  %v874_v40 = vsel %vm804_vm4, %v3238_v16, 0.0  ;;  %vm807_vm7 = vcmp.eq.s32.totalorder %v4820_v63, %v2904_v44  ;;  %v4823_v52 = vld [vmem:[#allocation91_spill] sm:$0xff]  ;;  %v4824_v63 = vld [vmem:[#allocation92_spill] sm:$0xff] }
 0x220   : > { %v3313_v8 = vpop.permute.xlu1 %1406  ;;  %v3315_v37 = vpop.permute.xlu0 %1421  ;;  %v3318_v50 = vadd.f32 %v871_v7, %v2961_v47  ;;  %v875_v23 = vsel %vm805_vm5, %v3238_v16, 0.0  ;;  %vm808_vm8 = vcmp.eq.s32.totalorder %v4822_v5, %v2904_v44  ;;  %vm809_vm9 = vcmp.eq.s32.totalorder %v4823_v52, %v2904_v44  ;;  %v3334_v7 = vld [vmem:[%s4445_s1 + $0x2] ss:$0 sm:$0xff] }
 0x221   : > { %4821 = vst [vmem:[#allocation57_spill] sm:$0xff] %v3315_v37  ;;  %v3326_v17 = vadd.f32 %v872_v9, %v2958_v41  ;;  %v876_v57 = vsel %vm806_vm6, %v3238_v16, 0.0  ;;  %vm810_vm10 = vcmp.eq.s32.totalorder %v4824_v63, %v2904_v44  ;;  %vm1189_vm11 = vcmp.eq.s32.totalorder %v2750_v56, %v2904_v44  ;;  %v4825_v9 = vld [vmem:[#allocation93_spill] sm:$0xff] }
 0x222   : > { %v3339_v47 = vadd.f32 %v873_v49, %v2979_v45  ;;  %v3342_v5 = vadd.f32 %v874_v40, %v2968_v42  ;;  %v877_v41 = vsel %vm807_vm7, %v3238_v16, 0.0  ;;  %vm811_vm12 = vcmp.eq.s32.totalorder %v4825_v9, %v2904_v44  ;;  %v4827_v40 = vld [vmem:[#allocation94_spill] sm:$0xff] }
 0x223   : > { %v3348_v52 = vadd.f32 %v875_v23, %v2989_v43  ;;  %v878_v63 = vsel %vm808_vm8, %v3238_v16, 0.0  ;;  %v879_v19 = vsel %vm809_vm9, %v3238_v16, 0.0  ;;  %vm1580_vm13 = vcmp.eq.s32.totalorder %v3191_v14, %v2904_v44  ;;  %v4828_v14 = vld [vmem:[#allocation95_spill] sm:$0xff] }
 0x224   : > { %v3354_v56 = vpop.permute.xlu1 %1412  ;;  %v3356_v45 = vpop.permute.xlu0 %1427  ;;  %v3359_v42 = vadd.f32 %v876_v57, %v2982_v38  ;;  %v880_v49 = vsel %vm810_vm10, %v3238_v16, 0.0  ;;  %vm812_vm14 = vcmp.eq.s32.totalorder %v4827_v40, %v2904_v44  ;;  %v1259_v43 = vsel %vm1189_vm11, %v3334_v7, 0.0  ;;  %v3376_v38 = vld [vmem:[%s4445_s1 + $0x3] ss:$0 sm:$0xff] }
 0x225   : > { %4826 = vst [vmem:[#allocation58_spill] sm:$0xff] %v3356_v45  ;;  %v3366_v23 = vadd.f32 %v877_v41, %v3003_v36  ;;  %v881_v9 = vsel %vm811_vm12, %v3238_v16, 0.0  ;;  %vm813_vm15 = vcmp.eq.s32.totalorder %v4828_v14, %v2904_v44  ;;  %vm1190_vm0 = vcmp.eq.s32.totalorder %v2754_v61, %v2904_v44  ;;  %v4829_v36 = vld [vmem:[#allocation96_spill] sm:$0xff] }
 0x226   : > { %v3379_v57 = vadd.f32 %v878_v63, %v2992_v39  ;;  %v3382_v40 = vadd.f32 %v879_v19, %v3009_v31  ;;  %vm814_vm1 = vcmp.eq.s32.totalorder %v4829_v36, %v2904_v44  ;;  %v1650_v41 = vsel %vm1580_vm13, %v3376_v38, 0.0  ;;  %v4832_v63 = vld [vmem:[#allocation97_spill] sm:$0xff] }
 0x227   : > { %v3388_v14 = vadd.f32 %v880_v49, %v3006_v59  ;;  %v882_v61 = vsel %vm812_vm14, %v3238_v16, 0.0  ;;  %v1323_v45 = vadd.f32 %v1259_v43, %v932_v53  ;;  %vm1581_vm2 = vcmp.eq.s32.totalorder %v3242_v0, %v2904_v44  ;;  %v4833_v53 = vld [vmem:[#allocation98_spill] sm:$0xff] }
 0x228   : > { %v3393_v37 = vpop.permute.xlu1 %1418  ;;  %v3395_v39 = vpop.permute.xlu0 %1433  ;;  %v3398_v19 = vadd.f32 %v881_v9, %v3017_v35  ;;  %v883_v31 = vsel %vm813_vm15, %v3238_v16, 0.0  ;;  %vm815_vm3 = vcmp.eq.s32.totalorder %v4832_v63, %v2904_v44  ;;  %v1260_v59 = vsel %vm1190_vm0, %v3334_v7, 0.0  ;;  %v4834_v0 = vld [vmem:[#allocation138_spill] sm:$0xff]  ;;  %v4835_v35 = vld [vmem:[#allocation99_spill] sm:$0xff]  ;;  %v4836_v9 = vld [vmem:[#allocation100_spill] sm:$0xff] }
 0x229   : > { %4830 = vst [vmem:[#allocation59_spill] sm:$0xff] %v3388_v14  ;;  %4831 = vst [vmem:[#allocation60_spill] sm:$0xff] %v3395_v39  ;;  %v884_v49 = vsel %vm814_vm1, %v3238_v16, 0.0  ;;  %vm816_vm4 = vcmp.eq.s32.totalorder %v4833_v53, %v2904_v44  ;;  %vm1192_vm5 = vcmp.eq.s32.totalorder %v4834_v0, %v2904_v44  ;;  %v1714_v43 = vadd.f32 %v1650_v41, %v1323_v45 }
 0x22a   : > { %v3410_v36 = vadd.f32 %v882_v61, %v3014_v58  ;;  %vm817_vm6 = vcmp.eq.s32.totalorder %v4835_v35, %v2904_v44  ;;  %vm818_vm7 = vcmp.eq.s32.totalorder %v4836_v9, %v2904_v44  ;;  %v1651_v63 = vsel %vm1581_vm2, %v3376_v38, 0.0  ;;  %v4837_v35 = vld [vmem:[#allocation101_spill] sm:$0xff] }
 0x22b   : > { %v3418_v39 = vadd.f32 %v883_v31, %v3029_v32  ;;  %v885_v53 = vsel %vm815_vm3, %v3238_v16, 0.0  ;;  %v1324_v14 = vadd.f32 %v1260_v59, %v933_v20  ;;  %vm1583_vm8 = vcmp.eq.s32.totalorder %v3280_v10, %v2904_v44  ;;  %v4838_v59 = vld [vmem:[#allocation102_spill] sm:$0xff] }
 0x22c   : > { %v3423_v45 = vpop.permute.xlu1 %1424  ;;  %1779 = vadd.xlane.f32.xlu0 %v1714_v43  ;;  %v3425_v58 = vpop.permute.xlu0 %1439  ;;  %v3428_v41 = vadd.f32 %v884_v49, %v3026_v29  ;;  %v886_v61 = vsel %vm816_vm4, %v3238_v16, 0.0  ;;  %vm819_vm9 = vcmp.eq.s32.totalorder %v4837_v35, %v2904_v44  ;;  %v1262_v20 = vsel %vm1192_vm5, %v3334_v7, 0.0  ;;  %v4839_v49 = vld [vmem:[#allocation14_spill] sm:$0xff] }
 0x22d   : > { %v887_v10 = vsel %vm817_vm6, %v3238_v16, 0.0  ;;  %v888_v32 = vsel %vm818_vm7, %v3238_v16, 0.0  ;;  %vm1194_vm10 = vcmp.eq.s32.totalorder %v2762_v46, %v2904_v44  ;;  %v1715_v31 = vadd.f32 %v1651_v63, %v1324_v14 }
 0x22e   : > { %v3442_v29 = vadd.f32 %v885_v53, %v3049_v30  ;;  %vm820_vm11 = vcmp.eq.s32.totalorder %v4838_v59, %v2904_v44  ;;  %vm1188_vm12 = vcmp.eq.s32.totalorder %v4839_v49, %v2904_v44  ;;  %v1653_v0 = vsel %vm1583_vm8, %v3376_v38, 0.0 }
 0x22f   : > { %v3450_v43 = vadd.f32 %v886_v61, %v3036_v33  ;;  %v889_v9 = vsel %vm819_vm9, %v3238_v16, 0.0  ;;  %v1326_v35 = vadd.f32 %v1262_v20, %v3318_v50  ;;  %vm1585_vm13 = vcmp.eq.s32.totalorder %v3313_v8, %v2904_v44 }
 0x230   : > { %v3456_v46 = vpop.permute.xlu1 %1430  ;;  %1781 = vadd.xlane.f32.xlu0 %v1715_v31  ;;  %v3458_v30 = vpop.permute.xlu0 %1445  ;;  %v3461_v14 = vadd.f32 %v887_v10, %v3059_v51  ;;  %v3464_v63 = vadd.f32 %v888_v32, %v3052_v27  ;;  %v1264_v33 = vsel %vm1194_vm10, %v3334_v7, 0.0  ;;  %vm1579_vm14 = vcmp.eq.s32.totalorder %v3103_v18, %v2904_v44  ;;  %v4840_v51 = vld [vmem:[#allocation103_spill] sm:$0xff]  ;;  %v4841_v18 = vld [vmem:[#allocation104_spill] sm:$0xff] }
 0x231   : > { %v890_v50 = vsel %vm820_vm11, %v3238_v16, 0.0  ;;  %v1258_v8 = vsel %vm1188_vm12, %v3334_v7, 0.0  ;;  %vm1196_vm15 = vcmp.eq.s32.totalorder %v2768_v2, %v2904_v44  ;;  %v1717_v53 = vadd.f32 %v1653_v0, %v1326_v35  ;;  %v4842_v0 = vld [vmem:[#allocation105_spill] sm:$0xff] }
 0x232   : > { %v3474_v61 = vadd.f32 %v889_v9, %v3071_v26  ;;  %vm821_vm0 = vcmp.eq.s32.totalorder %v4840_v51, %v2904_v44  ;;  %vm1191_vm1 = vcmp.eq.s32.totalorder %v2760_v55, %v2904_v44  ;;  %v1655_v27 = vsel %vm1585_vm13, %v3376_v38, 0.0 }
 0x233   : > { %vm822_vm2 = vcmp.eq.s32.totalorder %v4841_v18, %v2904_v44  ;;  %v1328_v20 = vadd.f32 %v1264_v33, %v3339_v47  ;;  %v1649_v10 = vsel %vm1579_vm14, %v3376_v38, 0.0  ;;  %vm1587_vm3 = vcmp.eq.s32.totalorder %v3354_v56, %v2904_v44 }
 0x234   : > { %v3487_v2 = vpop.permute.xlu1 %1436  ;;  %1785 = vadd.xlane.f32.xlu0 %v1717_v53  ;;  %v3489_v26 = vpop.permute.xlu0 %1451  ;;  %v3492_v32 = vadd.f32 %v890_v50, %v3062_v54  ;;  %v1322_v55 = vadd.f32 %v1258_v8, %v3300_v21  ;;  %v1266_v31 = vsel %vm1196_vm15, %v3334_v7, 0.0  ;;  %vm1582_vm4 = vcmp.eq.s32.totalorder %v3149_v15, %v2904_v44 }
 0x235   : > { %v891_v47 = vsel %vm821_vm0, %v3238_v16, 0.0  ;;  %v1261_v59 = vsel %vm1191_vm1, %v3334_v7, 0.0  ;;  %vm1198_vm5 = vcmp.eq.s32.totalorder %v2774_v3, %v2904_v44  ;;  %v1719_v56 = vadd.f32 %v1655_v27, %v1328_v20 }
 0x236   : > { %v892_v49 = vsel %vm822_vm2, %v3238_v16, 0.0  ;;  %vm1193_vm6 = vcmp.eq.s32.totalorder %v2766_v60, %v2904_v44  ;;  %v1713_v54 = vadd.f32 %v1649_v10, %v1322_v55  ;;  %v1657_v21 = vsel %vm1587_vm3, %v3376_v38, 0.0 }
 0x237   : > { %vm823_vm7 = vcmp.eq.s32.totalorder %v4842_v0, %v2904_v44  ;;  %v1330_v15 = vadd.f32 %v1266_v31, %v3348_v52  ;;  %v1652_v9 = vsel %vm1582_vm4, %v3376_v38, 0.0  ;;  %vm1589_vm8 = vcmp.eq.s32.totalorder %v3393_v37, %v2904_v44  ;;  %v4843_v52 = vld [vmem:[#allocation106_spill] sm:$0xff] }
 0x238   : > { %v3512_v3 = vpop.permute.xlu1 %1442  ;;  %1789 = vadd.xlane.f32.xlu0 %v1719_v56  ;;  %v3514_v35 = vpop.permute.xlu0 %1457  ;;  %v3517_v33 = vadd.f32 %v891_v47, %v3077_v24  ;;  %v1325_v50 = vadd.f32 %v1261_v59, %v3307_v12  ;;  %v1268_v8 = vsel %vm1198_vm5, %v3334_v7, 0.0  ;;  %vm1584_vm9 = vcmp.eq.s32.totalorder %v3193_v13, %v2904_v44  ;;  %v4845_v47 = vld [vmem:[#allocation108_spill] sm:$0xff] }
 0x239   : > { %vm824_vm10 = vcmp.eq.s32.totalorder %v4843_v52, %v2904_v44  ;;  %v1263_v53 = vsel %vm1193_vm6, %v3334_v7, 0.0  ;;  %vm1200_vm11 = vcmp.eq.s32.totalorder %v2780_v4, %v2904_v44  ;;  %v1721_v24 = vadd.f32 %v1657_v21, %v1330_v15  ;;  %v4848_v52 = vld [vmem:[#allocation26_spill] sm:$0xff] }
 0x23a   : > { %1777 = vadd.xlane.f32.xlu1 %v1713_v54  ;;  %v893_v12 = vsel %vm823_vm7, %v3238_v16, 0.0  ;;  %vm1195_vm12 = vcmp.eq.s32.totalorder %v2772_v62, %v2904_v44  ;;  %v1716_v13 = vadd.f32 %v1652_v9, %v1325_v50  ;;  %v1659_v51 = vsel %vm1589_vm8, %v3376_v38, 0.0 }
 0x23b   : > { %v3542_v60 = vadd.f32 %v892_v49, %v3074_v34  ;;  %v1332_v4 = vadd.f32 %v1268_v8, %v3366_v23  ;;  %v1654_v27 = vsel %vm1584_vm9, %v3376_v38, 0.0  ;;  %vm1591_vm13 = vcmp.eq.s32.totalorder %v3423_v45, %v2904_v44 }
 0x23c   : > { %v3548_v18 = vpop.permute.xlu1 %1448  ;;  %1793 = vadd.xlane.f32.xlu0 %v1721_v24  ;;  %v3550_v20 = vpop.permute.xlu0 %1463  ;;  %v894_v10 = vsel %vm824_vm10, %v3238_v16, 0.0  ;;  %v1327_v37 = vadd.f32 %v1263_v53, %v3326_v17  ;;  %v1270_v55 = vsel %vm1200_vm11, %v3334_v7, 0.0  ;;  %vm1586_vm14 = vcmp.eq.s32.totalorder %v3244_v22, %v2904_v44  ;;  %v4844_v17 = vld [vmem:[#allocation107_spill] sm:$0xff] }
 0x23d   : > { %v3558_v34 = vadd.f32 %v893_v12, %v3085_v25  ;;  %v1265_v23 = vsel %vm1195_vm12, %v3334_v7, 0.0  ;;  %vm1202_vm15 = vcmp.eq.s32.totalorder %v2786_v1, %v2904_v44  ;;  %v1723_v31 = vadd.f32 %v1659_v51, %v1332_v4  ;;  %v4849_v12 = vld [vmem:[#allocation57_spill] sm:$0xff]  ;;  %v4851_v51 = vld [vmem:[#allocation142_spill] sm:$0xff] }
 0x23e   : > { %1783 = vadd.xlane.f32.xlu1 %v1716_v13  ;;  %vm825_vm0 = vcmp.eq.s32.totalorder %v4844_v17, %v2904_v44  ;;  %vm1197_vm1 = vcmp.eq.s32.totalorder %v2778_v48, %v2904_v44  ;;  %v1718_v22 = vadd.f32 %v1654_v27, %v1327_v37  ;;  %v1661_v25 = vsel %vm1591_vm13, %v3376_v38, 0.0  ;;  %v4847_v48 = vld [vmem:[#allocation109_spill] sm:$0xff]  ;;  %v4852_v27 = vld [vmem:[#allocation140_spill] sm:$0xff] }
 0x23f   : > { %vm826_vm2 = vcmp.eq.s32.totalorder %v4845_v47, %v2904_v44  ;;  %v1334_v62 = vadd.f32 %v1270_v55, %v3382_v40  ;;  %v1656_v1 = vsel %vm1586_vm14, %v3376_v38, 0.0  ;;  %vm1593_vm3 = vcmp.eq.s32.totalorder %v3456_v46, %v2904_v44  ;;  %v4853_v55 = vld [vmem:[#allocation25_spill] sm:$0xff] }
 0x240   : > { %v3580_v59 = vpop.permute.xlu1 %1454  ;;  %1797 = vadd.xlane.f32.xlu0 %v1723_v31  ;;  %v3582_v56 = vpop.permute.xlu0 %1469  ;;  %v3585_v49 = vadd.f32 %v894_v10, %v3082_v28  ;;  %v1329_v45 = vadd.f32 %v1265_v23, %v3342_v5  ;;  %v1272_v54 = vsel %vm1202_vm15, %v3334_v7, 0.0  ;;  %vm1588_vm4 = vcmp.eq.s32.totalorder %v3282_v11, %v2904_v44  ;;  %v4846_v5 = vld [vmem:[#allocation139_spill] sm:$0xff] }
 0x241   : > { %v895_v40 = vsel %vm825_vm0, %v3238_v16, 0.0  ;;  %v1267_v21 = vsel %vm1197_vm1, %v3334_v7, 0.0  ;;  %vm1204_vm5 = vcmp.eq.s32.totalorder %v2792_v6, %v2904_v44  ;;  %v1725_v28 = vadd.f32 %v1661_v25, %v1334_v62  ;;  %v4854_v62 = vld [vmem:[#allocation58_spill] sm:$0xff] }
 0x242   : > { %1787 = vadd.xlane.f32.xlu1 %v1718_v22  ;;  %v896_v11 = vsel %vm826_vm2, %v3238_v16, 0.0  ;;  %vm1199_vm6 = vcmp.eq.s32.totalorder %v4846_v5, %v2904_v44  ;;  %v1720_v0 = vadd.f32 %v1656_v1, %v1329_v45  ;;  %v1663_v15 = vsel %vm1593_vm3, %v3376_v38, 0.0  ;;  %v4855_v1 = vld [vmem:[#allocation28_spill] sm:$0xff] }
 0x243   : > { %vm827_vm7 = vcmp.eq.s32.totalorder %v4847_v48, %v2904_v44  ;;  %v1336_v6 = vadd.f32 %v1272_v54, %v3398_v19  ;;  %v1658_v9 = vsel %vm1588_vm4, %v3376_v38, 0.0  ;;  %vm1595_vm8 = vcmp.eq.s32.totalorder %v3487_v2, %v2904_v44  ;;  %v4850_v19 = vld [vmem:[#allocation110_spill] sm:$0xff]  ;;  %v4856_v54 = vld [vmem:[#allocation144_spill] sm:$0xff] }
 0x244   : > { %v3617_v50 = vpop.permute.xlu1 %1460  ;;  %1801 = vadd.xlane.f32.xlu0 %v1725_v28  ;;  %v3619_v8 = vpop.permute.xlu0 %1475  ;;  %v3622_v53 = vadd.f32 %v895_v40, %v4848_v52  ;;  %v1331_v46 = vadd.f32 %v1267_v21, %v3359_v42  ;;  %v1274_v24 = vsel %vm1204_vm5, %v3334_v7, 0.0  ;;  %vm1590_vm9 = vcmp.eq.s32.totalorder %v4849_v12, %v2904_v44  ;;  %v4857_v28 = vld [vmem:[#allocation111_spill] sm:$0xff]  ;;  %v4862_v12 = vld [vmem:[#allocation60_spill] sm:$0xff] }
 0x245   : > { %vm828_vm10 = vcmp.eq.s32.totalorder %v4850_v19, %v2904_v44  ;;  %v1269_v13 = vsel %vm1199_vm6, %v3334_v7, 0.0  ;;  %vm1206_vm11 = vcmp.eq.s32.totalorder %v4851_v51, %v2904_v44  ;;  %v1727_v4 = vadd.f32 %v1663_v15, %v1336_v6 }
 0x246   : > { %1791 = vadd.xlane.f32.xlu1 %v1720_v0  ;;  %v897_v42 = vsel %vm827_vm7, %v3238_v16, 0.0  ;;  %vm1201_vm12 = vcmp.eq.s32.totalorder %v4852_v27, %v2904_v44  ;;  %v1722_v10 = vadd.f32 %v1658_v9, %v1331_v46  ;;  %v1665_v37 = vsel %vm1595_vm8, %v3376_v38, 0.0  ;;  %v4859_v0 = vld [vmem:[#allocation112_spill] sm:$0xff]  ;;  %v4860_v9 = vld [vmem:[#allocation27_spill] sm:$0xff] }
 0x247   : > { %v3647_v23 = vadd.f32 %v896_v11, %v4853_v55  ;;  %v1338_v31 = vadd.f32 %v1274_v24, %v3418_v39  ;;  %v1660_v17 = vsel %vm1590_vm9, %v3376_v38, 0.0  ;;  %vm1597_vm13 = vcmp.eq.s32.totalorder %v3512_v3, %v2904_v44  ;;  %v4861_v46 = vld [vmem:[#allocation59_spill] sm:$0xff] }
 0x248   : > { %v3653_v22 = vpop.permute.xlu1 %1466  ;;  %1805 = vadd.xlane.f32.xlu0 %v1727_v4  ;;  %v898_v25 = vsel %vm828_vm10, %v3238_v16, 0.0  ;;  %v1333_v47 = vadd.f32 %v1269_v13, %v3379_v57  ;;  %v1276_v2 = vsel %vm1206_vm11, %v3334_v7, 0.0  ;;  %vm1592_vm14 = vcmp.eq.s32.totalorder %v4854_v62, %v2904_v44  ;;  %v3666_v21 = vpop.permute.xlu0 %1481  ;;  %v4858_v57 = vld [vmem:[#allocation141_spill] sm:$0xff]  ;;  %v4864_v4 = vld [vmem:[#allocation143_spill] sm:$0xff] }
 0x249   : > { %v3661_v39 = vadd.f32 %v897_v42, %v4855_v1  ;;  %v1271_v45 = vsel %vm1201_vm12, %v3334_v7, 0.0  ;;  %vm1208_vm15 = vcmp.eq.s32.totalorder %v4856_v54, %v2904_v44  ;;  %v1729_v40 = vadd.f32 %v1665_v37, %v1338_v31 }
 0x24a   : > { %1795 = vadd.xlane.f32.xlu1 %v1722_v10  ;;  %vm829_vm0 = vcmp.eq.s32.totalorder %v4857_v28, %v2904_v44  ;;  %vm1203_vm1 = vcmp.eq.s32.totalorder %v4858_v57, %v2904_v44  ;;  %v1724_v11 = vadd.f32 %v1660_v17, %v1333_v47  ;;  %v1667_v5 = vsel %vm1597_vm13, %v3376_v38, 0.0  ;;  %v4865_v10 = vld [vmem:[#allocation113_spill] sm:$0xff] }
 0x24b   : > { %vm830_vm2 = vcmp.eq.s32.totalorder %v4859_v0, %v2904_v44  ;;  %v1340_v15 = vadd.f32 %v1276_v2, %v3442_v29  ;;  %v1662_v48 = vsel %vm1592_vm14, %v3376_v38, 0.0  ;;  %vm1599_vm3 = vcmp.eq.s32.totalorder %v3548_v18, %v2904_v44  ;;  %v4863_v18 = vld [vmem:[#allocation146_spill] sm:$0xff]  ;;  %v4870_v57 = vld [vmem:[#allocation29_spill] sm:$0xff] }
 0x24c   : > { %v3682_v6 = vpop.permute.xlu1 %1472  ;;  %1809 = vadd.xlane.f32.xlu0 %v1729_v40  ;;  %v3685_v52 = vadd.f32 %v898_v25, %v4860_v9  ;;  %v1335_v24 = vadd.f32 %v1271_v45, %v4861_v46  ;;  %v1278_v3 = vsel %vm1208_vm15, %v3334_v7, 0.0  ;;  %vm1594_vm4 = vcmp.eq.s32.totalorder %v4862_v12, %v2904_v44  ;;  %v3705_v31 = vpop.permute.xlu0 %1487  ;;  %v4866_v25 = vld [vmem:[#allocation30_spill] sm:$0xff]  ;;  %v4868_v45 = vld [vmem:[#allocation148_spill] sm:$0xff] }
 0x24d   : > { %v899_v29 = vsel %vm829_vm0, %v3238_v16, 0.0  ;;  %v1273_v19 = vsel %vm1203_vm1, %v3334_v7, 0.0  ;;  %vm1210_vm5 = vcmp.eq.s32.totalorder %v4863_v18, %v2904_v44  ;;  %v1731_v13 = vadd.f32 %v1667_v5, %v1340_v15  ;;  %v4871_v46 = vld [vmem:[#allocation32_spill] sm:$0xff] }
 0x24e   : > { %1799 = vadd.xlane.f32.xlu1 %v1724_v11  ;;  %v900_v51 = vsel %vm830_vm2, %v3238_v16, 0.0  ;;  %vm1205_vm6 = vcmp.eq.s32.totalorder %v4864_v4, %v2904_v44  ;;  %v1726_v42 = vadd.f32 %v1662_v48, %v1335_v24  ;;  %v1669_v27 = vsel %vm1599_vm3, %v3376_v38, 0.0 }
 0x24f   : > { %vm831_vm7 = vcmp.eq.s32.totalorder %v4865_v10, %v2904_v44  ;;  %v1342_v37 = vadd.f32 %v1278_v3, %v3461_v14  ;;  %v1664_v55 = vsel %vm1594_vm4, %v3376_v38, 0.0  ;;  %vm1601_vm8 = vcmp.eq.s32.totalorder %v3580_v59, %v2904_v44  ;;  %v4867_v14 = vld [vmem:[#allocation114_spill] sm:$0xff] }
 0x250   : > { %v3707_v17 = vpop.permute.xlu1 %1478  ;;  %1813 = vadd.xlane.f32.xlu0 %v1731_v13  ;;  %v3710_v47 = vadd.f32 %v899_v29, %v4866_v25  ;;  %v1337_v2 = vadd.f32 %v1273_v19, %v3410_v36  ;;  %v1280_v62 = vsel %vm1210_vm5, %v3334_v7, 0.0  ;;  %vm1596_vm9 = vcmp.eq.s32.totalorder %v3425_v58, %v2904_v44  ;;  %v4869_v58 = vld [vmem:[#allocation145_spill] sm:$0xff]  ;;  %v4872_v3 = vld [vmem:[#allocation150_spill] sm:$0xff]  ;;  %v3754_v29 = vpop.permute.xlu0 %1493  ;;  %v4873_v19 = vld [vmem:[#allocation115_spill] sm:$0xff] }
 0x251   : > { %vm832_vm10 = vcmp.eq.s32.totalorder %v4867_v14, %v2904_v44  ;;  %v1275_v1 = vsel %vm1205_vm6, %v3334_v7, 0.0  ;;  %vm1212_vm11 = vcmp.eq.s32.totalorder %v4868_v45, %v2904_v44  ;;  %v1733_v54 = vadd.f32 %v1669_v27, %v1342_v37  ;;  %v4875_v13 = vld [vmem:[#allocation116_spill] sm:$0xff]  ;;  %v4876_v27 = vld [vmem:[#allocation31_spill] sm:$0xff] }
 0x252   : > { %1803 = vadd.xlane.f32.xlu1 %v1726_v42  ;;  %v901_v36 = vsel %vm831_vm7, %v3238_v16, 0.0  ;;  %vm1207_vm12 = vcmp.eq.s32.totalorder %v4869_v58, %v2904_v44  ;;  %v1728_v40 = vadd.f32 %v1664_v55, %v1337_v2  ;;  %v1671_v28 = vsel %vm1601_vm8, %v3376_v38, 0.0  ;;  %v4880_v58 = vld [vmem:[#allocation34_spill] sm:$0xff] }
 0x253   : > { %v3735_v11 = vadd.f32 %v900_v51, %v4870_v57  ;;  %v1344_v5 = vadd.f32 %v1280_v62, %v3474_v61  ;;  %v1666_v0 = vsel %vm1596_vm9, %v3376_v38, 0.0  ;;  %vm1603_vm13 = vcmp.eq.s32.totalorder %v3617_v50, %v2904_v44  ;;  %v4878_v62 = vld [vmem:[#allocation149_spill] sm:$0xff] }
 0x254   : > { %v3741_v15 = vpop.permute.xlu1 %1484  ;;  %1817 = vadd.xlane.f32.xlu0 %v1733_v54  ;;  %v902_v48 = vsel %vm832_vm10, %v3238_v16, 0.0  ;;  %v1339_v9 = vadd.f32 %v1275_v1, %v3428_v41  ;;  %v1282_v59 = vsel %vm1212_vm11, %v3334_v7, 0.0  ;;  %vm1598_vm14 = vcmp.eq.s32.totalorder %v3458_v30, %v2904_v44  ;;  %v4874_v41 = vld [vmem:[#allocation147_spill] sm:$0xff]  ;;  %v4879_v1 = vld [vmem:[#allocation117_spill] sm:$0xff]  ;;  %v3793_v54 = vpop.permute.xlu0 %1499 }
 0x255   : > { %v3749_v61 = vadd.f32 %v901_v36, %v4871_v46  ;;  %v1277_v24 = vsel %vm1207_vm12, %v3334_v7, 0.0  ;;  %vm1214_vm15 = vcmp.eq.s32.totalorder %v4872_v3, %v2904_v44  ;;  %v1735_v12 = vadd.f32 %v1671_v28, %v1344_v5  ;;  %v4884_v46 = vld [vmem:[#allocation33_spill] sm:$0xff] }
 0x256   : > { %1807 = vadd.xlane.f32.xlu1 %v1728_v40  ;;  %vm833_vm0 = vcmp.eq.s32.totalorder %v4873_v19, %v2904_v44  ;;  %vm1209_vm1 = vcmp.eq.s32.totalorder %v4874_v41, %v2904_v44  ;;  %v1730_v18 = vadd.f32 %v1666_v0, %v1339_v9  ;;  %v1673_v30 = vsel %vm1603_vm13, %v3376_v38, 0.0  ;;  %v4882_v0 = vld [vmem:[#allocation154_spill] sm:$0xff] }
 0x257   : > { %vm834_vm2 = vcmp.eq.s32.totalorder %v4875_v13, %v2904_v44  ;;  %v1346_v51 = vadd.f32 %v1282_v59, %v3517_v33  ;;  %v1668_v4 = vsel %vm1598_vm14, %v3376_v38, 0.0  ;;  %vm1605_vm3 = vcmp.eq.s32.totalorder %v3653_v22, %v2904_v44  ;;  %v4877_v22 = vld [vmem:[#allocation152_spill] sm:$0xff] }
 0x258   : > { %v3770_v42 = vpop.permute.xlu1 %1490  ;;  %1821 = vadd.xlane.f32.xlu0 %v1735_v12  ;;  %v3773_v10 = vadd.f32 %v902_v48, %v4876_v27  ;;  %v1341_v37 = vadd.f32 %v1277_v24, %v3450_v43  ;;  %v1284_v50 = vsel %vm1214_vm15, %v3334_v7, 0.0  ;;  %vm1600_vm4 = vcmp.eq.s32.totalorder %v3489_v26, %v2904_v44  ;;  %v3842_v27 = vpop.permute.xlu0 %1505 }
 0x259   : > { %v903_v33 = vsel %vm833_vm0, %v3238_v16, 0.0  ;;  %v1279_v55 = vsel %vm1209_vm1, %v3334_v7, 0.0  ;;  %vm1216_vm5 = vcmp.eq.s32.totalorder %v4877_v22, %v2904_v44  ;;  %v1737_v25 = vadd.f32 %v1673_v30, %v1346_v51  ;;  %v4885_v30 = vld [vmem:[#allocation36_spill] sm:$0xff] }
 0x25a   : > { %1811 = vadd.xlane.f32.xlu1 %v1730_v18  ;;  %v904_v2 = vsel %vm834_vm2, %v3238_v16, 0.0  ;;  %vm1211_vm6 = vcmp.eq.s32.totalorder %v4878_v62, %v2904_v44  ;;  %v1732_v43 = vadd.f32 %v1668_v4, %v1341_v37  ;;  %v1675_v14 = vsel %vm1605_vm3, %v3376_v38, 0.0  ;;  %v4886_v51 = vld [vmem:[#allocation156_spill] sm:$0xff]  ;;  %v4887_v37 = vld [vmem:[#allocation119_spill] sm:$0xff] }
 0x25b   : > { %vm835_vm7 = vcmp.eq.s32.totalorder %v4879_v1, %v2904_v44  ;;  %v1348_v26 = vadd.f32 %v1284_v50, %v3558_v34  ;;  %v1670_v45 = vsel %vm1600_vm4, %v3376_v38, 0.0  ;;  %vm1607_vm8 = vcmp.eq.s32.totalorder %v3682_v6, %v2904_v44  ;;  %v4881_v34 = vld [vmem:[#allocation118_spill] sm:$0xff] }
 0x25c   : > { %v3795_v36 = vpop.permute.xlu1 %1496  ;;  %1825 = vadd.xlane.f32.xlu0 %v1737_v25  ;;  %v3798_v40 = vadd.f32 %v903_v33, %v4880_v58  ;;  %v1343_v28 = vadd.f32 %v1279_v55, %v3464_v63  ;;  %v1286_v57 = vsel %vm1216_vm5, %v3334_v7, 0.0  ;;  %vm1602_vm9 = vcmp.eq.s32.totalorder %v3514_v35, %v2904_v44  ;;  %v4883_v35 = vld [vmem:[#allocation151_spill] sm:$0xff]  ;;  %v4889_v33 = vld [vmem:[#allocation120_spill] sm:$0xff] }
 0x25d   : > { %vm836_vm10 = vcmp.eq.s32.totalorder %v4881_v34, %v2904_v44  ;;  %v1281_v5 = vsel %vm1211_vm6, %v3334_v7, 0.0  ;;  %vm1218_vm11 = vcmp.eq.s32.totalorder %v4882_v0, %v2904_v44  ;;  %v1739_v48 = vadd.f32 %v1675_v14, %v1348_v26  ;;  %v3881_v34 = vpop.permute.xlu0 %1511  ;;  %v4894_v0 = vld [vmem:[#allocation38_spill] sm:$0xff] }
 0x25e   : > { %1815 = vadd.xlane.f32.xlu1 %v1732_v43  ;;  %v905_v63 = vsel %vm835_vm7, %v3238_v16, 0.0  ;;  %vm1213_vm12 = vcmp.eq.s32.totalorder %v4883_v35, %v2904_v44  ;;  %v1734_v9 = vadd.f32 %v1670_v45, %v1343_v28  ;;  %v1677_v59 = vsel %vm1607_vm8, %v3376_v38, 0.0  ;;  %v4892_v45 = vld [vmem:[#allocation155_spill] sm:$0xff]  ;;  %v4893_v28 = vld [vmem:[#allocation121_spill] sm:$0xff] }
 0x25f   : > { %v3823_v24 = vadd.f32 %v904_v2, %v4884_v46  ;;  %v1350_v3 = vadd.f32 %v1286_v57, %v3622_v53  ;;  %v1672_v12 = vsel %vm1602_vm9, %v3376_v38, 0.0  ;;  %vm1609_vm13 = vcmp.eq.s32.totalorder %v3707_v17, %v2904_v44  ;;  %v4890_v2 = vld [vmem:[#allocation35_spill] sm:$0xff] }
 0x260   : > { %v3829_v19 = vpop.permute.xlu1 %1502  ;;  %1829 = vadd.xlane.f32.xlu0 %v1739_v48  ;;  %v906_v41 = vsel %vm836_vm10, %v3238_v16, 0.0  ;;  %v1345_v18 = vadd.f32 %v1281_v5, %v3492_v32  ;;  %v1288_v6 = vsel %vm1218_vm11, %v3334_v7, 0.0  ;;  %vm1604_vm14 = vcmp.eq.s32.totalorder %v3550_v20, %v2904_v44  ;;  %v4888_v32 = vld [vmem:[#allocation153_spill] sm:$0xff] }
 0x261   : > { %v3837_v53 = vadd.f32 %v905_v63, %v4885_v30  ;;  %v1283_v13 = vsel %vm1213_vm12, %v3334_v7, 0.0  ;;  %vm1220_vm15 = vcmp.eq.s32.totalorder %v4886_v51, %v2904_v44  ;;  %v1741_v4 = vadd.f32 %v1677_v59, %v1350_v3  ;;  %v4896_v59 = vld [vmem:[#allocation160_spill] sm:$0xff] }
 0x262   : > { %1819 = vadd.xlane.f32.xlu1 %v1734_v9  ;;  %vm837_vm0 = vcmp.eq.s32.totalorder %v4887_v37, %v2904_v44  ;;  %vm1215_vm1 = vcmp.eq.s32.totalorder %v4888_v32, %v2904_v44  ;;  %v1736_v50 = vadd.f32 %v1672_v12, %v1345_v18  ;;  %v1679_v20 = vsel %vm1609_vm13, %v3376_v38, 0.0  ;;  %v4899_v37 = vld [vmem:[#allocation40_spill] sm:$0xff] }
 0x263   : > { %vm838_vm2 = vcmp.eq.s32.totalorder %v4889_v33, %v2904_v44  ;;  %v1352_v55 = vadd.f32 %v1288_v6, %v3661_v39  ;;  %v1674_v22 = vsel %vm1604_vm14, %v3376_v38, 0.0  ;;  %vm1611_vm3 = vcmp.eq.s32.totalorder %v3741_v15, %v2904_v44  ;;  %v4891_v15 = vld [vmem:[#allocation158_spill] sm:$0xff]  ;;  %v3930_v33 = vpop.permute.xlu0 %1517 }
 0x264   : > { %v3858_v25 = vpop.permute.xlu1 %1508  ;;  %1833 = vadd.xlane.f32.xlu0 %v1741_v4  ;;  %v3861_v62 = vadd.f32 %v906_v41, %v4890_v2  ;;  %v1347_v43 = vadd.f32 %v1283_v13, %v3542_v60  ;;  %v1290_v17 = vsel %vm1220_vm15, %v3334_v7, 0.0  ;;  %vm1606_vm4 = vcmp.eq.s32.totalorder %v3582_v56, %v2904_v44  ;;  %v4898_v41 = vld [vmem:[#allocation37_spill] sm:$0xff]  ;;  %v4903_v2 = vld [vmem:[#allocation124_spill] sm:$0xff] }
 0x265   : > { %v907_v39 = vsel %vm837_vm0, %v3238_v16, 0.0  ;;  %v1285_v14 = vsel %vm1215_vm1, %v3334_v7, 0.0  ;;  %vm1222_vm5 = vcmp.eq.s32.totalorder %v4891_v15, %v2904_v44  ;;  %v1743_v1 = vadd.f32 %v1679_v20, %v1352_v55  ;;  %v4901_v55 = vld [vmem:[#allocation123_spill] sm:$0xff] }
 0x266   : > { %1823 = vadd.xlane.f32.xlu1 %v1736_v50  ;;  %v908_v26 = vsel %vm838_vm2, %v3238_v16, 0.0  ;;  %vm1217_vm6 = vcmp.eq.s32.totalorder %v4892_v45, %v2904_v44  ;;  %v1738_v60 = vadd.f32 %v1674_v22, %v1347_v43  ;;  %v1681_v58 = vsel %vm1611_vm3, %v3376_v38, 0.0  ;;  %v4900_v50 = vld [vmem:[#allocation162_spill] sm:$0xff] }
 0x267   : > { %vm839_vm7 = vcmp.eq.s32.totalorder %v4893_v28, %v2904_v44  ;;  %v1354_v56 = vadd.f32 %v1290_v17, %v3710_v47  ;;  %v1676_v57 = vsel %vm1606_vm4, %v3376_v38, 0.0  ;;  %vm1613_vm8 = vcmp.eq.s32.totalorder %v3770_v42, %v2904_v44  ;;  %v4895_v47 = vld [vmem:[#allocation122_spill] sm:$0xff] }
 0x268   : > { %v3883_v5 = vpop.permute.xlu1 %1514  ;;  %1837 = vadd.xlane.f32.xlu0 %v1743_v1  ;;  %v3886_v48 = vadd.f32 %v907_v39, %v4894_v0  ;;  %v1349_v63 = vadd.f32 %v1285_v14, %v3585_v49  ;;  %v1292_v35 = vsel %vm1222_vm5, %v3334_v7, 0.0  ;;  %vm1608_vm9 = vcmp.eq.s32.totalorder %v3619_v8, %v2904_v44  ;;  %v4897_v8 = vld [vmem:[#allocation157_spill] sm:$0xff]  ;;  %v4904_v14 = vld [vmem:[#allocation39_spill] sm:$0xff]  ;;  %v3969_v0 = vpop.permute.xlu0 %1523 }
 0x269   : > { %vm840_vm10 = vcmp.eq.s32.totalorder %v4895_v47, %v2904_v44  ;;  %v1287_v9 = vsel %vm1217_vm6, %v3334_v7, 0.0  ;;  %vm1224_vm11 = vcmp.eq.s32.totalorder %v4896_v59, %v2904_v44  ;;  %v1745_v46 = vadd.f32 %v1681_v58, %v1354_v56  ;;  %v4906_v58 = vld [vmem:[#allocation161_spill] sm:$0xff] }
 0x26a   : > { %1827 = vadd.xlane.f32.xlu1 %v1738_v60  ;;  %v909_v49 = vsel %vm839_vm7, %v3238_v16, 0.0  ;;  %vm1219_vm12 = vcmp.eq.s32.totalorder %v4897_v8, %v2904_v44  ;;  %v1740_v3 = vadd.f32 %v1676_v57, %v1349_v63  ;;  %v1683_v12 = vsel %vm1613_vm8, %v3376_v38, 0.0  ;;  %v4907_v56 = vld [vmem:[#allocation125_spill] sm:$0xff] }
 0x26b   : > { %v3911_v18 = vadd.f32 %v908_v26, %v4898_v41  ;;  %v1356_v6 = vadd.f32 %v1292_v35, %v3749_v61  ;;  %v1678_v30 = vsel %vm1608_vm9, %v3376_v38, 0.0  ;;  %vm1615_vm13 = vcmp.eq.s32.totalorder %v3795_v36, %v2904_v44  ;;  %v4908_v35 = vld [vmem:[#allocation42_spill] sm:$0xff]  ;;  %v4912_v41 = vld [vmem:[#allocation41_spill] sm:$0xff] }
 0x26c   : > { %v3917_v13 = vpop.permute.xlu1 %1520  ;;  %1841 = vadd.xlane.f32.xlu0 %v1745_v46  ;;  %v910_v51 = vsel %vm840_vm10, %v3238_v16, 0.0  ;;  %v1351_v4 = vadd.f32 %v1287_v9, %v3647_v23  ;;  %v1294_v42 = vsel %vm1224_vm11, %v3334_v7, 0.0  ;;  %vm1610_vm14 = vcmp.eq.s32.totalorder %v3666_v21, %v2904_v44  ;;  %v4902_v23 = vld [vmem:[#allocation159_spill] sm:$0xff] }
 0x26d   : > { %v3925_v61 = vadd.f32 %v909_v49, %v4899_v37  ;;  %v1289_v32 = vsel %vm1219_vm12, %v3334_v7, 0.0  ;;  %vm1226_vm15 = vcmp.eq.s32.totalorder %v4900_v50, %v2904_v44  ;;  %v1747_v20 = vadd.f32 %v1683_v12, %v1356_v6  ;;  %v4910_v49 = vld [vmem:[#allocation166_spill] sm:$0xff] }
 0x26e   : > { %1831 = vadd.xlane.f32.xlu1 %v1740_v3  ;;  %vm841_vm0 = vcmp.eq.s32.totalorder %v4901_v55, %v2904_v44  ;;  %vm1221_vm1 = vcmp.eq.s32.totalorder %v4902_v23, %v2904_v44  ;;  %v1742_v22 = vadd.f32 %v1678_v30, %v1351_v4  ;;  %v1685_v21 = vsel %vm1615_vm13, %v3376_v38, 0.0  ;;  %v4014_v23 = vpop.permute.xlu0 %1529 }
 0x26f   : > { %vm842_vm2 = vcmp.eq.s32.totalorder %v4903_v2, %v2904_v44  ;;  %v1358_v43 = vadd.f32 %v1294_v42, %v3798_v40  ;;  %v1680_v17 = vsel %vm1610_vm14, %v3376_v38, 0.0  ;;  %vm1617_vm3 = vcmp.eq.s32.totalorder %v3829_v19, %v2904_v44  ;;  %v4905_v19 = vld [vmem:[#allocation164_spill] sm:$0xff] }
 0x270   : > { %v3946_v39 = vpop.permute.xlu1 %1526  ;;  %1845 = vadd.xlane.f32.xlu0 %v1747_v20  ;;  %v3949_v15 = vadd.f32 %v910_v51, %v4904_v14  ;;  %v1353_v1 = vadd.f32 %v1289_v32, %v3685_v52  ;;  %v1296_v36 = vsel %vm1226_vm15, %v3334_v7, 0.0  ;;  %vm1612_vm4 = vcmp.eq.s32.totalorder %v3705_v31, %v2904_v44  ;;  %v4913_v32 = vld [vmem:[#allocation44_spill] sm:$0xff]  ;;  %v4918_v14 = vld [vmem:[#allocation43_spill] sm:$0xff] }
 0x271   : > { %v911_v40 = vsel %vm841_vm0, %v3238_v16, 0.0  ;;  %v1291_v26 = vsel %vm1221_vm1, %v3334_v7, 0.0  ;;  %vm1228_vm5 = vcmp.eq.s32.totalorder %v4905_v19, %v2904_v44  ;;  %v1749_v45 = vadd.f32 %v1685_v21, %v1358_v43  ;;  %v4914_v20 = vld [vmem:[#allocation168_spill] sm:$0xff] }
 0x272   : > { %1835 = vadd.xlane.f32.xlu1 %v1742_v22  ;;  %v912_v60 = vsel %vm842_vm2, %v3238_v16, 0.0  ;;  %vm1223_vm6 = vcmp.eq.s32.totalorder %v4906_v58, %v2904_v44  ;;  %v1744_v52 = vadd.f32 %v1680_v17, %v1353_v1  ;;  %v1687_v28 = vsel %vm1617_vm3, %v3376_v38, 0.0  ;;  %v4916_v22 = vld [vmem:[#allocation165_spill] sm:$0xff]  ;;  %v4917_v2 = vld [vmem:[#allocation128_spill] sm:$0xff] }
 0x273   : > { %vm843_vm7 = vcmp.eq.s32.totalorder %v4907_v56, %v2904_v44  ;;  %v1360_v31 = vadd.f32 %v1296_v36, %v3837_v53  ;;  %v1682_v57 = vsel %vm1612_vm4, %v3376_v38, 0.0  ;;  %vm1619_vm8 = vcmp.eq.s32.totalorder %v3858_v25, %v2904_v44  ;;  %v4909_v53 = vld [vmem:[#allocation126_spill] sm:$0xff]  ;;  %v4050_v56 = vpop.permute.xlu0 %1535 }
 0x274   : > { %v3971_v63 = vpop.permute.xlu1 %1532  ;;  %1849 = vadd.xlane.f32.xlu0 %v1749_v45  ;;  %v975_v47 = vadd.f32 %v911_v40, %v4908_v35  ;;  %v1355_v9 = vadd.f32 %v1291_v26, %v3735_v11  ;;  %v1298_v59 = vsel %vm1228_vm5, %v3334_v7, 0.0  ;;  %vm1614_vm9 = vcmp.eq.s32.totalorder %v3754_v29, %v2904_v44  ;;  %v4911_v29 = vld [vmem:[#allocation163_spill] sm:$0xff]  ;;  %v4919_v26 = vld [vmem:[#allocation170_spill] sm:$0xff] }
 0x275   : > { %vm844_vm10 = vcmp.eq.s32.totalorder %v4909_v53, %v2904_v44  ;;  %v1293_v46 = vsel %vm1223_vm6, %v3334_v7, 0.0  ;;  %vm1230_vm11 = vcmp.eq.s32.totalorder %v4910_v49, %v2904_v44  ;;  %v1751_v8 = vadd.f32 %v1687_v28, %v1360_v31  ;;  %v4920_v45 = vld [vmem:[#allocation167_spill] sm:$0xff]  ;;  %v4925_v53 = vld [vmem:[#allocation169_spill] sm:$0xff] }
 0x276   : > { %1839 = vadd.xlane.f32.xlu1 %v1744_v52  ;;  %v913_v11 = vsel %vm843_vm7, %v3238_v16, 0.0  ;;  %vm1225_vm12 = vcmp.eq.s32.totalorder %v4911_v29, %v2904_v44  ;;  %v1746_v3 = vadd.f32 %v1682_v57, %v1355_v9  ;;  %v1689_v12 = vsel %vm1619_vm8, %v3376_v38, 0.0 }
 0x277   : > { %v3997_v6 = vadd.f32 %v912_v60, %v4912_v41  ;;  %v1362_v30 = vadd.f32 %v1298_v59, %v3886_v48  ;;  %v1684_v51 = vsel %vm1614_vm9, %v3376_v38, 0.0  ;;  %vm1621_vm13 = vcmp.eq.s32.totalorder %v3883_v5, %v2904_v44 }
 0x278   : > { %1853 = vadd.xlane.f32.xlu0 %v1751_v8  ;;  %v914_v4 = vsel %vm844_vm10, %v3238_v16, 0.0  ;;  %v1357_v42 = vadd.f32 %v1293_v46, %v3773_v10  ;;  %v1300_v37 = vsel %vm1230_vm11, %v3334_v7, 0.0  ;;  %vm1616_vm14 = vcmp.eq.s32.totalorder %v3793_v54, %v2904_v44  ;;  %v4008_v25 = vpop.permute.xlu1 %1538  ;;  %v4915_v10 = vld [vmem:[#allocation127_spill] sm:$0xff]  ;;  %v4926_v8 = vld [vmem:[#allocation45_spill] sm:$0xff] }
 0x279   : > { %v977_v48 = vadd.f32 %v913_v11, %v4913_v32  ;;  %v1295_v50 = vsel %vm1225_vm12, %v3334_v7, 0.0  ;;  %vm1232_vm15 = vcmp.eq.s32.totalorder %v4914_v20, %v2904_v44  ;;  %v1753_v55 = vadd.f32 %v1689_v12, %v1362_v30  ;;  %v4928_v32 = vld [vmem:[#allocation174_spill] sm:$0xff]  ;;  %v4930_v20 = vld [vmem:[#allocation171_spill] sm:$0xff] }
 0x27a   : > { %1843 = vadd.xlane.f32.xlu1 %v1746_v3  ;;  %vm845_vm0 = vcmp.eq.s32.totalorder %v4915_v10, %v2904_v44  ;;  %vm1227_vm1 = vcmp.eq.s32.totalorder %v4916_v22, %v2904_v44  ;;  %v1748_v54 = vadd.f32 %v1684_v51, %v1357_v42  ;;  %v1691_v21 = vsel %vm1621_vm13, %v3376_v38, 0.0  ;;  %v4931_v10 = vld [vmem:[#allocation132_spill] sm:$0xff] }
 0x27b   : > { %vm846_vm2 = vcmp.eq.s32.totalorder %v4917_v2, %v2904_v44  ;;  %v1364_v43 = vadd.f32 %v1300_v37, %v3925_v61  ;;  %v1686_v17 = vsel %vm1616_vm14, %v3376_v38, 0.0  ;;  %vm1623_vm3 = vcmp.eq.s32.totalorder %v3917_v13, %v2904_v44 }
 0x27c   : > { %1857 = vadd.xlane.f32.xlu0 %v1753_v55  ;;  %v4031_v1 = vadd.f32 %v914_v4, %v4918_v14  ;;  %v1359_v36 = vadd.f32 %v1295_v50, %v3823_v24  ;;  %v1302_v40 = vsel %vm1232_vm15, %v3334_v7, 0.0  ;;  %vm1618_vm4 = vcmp.eq.s32.totalorder %v3842_v27, %v2904_v44  ;;  %v4045_v58 = vpop.permute.xlu1 %1544  ;;  %v4921_v27 = vld [vmem:[#allocation129_spill] sm:$0xff]  ;;  %v4096_v50 = vpop.permute.xlu0 %1541 }
 0x27d   : > { %v915_v5 = vsel %vm845_vm0, %v3238_v16, 0.0  ;;  %v1297_v61 = vsel %vm1227_vm1, %v3334_v7, 0.0  ;;  %vm1234_vm5 = vcmp.eq.s32.totalorder %v4919_v26, %v2904_v44  ;;  %v1755_v13 = vadd.f32 %v1691_v21, %v1364_v43  ;;  %v4927_v4 = vld [vmem:[#allocation13_spill] sm:$0xff]  ;;  %v4932_v21 = vld [vmem:[#allocation47_spill] sm:$0xff] }
 0x27e   : > { %1847 = vadd.xlane.f32.xlu1 %v1748_v54  ;;  %v916_v19 = vsel %vm846_vm2, %v3238_v16, 0.0  ;;  %vm1229_vm6 = vcmp.eq.s32.totalorder %v4920_v45, %v2904_v44  ;;  %v1750_v24 = vadd.f32 %v1686_v17, %v1359_v36  ;;  %v1693_v60 = vsel %vm1623_vm3, %v3376_v38, 0.0  ;;  %v4922_v16 = vld [vmem:[#allocation46_spill] sm:$0xff]  ;;  %v4933_v36 = vld [vmem:[#allocation175_spill] sm:$0xff]  ;;  %v4936_v45 = vld [vmem:[#allocation49_spill] sm:$0xff] }
 0x27f   : > { %vm847_vm7 = vcmp.eq.s32.totalorder %v4921_v27, %v2904_v44  ;;  %v1366_v52 = vadd.f32 %v1302_v40, %v975_v47  ;;  %v1688_v28 = vsel %vm1618_vm4, %v3376_v38, 0.0  ;;  %vm1625_vm8 = vcmp.eq.s32.totalorder %v3946_v39, %v2904_v44  ;;  %v4923_v47 = vld [vmem:[#allocation130_spill] sm:$0xff]  ;;  %v4924_v39 = vld [vmem:[#allocation172_spill] sm:$0xff] }
 0x280   : > { %1861 = vadd.xlane.f32.xlu0 %v1755_v13  ;;  %v979_v31 = vadd.f32 %v915_v5, %v4922_v16  ;;  %v1361_v57 = vadd.f32 %v1297_v61, %v3861_v62  ;;  %v1304_v35 = vsel %vm1234_vm5, %v3334_v7, 0.0  ;;  %vm1620_vm9 = vcmp.eq.s32.totalorder %v3881_v34, %v2904_v44  ;;  %v4070_v62 = vld [vmem:[%s4445_s1 + $0x1] ss:$0 sm:$0xff]  ;;  %v4090_v51 = vpop.permute.xlu1 %1550  ;;  %v4934_v5 = vld [vmem:[#allocation173_spill] sm:$0xff]  ;;  %v4138_v27 = vld [vmem:[%s4445_s1 + $0x2] ss:$0 sm:$0xff] }
 0x281   : > { %vm848_vm10 = vcmp.eq.s32.totalorder %v4923_v47, %v2904_v44  ;;  %v1299_v9 = vsel %vm1229_vm6, %v3334_v7, 0.0  ;;  %vm1236_vm11 = vcmp.eq.s32.totalorder %v4924_v39, %v2904_v44  ;;  %v1757_v59 = vadd.f32 %v1693_v60, %v1366_v52  ;;  %v4938_v16 = vld [vmem:[#allocation176_spill] sm:$0xff] }
 0x282   : > { %1851 = vadd.xlane.f32.xlu1 %v1750_v24  ;;  %v917_v34 = vsel %vm847_vm7, %v4070_v62, 0.0  ;;  %vm1231_vm12 = vcmp.eq.s32.totalorder %v4925_v53, %v2904_v44  ;;  %v1752_v46 = vadd.f32 %v1688_v28, %v1361_v57  ;;  %v1695_v49 = vsel %vm1625_vm8, %v3376_v38, 0.0  ;;  %v4941_v53 = vld [vmem:[#allocation133_spill] sm:$0xff] }
 0x283   : > { %v4080_v11 = vadd.f32 %v916_v19, %v4926_v8  ;;  %v1368_v29 = vadd.f32 %v1304_v35, %v977_v48  ;;  %v1690_v3 = vsel %vm1620_vm9, %v3376_v38, 0.0  ;;  %vm1627_vm13 = vcmp.eq.s32.totalorder %v3971_v63, %v2904_v44  ;;  %v4942_v8 = vld [vmem:[#allocation51_spill] sm:$0xff] }
 0x284   : > { %1865 = vadd.xlane.f32.xlu0 %v1757_v59  ;;  %v918_v12 = vsel %vm848_vm10, %v4070_v62, 0.0  ;;  %v1363_v41 = vadd.f32 %v1299_v9, %v3911_v18  ;;  %v1306_v30 = vsel %vm1236_vm11, %v3334_v7, 0.0  ;;  %vm1622_vm14 = vcmp.eq.s32.totalorder %v3930_v33, %v2904_v44  ;;  %v4929_v18 = vld [vmem:[#allocation131_spill] sm:$0xff]  ;;  %v1557_v26 = vpop.permute.xlu1 %1556  ;;  %v4940_v9 = vld [vmem:[#allocation6_spill] sm:$0xff] }
 0x285   : > { %v981_v42 = vadd.f32 %v917_v34, %v4927_v4  ;;  %v1301_v37 = vsel %vm1231_vm12, %v3334_v7, 0.0  ;;  %vm1238_vm15 = vcmp.eq.s32.totalorder %v4928_v32, %v2904_v44  ;;  %v1759_v48 = vadd.f32 %v1695_v49, %v1368_v29  ;;  %v4167_v59 = vld [vmem:[%s4445_s1 + $0x3] ss:$0 sm:$0xff] }
 0x286   : > { %1855 = vadd.xlane.f32.xlu1 %v1752_v46  ;;  %vm849_vm0 = vcmp.eq.s32.totalorder %v4929_v18, %v2904_v44  ;;  %vm1233_vm1 = vcmp.eq.s32.totalorder %v4930_v20, %v2904_v44  ;;  %v1754_v33 = vadd.f32 %v1690_v3, %v1363_v41  ;;  %v1697_v55 = vsel %vm1627_vm13, %v3376_v38, 0.0 }
 0x287   : > { %vm850_vm2 = vcmp.eq.s32.totalorder %v4931_v10, %v2904_v44  ;;  %v1370_v22 = vadd.f32 %v1306_v30, %v979_v31  ;;  %v1692_v54 = vsel %vm1622_vm14, %v3376_v38, 0.0  ;;  %vm1629_vm3 = vcmp.eq.s32.totalorder %v4008_v25, %v2904_v44  ;;  %v4944_v30 = vld [vmem:[#allocation3_spill] sm:$0xff] }
 0x288   : > { %1869 = vadd.xlane.f32.xlu0 %v1759_v48  ;;  %v4112_v2 = vadd.f32 %v918_v12, %v4932_v21  ;;  %v1365_v43 = vadd.f32 %v1301_v37, %v3949_v15  ;;  %v1308_v17 = vsel %vm1238_vm15, %v3334_v7, 0.0  ;;  %vm1624_vm4 = vcmp.eq.s32.totalorder %v3969_v0, %v2904_v44  ;;  %v4935_v0 = vld [vmem:[#allocation4_spill] sm:$0xff]  ;;  %v1563_v49 = vpop.permute.xlu1 %1562  ;;  %v4943_v12 = vld [vmem:[#allocation18_spill] sm:$0xff] }
 0x289   : > { %v919_v63 = vsel %vm849_vm0, %v4070_v62, 0.0  ;;  %v1303_v14 = vsel %vm1233_vm1, %v3334_v7, 0.0  ;;  %vm1240_vm5 = vcmp.eq.s32.totalorder %v4933_v36, %v2904_v44  ;;  %v1761_v25 = vadd.f32 %v1697_v55, %v1370_v22  ;;  %v4129_v7 = vpop.permute.xlu0 %1547  ;;  %v4945_v37 = vld [vmem:[#allocation8_spill] sm:$0xff] }
 0x28a   : > { %1859 = vadd.xlane.f32.xlu1 %v1754_v33  ;;  %v920_v40 = vsel %vm850_vm2, %v4070_v62, 0.0  ;;  %vm1235_vm6 = vcmp.eq.s32.totalorder %v4934_v5, %v2904_v44  ;;  %v1756_v15 = vadd.f32 %v1692_v54, %v1365_v43  ;;  %v1699_v61 = vsel %vm1629_vm3, %v3376_v38, 0.0  ;;  %v4947_v22 = vld [vmem:[#allocation20_spill] sm:$0xff]  ;;  %v4948_v43 = vld [vmem:[#allocation5_spill] sm:$0xff] }
 0x28b   : > { %vm851_vm7 = vcmp.eq.s32.totalorder %v4935_v0, %v2904_v44  ;;  %v1372_v13 = vadd.f32 %v1308_v17, %v981_v42  ;;  %v1694_v19 = vsel %vm1624_vm4, %v3376_v38, 0.0  ;;  %vm1631_vm8 = vcmp.eq.s32.totalorder %v4045_v58, %v2904_v44  ;;  %v4937_v58 = vld [vmem:[#allocation48_spill] sm:$0xff] }
 0x28c   : > { %1873 = vadd.xlane.f32.xlu0 %v1761_v25  ;;  %v983_v24 = vadd.f32 %v919_v63, %v4936_v45  ;;  %v1367_v60 = vadd.f32 %v1303_v14, %v3997_v6  ;;  %v1310_v52 = vsel %vm1240_vm5, %v4138_v27, 0.0  ;;  %vm1626_vm9 = vcmp.eq.s32.totalorder %v4014_v23, %v2904_v44  ;;  %v4939_v23 = vld [vmem:[#allocation2_spill] sm:$0xff] }
 0x28d   : > { %v4147_v28 = vadd.f32 %v920_v40, %v4937_v58  ;;  %v1305_v6 = vsel %vm1235_vm6, %v4138_v27, 0.0  ;;  %vm1242_vm10 = vcmp.eq.s32.totalorder %v4938_v16, %v2904_v44  ;;  %v1763_v31 = vadd.f32 %v1699_v61, %v1372_v13  ;;  %v4185_v41 = vpop.permute.xlu0 %1553  ;;  %v1569_v63 = vpop.permute.xlu1 %1568  ;;  %v4950_v40 = vld [vmem:[#allocation50_spill] sm:$0xff]  ;;  %v4955_v16 = vld [vmem:[#allocation11_spill] sm:$0xff] }
 0x28e   : > { %1863 = vadd.xlane.f32.xlu1 %v1756_v15  ;;  %v921_v57 = vsel %vm851_vm7, %v4070_v62, 0.0  ;;  %vm1237_vm11 = vcmp.eq.s32.totalorder %v4939_v23, %v2904_v44  ;;  %v1758_v35 = vadd.f32 %v1694_v19, %v1367_v60  ;;  %v1701_v47 = vsel %vm1631_vm8, %v3376_v38, 0.0  ;;  %v4952_v19 = vld [vmem:[#allocation22_spill] sm:$0xff] }
 0x28f   : > { %vm853_vm12 = vcmp.eq.s32.totalorder %v4940_v9, %v2904_v44  ;;  %v1374_v39 = vadd.f32 %v1310_v52, %v983_v24  ;;  %v1696_v34 = vsel %vm1626_vm9, %v4167_v59, 0.0  ;;  %vm1633_vm13 = vcmp.eq.s32.totalorder %v4090_v51, %v2904_v44  ;;  %v4946_v51 = vld [vmem:[#allocation53_spill] sm:$0xff]  ;;  %v4954_v52 = vld [vmem:[#allocation136_spill] sm:$0xff] }
 0x290   : > { %1877 = vadd.xlane.f32.xlu0 %v1763_v31  ;;  %vm852_vm14 = vcmp.eq.s32.totalorder %v4941_v53, %v2904_v44  ;;  %v1369_v38 = vadd.f32 %v1305_v6, %v4031_v1  ;;  %v1312_v46 = vsel %vm1242_vm10, %v4138_v27, 0.0  ;;  %vm1628_vm15 = vcmp.eq.s32.totalorder %v4050_v56, %v2904_v44 }
 0x291   : > { %v985_v29 = vadd.f32 %v921_v57, %v4942_v8  ;;  %v1307_v3 = vsel %vm1237_vm11, %v4138_v27, 0.0  ;;  %vm1244_vm0 = vcmp.eq.s32.totalorder %v4943_v12, %v2904_v44  ;;  %v1765_v1 = vadd.f32 %v1701_v47, %v1374_v39  ;;  %v1560_v25 = vpop.permute.xlu0 %1559  ;;  %v1575_v23 = vpop.permute.xlu1 %1574  ;;  %v4957_v39 = vld [vmem:[#allocation7_spill] sm:$0xff]  ;;  %v4959_v12 = vld [vmem:[#allocation134_spill] sm:$0xff] }
 0x292   : > { %1867 = vadd.xlane.f32.xlu1 %v1758_v35  ;;  %v923_v56 = vsel %vm853_vm12, %v4070_v62, 0.0  ;;  %vm1239_vm1 = vcmp.eq.s32.totalorder %v4944_v30, %v2904_v44  ;;  %v1760_v4 = vadd.f32 %v1696_v34, %v1369_v38  ;;  %v1703_v42 = vsel %vm1633_vm13, %v4167_v59, 0.0  ;;  %v4956_v35 = vld [vmem:[#allocation55_spill] sm:$0xff]  ;;  %v4958_v38 = vld [vmem:[#allocation21_spill] sm:$0xff]  ;;  %v4961_v30 = vld [vmem:[#allocation56_spill] sm:$0xff] }
 0x293   : > { %vm855_vm2 = vcmp.eq.s32.totalorder %v4945_v37, %v2904_v44  ;;  %v1376_v32 = vadd.f32 %v1312_v46, %v985_v29  ;;  %v1698_v48 = vsel %vm1628_vm15, %v4167_v59, 0.0  ;;  %vm1635_vm3 = vcmp.eq.s32.totalorder %v1557_v26, %v2904_v44  ;;  %v4951_v26 = vld [vmem:[#allocation54_spill] sm:$0xff] }
 0x294   : > { %1881 = vadd.xlane.f32.xlu0 %v1765_v1  ;;  %v922_v18 = vsel %vm852_vm14, %v4070_v62, 0.0  ;;  %v1371_v20 = vadd.f32 %v1307_v3, %v4080_v11  ;;  %v1314_v33 = vsel %vm1244_vm0, %v4138_v27, 0.0  ;;  %vm1630_vm4 = vcmp.eq.s32.totalorder %v4096_v50, %v2904_v44  ;;  %v4949_v50 = vld [vmem:[#allocation10_spill] sm:$0xff] }
 0x295   : > { %v987_v55 = vadd.f32 %v923_v56, %v4946_v51  ;;  %v1309_v10 = vsel %vm1239_vm1, %v4138_v27, 0.0  ;;  %vm1246_vm5 = vcmp.eq.s32.totalorder %v4947_v22, %v2904_v44  ;;  %v1767_v54 = vadd.f32 %v1703_v42, %v1376_v32  ;;  %v1566_v34 = vpop.permute.xlu0 %1565  ;;  %v4960_v56 = vld [vmem:[#allocation76_spill] sm:$0xff] }
 0x296   : > { %1871 = vadd.xlane.f32.xlu1 %v1760_v4  ;;  %v925_v21 = vsel %vm855_vm2, %v4070_v62, 0.0  ;;  %vm1241_vm6 = vcmp.eq.s32.totalorder %v4948_v43, %v2904_v44  ;;  %v1762_v11 = vadd.f32 %v1698_v48, %v1371_v20  ;;  %v1705_v17 = vsel %vm1635_vm3, %v4167_v59, 0.0  ;;  %v4962_v32 = vld [vmem:[#allocation52_spill] sm:$0xff]  ;;  %v2064_v43 = vld [vmem:[%s4445_s1] ss:$0 sm:$0xff] }
 0x297   : > { %vm857_vm7 = vcmp.eq.s32.totalorder %v4949_v50, %v2904_v44  ;;  %v1378_v14 = vadd.f32 %v1314_v33, %v987_v55  ;;  %v1700_v36 = vsel %vm1630_vm4, %v4167_v59, 0.0  ;;  %vm1637_vm8 = vcmp.eq.s32.totalorder %v1563_v49, %v2904_v44  ;;  %v4965_v50 = vld [vmem:[#allocation12_spill] sm:$0xff] }
 0x298   : > { %1885 = vadd.xlane.f32.xlu0 %v1767_v54  ;;  %v986_v5 = vadd.f32 %v922_v18, %v4950_v40  ;;  %v1373_v15 = vadd.f32 %v1309_v10, %v4112_v2  ;;  %v1316_v61 = vsel %vm1246_vm5, %v4138_v27, 0.0  ;;  %vm1632_vm9 = vcmp.eq.s32.totalorder %v4129_v7, %v2904_v44  ;;  %v4953_v2 = vld [vmem:[#allocation19_spill] sm:$0xff] }
 0x299   : > { %v989_v0 = vadd.f32 %v925_v21, %v4951_v26  ;;  %v1311_v13 = vsel %vm1241_vm6, %v4138_v27, 0.0  ;;  %vm1248_vm10 = vcmp.eq.s32.totalorder %v4952_v19, %v2904_v44  ;;  %v1769_v45 = vadd.f32 %v1705_v17, %v1378_v14  ;;  %v4963_v18 = vld [vmem:[#allocation23_spill] sm:$0xff]  ;;  %v1572_v22 = vpop.permute.xlu0 %1571 }
 0x29a   : > { %1875 = vadd.xlane.f32.xlu1 %v1762_v11  ;;  %v927_v24 = vsel %vm857_vm7, %v4070_v62, 0.0  ;;  %vm1243_vm11 = vcmp.eq.s32.totalorder %v4953_v2, %v2904_v44  ;;  %v1764_v60 = vadd.f32 %v1700_v36, %v1373_v15  ;;  %v1707_v7 = vsel %vm1637_vm8, %v4167_v59, 0.0  ;;  %v4964_v54 = vld [vmem:[#allocation135_spill] sm:$0xff]  ;;  %v4966_v36 = vld [vmem:[#allocation24_spill] sm:$0xff]  ;;  %v4967_v15 = vld [vmem:[#allocation137_spill] sm:$0xff] }
 0x29b   : > { %vm859_vm12 = vcmp.eq.s32.totalorder %v4954_v52, %v2904_v44  ;;  %v1380_v58 = vadd.f32 %v1316_v61, %v989_v0  ;;  %v1702_v6 = vsel %vm1632_vm9, %v4167_v59, 0.0  ;;  %vm1639_vm13 = vcmp.eq.s32.totalorder %v1569_v63, %v2904_v44  ;;  %v4968_v19 = vld [vmem:[#allocation15_spill] sm:$0xff] }
 0x29c   : > { %1889 = vadd.xlane.f32.xlu0 %v1769_v45  ;;  %vm854_vm14 = vcmp.eq.s32.totalorder %v4955_v16, %v2904_v44  ;;  %v1375_v31 = vadd.f32 %v1311_v13, %v4147_v28  ;;  %v1318_v57 = vsel %vm1248_vm10, %v4138_v27, 0.0  ;;  %vm1634_vm15 = vcmp.eq.s32.totalorder %v4185_v41, %v2904_v44 }
 0x29d   : > { %v991_v47 = vadd.f32 %v927_v24, %v4956_v35  ;;  %v1313_v9 = vsel %vm1243_vm11, %v4138_v27, 0.0  ;;  %vm1250_vm0 = vcmp.eq.s32.totalorder %v4957_v39, %v2904_v44  ;;  %v1771_v53 = vadd.f32 %v1707_v7, %v1380_v58  ;;  %v1578_v13 = vpop.permute.xlu0 %1577  ;;  %v4969_v24 = vld [vmem:[#allocation9_spill] sm:$0xff] }
 0x29e   : > { %1879 = vadd.xlane.f32.xlu1 %v1764_v60  ;;  %v929_v28 = vsel %vm859_vm12, %v4070_v62, 0.0  ;;  %vm1245_vm1 = vcmp.eq.s32.totalorder %v4958_v38, %v2904_v44  ;;  %v1766_v46 = vadd.f32 %v1702_v6, %v1375_v31  ;;  %v1709_v49 = vsel %vm1639_vm13, %v4167_v59, 0.0 }
 0x29f   : > { %v924_v8 = vsel %vm854_vm14, %v4070_v62, 0.0  ;;  %v1382_v29 = vadd.f32 %v1318_v57, %v991_v47  ;;  %v1704_v3 = vsel %vm1634_vm15, %v4167_v59, 0.0  ;;  %vm1641_vm2 = vcmp.eq.s32.totalorder %v1575_v23, %v2904_v44 }
 0x2a0   : > { %1893 = vadd.xlane.f32.xlu0 %v1771_v53  ;;  %vm856_vm3 = vcmp.eq.s32.totalorder %v4959_v12, %v2904_v44  ;;  %v1377_v41 = vadd.f32 %v1313_v9, %v986_v5  ;;  %v1320_v1 = vsel %vm1250_vm0, %v4138_v27, 0.0  ;;  %vm1636_vm4 = vcmp.eq.s32.totalorder %v1560_v25, %v2904_v44 }
 0x2a1   : > { %vm465_vm5 = vcmp.eq.s32.totalorder %v4960_v56, %v2904_v44  ;;  %v993_v4 = vadd.f32 %v929_v28, %v4961_v30  ;;  %v1315_v42 = vsel %vm1245_vm1, %v4138_v27, 0.0  ;;  %v1773_v37 = vadd.f32 %v1709_v49, %v1382_v29 }
 0x2a2   : > { %1883 = vadd.xlane.f32.xlu1 %v1766_v46  ;;  %v988_v48 = vadd.f32 %v924_v8, %v4962_v32  ;;  %vm1247_vm6 = vcmp.eq.s32.totalorder %v4963_v18, %v2904_v44  ;;  %v1768_v20 = vadd.f32 %v1704_v3, %v1377_v41  ;;  %v1711_v33 = vsel %vm1641_vm2, %v4167_v59, 0.0 }
 0x2a3   : > { %v926_v51 = vsel %vm856_vm3, %v4070_v62, 0.0  ;;  %v1384_v55 = vadd.f32 %v1320_v1, %v993_v4  ;;  %v1706_v10 = vsel %vm1636_vm4, %v4167_v59, 0.0  ;;  %vm858_vm7 = vcmp.eq.s32.totalorder %v4964_v54, %v2904_v44 }
 0x2a4   : > { %1897 = vadd.xlane.f32.xlu0 %v1773_v37  ;;  %v1379_v21 = vadd.f32 %v1315_v42, %v988_v48  ;;  %vm1638_vm8 = vcmp.eq.s32.totalorder %v1566_v34, %v2904_v44  ;;  %v535_v11 = vsel %vm465_vm5, %v2064_v43, 0.0  ;;  %v1317_v17 = vsel %vm1247_vm6, %v4138_v27, 0.0 }
 0x2a5   : > { %v1775_v63 = vadd.f32 %v1711_v33, %v1384_v55  ;;  %vm467_vm9 = vcmp.eq.s32.totalorder %v4965_v50, %v2904_v44  ;;  %v990_v14 = vadd.f32 %v926_v51, %v535_v11  ;;  %vm1249_vm10 = vcmp.eq.s32.totalorder %v4966_v36, %v2904_v44 }
 0x2a6   : > { %1887 = vadd.xlane.f32.xlu1 %v1768_v20  ;;  %v1770_v25 = vadd.f32 %v1706_v10, %v1379_v21  ;;  %v928_v40 = vsel %vm858_vm7, %v4070_v62, 0.0  ;;  %v1708_v5 = vsel %vm1638_vm8, %v4167_v59, 0.0  ;;  %vm860_vm11 = vcmp.eq.s32.totalorder %v4967_v15, %v2904_v44 }
 0x2a7   : > { %v1381_v61 = vadd.f32 %v1317_v17, %v990_v14  ;;  %vm1640_vm12 = vcmp.eq.s32.totalorder %v1572_v22, %v2904_v44  ;;  %v537_v26 = vsel %vm467_vm9, %v2064_v43, 0.0  ;;  %v1319_v0 = vsel %vm1249_vm10, %v4138_v27, 0.0 }
 0x2a8   : > { %1901 = vadd.xlane.f32.xlu0 %v1775_v63  ;;  %vm469_vm13 = vcmp.eq.s32.totalorder %v4968_v19, %v2904_v44  ;;  %v992_v45 = vadd.f32 %v928_v40, %v537_v26  ;;  %vm1251_vm14 = vcmp.eq.s32.totalorder %v4969_v24, %v2904_v44  ;;  %v930_v60 = vsel %vm860_vm11, %v4070_v62, 0.0 }
 0x2a9   : > { %v1772_v2 = vadd.f32 %v1708_v5, %v1381_v61  ;;  %v1710_v7 = vsel %vm1640_vm12, %v4167_v59, 0.0  ;;  %vm1642_vm15 = vcmp.eq.s32.totalorder %v1578_v13, %v2904_v44  ;;  %v539_v58 = vsel %vm469_vm13, %v2064_v43, 0.0 }
 0x2aa   : > { %1891 = vadd.xlane.f32.xlu1 %v1770_v25  ;;  %v1383_v52 = vadd.f32 %v1319_v0, %v992_v45  ;;  %v1321_v6 = vsel %vm1251_vm14, %v4138_v27, 0.0  ;;  %v994_v16 = vadd.f32 %v930_v60, %v539_v58  ;;  %v1712_v57 = vsel %vm1642_vm15, %v4167_v59, 0.0 }
 0x2ab   : > { %vm1905_vm0 = vcmask 7168  }
 0x2ac   : > { %v1774_v31 = vadd.f32 %v1710_v7, %v1383_v52  ;;  %v1385_v23 = vadd.f32 %v1321_v6, %v994_v16 }
 0x2ae   : > { %1895 = vadd.xlane.f32.xlu1 %v1772_v2  ;;  %v1776_v35 = vadd.f32 %v1712_v57, %v1385_v23 }
 0x2b2   : > { %1899 = vadd.xlane.f32.xlu1 %v1774_v31 }
 0x2b5   : > { %v1780_v44 = vpop.xlane.xlu0 %1779 }
 0x2b6   : > { %1903 = vadd.xlane.f32.xlu1 %v1776_v35  ;;  %1907 = vst.msk [vmem:[%s4311_s6 + $0x8] sm:$0xff] %vm1905_vm0, %v1780_v44 }
 0x2b9   : > { %v1782_v62 = vpop.xlane.xlu0 %1781 }
 0x2ba   : > { %1908 = vst.msk [vmem:[%s4311_s6 + $0x10] sm:$0xff] %vm1905_vm0, %v1782_v62 }
 0x2bd   : > { %v1786_v27 = vpop.xlane.xlu0 %1785 }
 0x2be   : > { %1910 = vst.msk [vmem:[%s4311_s6 + $0x20] sm:$0xff] %vm1905_vm0, %v1786_v27 }
 0x2c1   : > { %v1790_v59 = vpop.xlane.xlu0 %1789 }
 0x2c2   : > { %1912 = vst.msk [vmem:[%s4311_s6 + $0x30] sm:$0xff] %vm1905_vm0, %v1790_v59 }
 0x2c3   : > { %v1778_v47 = vpop.xlane.xlu1 %1777 }
 0x2c4   : > { %1906 = vst.msk [vmem:[%s4311_s6] sm:$0xff] %vm1905_vm0, %v1778_v47 }
 0x2c5   : > { %v1794_v9 = vpop.xlane.xlu0 %1793 }
 0x2c6   : > { %1914 = vst.msk [vmem:[%s4311_s6 + $0x40] sm:$0xff] %vm1905_vm0, %v1794_v9 }
 0x2c7   : > { %v1784_v39 = vpop.xlane.xlu1 %1783 }
 0x2c8   : > { %1909 = vst.msk [vmem:[%s4311_s6 + $0x18] sm:$0xff] %vm1905_vm0, %v1784_v39 }
 0x2c9   : > { %v1798_v34 = vpop.xlane.xlu0 %1797 }
 0x2ca   : > { %1916 = vst.msk [vmem:[%s4311_s6 + $0x50] sm:$0xff] %vm1905_vm0, %v1798_v34 }
 0x2cb   : > { %v1788_v53 = vpop.xlane.xlu1 %1787 }
 0x2cc   : > { %1911 = vst.msk [vmem:[%s4311_s6 + $0x28] sm:$0xff] %vm1905_vm0, %v1788_v53 }
 0x2cd   : > { %v1802_v28 = vpop.xlane.xlu0 %1801 }
 0x2ce   : > { %1918 = vst.msk [vmem:[%s4311_s6 + $0x60] sm:$0xff] %vm1905_vm0, %v1802_v28 }
 0x2cf   : > { %v1792_v38 = vpop.xlane.xlu1 %1791 }
 0x2d0   : > { %1913 = vst.msk [vmem:[%s4311_s6 + $0x38] sm:$0xff] %vm1905_vm0, %v1792_v38 }
 0x2d1   : > { %v1806_v46 = vpop.xlane.xlu0 %1805 }
 0x2d2   : > { %1920 = vst.msk [vmem:[%s4311_s6 + $0x70] sm:$0xff] %vm1905_vm0, %v1806_v46 }
 0x2d3   : > { %v1796_v49 = vpop.xlane.xlu1 %1795 }
 0x2d4   : > { %1915 = vst.msk [vmem:[%s4311_s6 + $0x48] sm:$0xff] %vm1905_vm0, %v1796_v49 }
 0x2d5   : > { %v1810_v8 = vpop.xlane.xlu0 %1809 }
 0x2d6   : > { %1922 = vst.msk [vmem:[%s4311_s6 + $0x80] sm:$0xff] %vm1905_vm0, %v1810_v8 }
 0x2d7   : > { %v1800_v29 = vpop.xlane.xlu1 %1799 }
 0x2d8   : > { %1917 = vst.msk [vmem:[%s4311_s6 + $0x58] sm:$0xff] %vm1905_vm0, %v1800_v29 }
 0x2d9   : > { %v1814_v3 = vpop.xlane.xlu0 %1813 }
 0x2da   : > { %1924 = vst.msk [vmem:[%s4311_s6 + $0x90] sm:$0xff] %vm1905_vm0, %v1814_v3 }
 0x2db   : > { %v1804_v12 = vpop.xlane.xlu1 %1803 }
 0x2dc   : > { %1919 = vst.msk [vmem:[%s4311_s6 + $0x68] sm:$0xff] %vm1905_vm0, %v1804_v12 }
 0x2dd   : > { %v1818_v41 = vpop.xlane.xlu0 %1817 }
 0x2de   : > { %1926 = vst.msk [vmem:[%s4311_s6 + $0xa0] sm:$0xff] %vm1905_vm0, %v1818_v41 }
 0x2df   : > { %v1808_v1 = vpop.xlane.xlu1 %1807 }
 0x2e0   : > { %1921 = vst.msk [vmem:[%s4311_s6 + $0x78] sm:$0xff] %vm1905_vm0, %v1808_v1 }
 0x2e1   : > { %v1822_v56 = vpop.xlane.xlu0 %1821 }
 0x2e2   : > { %1928 = vst.msk [vmem:[%s4311_s6 + $0xb0] sm:$0xff] %vm1905_vm0, %v1822_v56 }
 0x2e3   : > { %v1812_v30 = vpop.xlane.xlu1 %1811 }
 0x2e4   : > { %1923 = vst.msk [vmem:[%s4311_s6 + $0x88] sm:$0xff] %vm1905_vm0, %v1812_v30 }
 0x2e5   : > { %v1826_v4 = vpop.xlane.xlu0 %1825 }
 0x2e6   : > { %1930 = vst.msk [vmem:[%s4311_s6 + $0xc0] sm:$0xff] %vm1905_vm0, %v1826_v4 }
 0x2e7   : > { %v1816_v42 = vpop.xlane.xlu1 %1815 }
 0x2e8   : > { %1925 = vst.msk [vmem:[%s4311_s6 + $0x98] sm:$0xff] %vm1905_vm0, %v1816_v42 }
 0x2e9   : > { %v1830_v37 = vpop.xlane.xlu0 %1829 }
 0x2ea   : > { %1932 = vst.msk [vmem:[%s4311_s6 + $0xd0] sm:$0xff] %vm1905_vm0, %v1830_v37 }
 0x2eb   : > { %v1820_v32 = vpop.xlane.xlu1 %1819 }
 0x2ec   : > { %1927 = vst.msk [vmem:[%s4311_s6 + $0xa8] sm:$0xff] %vm1905_vm0, %v1820_v32 }
 0x2ed   : > { %v1834_v48 = vpop.xlane.xlu0 %1833 }
 0x2ee   : > { %1934 = vst.msk [vmem:[%s4311_s6 + $0xe0] sm:$0xff] %vm1905_vm0, %v1834_v48 }
 0x2ef   : > { %v1824_v18 = vpop.xlane.xlu1 %1823 }
 0x2f0   : > { %1929 = vst.msk [vmem:[%s4311_s6 + $0xb8] sm:$0xff] %vm1905_vm0, %v1824_v18 }
 0x2f1   : > { %v1838_v20 = vpop.xlane.xlu0 %1837 }
 0x2f2   : > { %1936 = vst.msk [vmem:[%s4311_s6 + $0xf0] sm:$0xff] %vm1905_vm0, %v1838_v20 }
 0x2f3   : > { %v1828_v33 = vpop.xlane.xlu1 %1827 }
 0x2f4   : > { %1931 = vst.msk [vmem:[%s4311_s6 + $0xc8] sm:$0xff] %vm1905_vm0, %v1828_v33 }
 0x2f5   : > { %v1842_v51 = vpop.xlane.xlu0 %1841 }
 0x2f6   : > { %1938 = vst.msk [vmem:[%s4311_s6 + $0x100] sm:$0xff] %vm1905_vm0, %v1842_v51 }
 0x2f7   : > { %v1832_v55 = vpop.xlane.xlu1 %1831 }
 0x2f8   : > { %1933 = vst.msk [vmem:[%s4311_s6 + $0xd8] sm:$0xff] %vm1905_vm0, %v1832_v55 }
 0x2f9   : > { %v1846_v10 = vpop.xlane.xlu0 %1845 }
 0x2fa   : > { %1940 = vst.msk [vmem:[%s4311_s6 + $0x110] sm:$0xff] %vm1905_vm0, %v1846_v10 }
 0x2fb   : > { %v1836_v22 = vpop.xlane.xlu1 %1835 }
 0x2fc   : > { %1935 = vst.msk [vmem:[%s4311_s6 + $0xe8] sm:$0xff] %vm1905_vm0, %v1836_v22 }
 0x2fd   : > { %v1850_v54 = vpop.xlane.xlu0 %1849 }
 0x2fe   : > { %1942 = vst.msk [vmem:[%s4311_s6 + $0x120] sm:$0xff] %vm1905_vm0, %v1850_v54 }
 0x2ff   : > { %v1840_v21 = vpop.xlane.xlu1 %1839 }
 0x300   : > { %1937 = vst.msk [vmem:[%s4311_s6 + $0xf8] sm:$0xff] %vm1905_vm0, %v1840_v21 }
 0x301   : > { %v1854_v43 = vpop.xlane.xlu0 %1853 }
 0x302   : > { %1944 = vst.msk [vmem:[%s4311_s6 + $0x130] sm:$0xff] %vm1905_vm0, %v1854_v43 }
 0x303   : > { %v1844_v11 = vpop.xlane.xlu1 %1843 }
 0x304   : > { %1939 = vst.msk [vmem:[%s4311_s6 + $0x108] sm:$0xff] %vm1905_vm0, %v1844_v11 }
 0x305   : > { %v1858_v17 = vpop.xlane.xlu0 %1857 }
 0x306   : > { %1946 = vst.msk [vmem:[%s4311_s6 + $0x140] sm:$0xff] %vm1905_vm0, %v1858_v17 }
 0x307   : > { %v1848_v63 = vpop.xlane.xlu1 %1847 }
 0x308   : > { %1941 = vst.msk [vmem:[%s4311_s6 + $0x118] sm:$0xff] %vm1905_vm0, %v1848_v63 }
 0x309   : > { %v1862_v50 = vpop.xlane.xlu0 %1861 }
 0x30a   : > { %1948 = vst.msk [vmem:[%s4311_s6 + $0x150] sm:$0xff] %vm1905_vm0, %v1862_v50 }
 0x30b   : > { %v1852_v14 = vpop.xlane.xlu1 %1851 }
 0x30c   : > { %1943 = vst.msk [vmem:[%s4311_s6 + $0x128] sm:$0xff] %vm1905_vm0, %v1852_v14 }
 0x30d   : > { %v1866_v36 = vpop.xlane.xlu0 %1865 }
 0x30e   : > { %1950 = vst.msk [vmem:[%s4311_s6 + $0x160] sm:$0xff] %vm1905_vm0, %v1866_v36 }
 0x30f   : > { %v1856_v25 = vpop.xlane.xlu1 %1855 }
 0x310   : > { %1945 = vst.msk [vmem:[%s4311_s6 + $0x138] sm:$0xff] %vm1905_vm0, %v1856_v25 }
 0x311   : > { %v1870_v40 = vpop.xlane.xlu0 %1869 }
 0x312   : > { %1952 = vst.msk [vmem:[%s4311_s6 + $0x170] sm:$0xff] %vm1905_vm0, %v1870_v40 }
 0x313   : > { %v1860_v5 = vpop.xlane.xlu1 %1859 }
 0x314   : > { %1947 = vst.msk [vmem:[%s4311_s6 + $0x148] sm:$0xff] %vm1905_vm0, %v1860_v5 }
 0x315   : > { %v1874_v15 = vpop.xlane.xlu0 %1873 }
 0x316   : > { %1954 = vst.msk [vmem:[%s4311_s6 + $0x180] sm:$0xff] %vm1905_vm0, %v1874_v15 }
 0x317   : > { %v1864_v61 = vpop.xlane.xlu1 %1863 }
 0x318   : > { %1949 = vst.msk [vmem:[%s4311_s6 + $0x158] sm:$0xff] %vm1905_vm0, %v1864_v61 }
 0x319   : > { %v1878_v26 = vpop.xlane.xlu0 %1877 }
 0x31a   : > { %1956 = vst.msk [vmem:[%s4311_s6 + $0x190] sm:$0xff] %vm1905_vm0, %v1878_v26 }
 0x31b   : > { %v1868_v0 = vpop.xlane.xlu1 %1867 }
 0x31c   : > { %1951 = vst.msk [vmem:[%s4311_s6 + $0x168] sm:$0xff] %vm1905_vm0, %v1868_v0 }
 0x31d   : > { %v1882_v13 = vpop.xlane.xlu0 %1881 }
 0x31e   : > { %1958 = vst.msk [vmem:[%s4311_s6 + $0x1a0] sm:$0xff] %vm1905_vm0, %v1882_v13 }
 0x31f   : > { %v1872_v19 = vpop.xlane.xlu1 %1871 }
 0x320   : > { %1953 = vst.msk [vmem:[%s4311_s6 + $0x178] sm:$0xff] %vm1905_vm0, %v1872_v19 }
 0x321   : > { %v1886_v45 = vpop.xlane.xlu0 %1885 }
 0x322   : > { %1960 = vst.msk [vmem:[%s4311_s6 + $0x1b0] sm:$0xff] %vm1905_vm0, %v1886_v45 }
 0x323   : > { %v1876_v24 = vpop.xlane.xlu1 %1875 }
 0x324   : > { %1955 = vst.msk [vmem:[%s4311_s6 + $0x188] sm:$0xff] %vm1905_vm0, %v1876_v24 }
 0x325   : > { %v1890_v2 = vpop.xlane.xlu0 %1889 }
 0x326   : > { %1962 = vst.msk [vmem:[%s4311_s6 + $0x1c0] sm:$0xff] %vm1905_vm0, %v1890_v2 }
 0x327   : > { %v1880_v60 = vpop.xlane.xlu1 %1879 }
 0x328   : > { %1957 = vst.msk [vmem:[%s4311_s6 + $0x198] sm:$0xff] %vm1905_vm0, %v1880_v60 }
 0x329   : > { %v1894_v7 = vpop.xlane.xlu0 %1893 }
 0x32a   : > { %1964 = vst.msk [vmem:[%s4311_s6 + $0x1d0] sm:$0xff] %vm1905_vm0, %v1894_v7 }
 0x32b   : > { %v1884_v52 = vpop.xlane.xlu1 %1883 }
 0x32c   : > { %1959 = vst.msk [vmem:[%s4311_s6 + $0x1a8] sm:$0xff] %vm1905_vm0, %v1884_v52 }
 0x32d   : > { %v1898_v58 = vpop.xlane.xlu0 %1897 }
 0x32e   : > { %1966 = vst.msk [vmem:[%s4311_s6 + $0x1e0] sm:$0xff] %vm1905_vm0, %v1898_v58 }
 0x32f   : > { %v1888_v6 = vpop.xlane.xlu1 %1887 }
 0x330   : > { %1961 = vst.msk [vmem:[%s4311_s6 + $0x1b8] sm:$0xff] %vm1905_vm0, %v1888_v6 }
 0x331   : > { %v1902_v16 = vpop.xlane.xlu0 %1901 }
 0x332   : > { %1968 = vst.msk [vmem:[%s4311_s6 + $0x1f0] sm:$0xff] %vm1905_vm0, %v1902_v16 }
 0x333   : > { %v1892_v31 = vpop.xlane.xlu1 %1891 }
 0x334   : > { %1963 = vst.msk [vmem:[%s4311_s6 + $0x1c8] sm:$0xff] %vm1905_vm0, %v1892_v31 }
 0x337   : > { %v1896_v57 = vpop.xlane.xlu1 %1895 }
 0x338   : > { %1965 = vst.msk [vmem:[%s4311_s6 + $0x1d8] sm:$0xff] %vm1905_vm0, %v1896_v57 }
 0x33b   : > { %v1900_v23 = vpop.xlane.xlu1 %1899 }
 0x33c   : > { %1967 = vst.msk [vmem:[%s4311_s6 + $0x1e8] sm:$0xff] %vm1905_vm0, %v1900_v23 }
 0x33f   : > { %v1904_v35 = vpop.xlane.xlu1 %1903 }
 0x340   : > { %1969 = vst.msk [vmem:[%s4311_s6 + $0x1f8] sm:$0xff] %vm1905_vm0, %v1904_v35 }
 0x341 PF: > { %s12_s9 = sadd.s32 1, %s2071_s9  }
 0x342   : > { %p9_p4 = scmp.ge.s32.totalorder %s12_s9, 4  }
 0x344   :  { %11 = sbr.rel (!%p9_p4) target bundleno = 1 (0x1), region = 58 }

</bundles_post_ra>
